<compile_context>
chip_gen: v7x
topology: tpu7x:2x2x1
jax: 0.10.0
libtpu: 0.0.40
codegen_flags: <defaults>
</compile_context>

<pallas_src>
import functools
import math

import jax
import jax.numpy as jnp
from jax.experimental import pallas as pl
from jax.experimental.pallas import tpu as pltpu

BN_EPS = 1e-5
BN_SCALE = 1.0 / math.sqrt(1.0 + BN_EPS)   # eval BN: gamma=1, beta=0, mean=0, var=1
CPAD = 128                                  # lane-dense channel padding at block boundaries


def _round_up(x, m):
    return (x + m - 1) // m * m


def _act(y, act):
    if act == "relu":
        return jnp.maximum(y, 0.0)
    if act == "hswish":
        return y * (jnp.clip(y + 3.0, 0.0, 6.0) * (1.0 / 6.0))
    return y


# --------------------------- per-block compute (values) ------------------------

def _block_compute(x, w1, b1, wd, bd, sw1, sb1, sw2, sb2, w2, b2, xp_ref, *,
                   H, W, stride, act, use_se, shortcut):
    """One inverted-residual block for a single batch element.

    x: (H*W, 128) bf16 (channel-padded).  Returns (Ho*Wo, 128) bf16.
    xp_ref: (H+2, W+2, Cmid_pad) f32 VMEM scratch (zero-padded depthwise input).
    NOTE: wd is consumed as [3*row_off + col_off, c]; random init is
    self-consistent, but PyTorch (C,1,kH,kW) imports must match this layout.
    """
    f32 = jnp.float32
    Cp = xp_ref.shape[-1]
    Ho = (H - 1) // stride + 1
    Wo = (W - 1) // stride + 1

    # ---- expansion 1x1 conv: one MXU matmul over the whole plane ----
    h = _act(jnp.dot(x, w1, preferred_element_type=f32) + b1, act)      # (H*W, Cp) f32

    # ---- zero only the 1-wide halo, then one bulk interior store ----
    xp_ref[pl.ds(0, 1), :, :] = jnp.zeros((1, W + 2, Cp), f32)
    xp_ref[pl.ds(H + 1, 1), :, :] = jnp.zeros((1, W + 2, Cp), f32)
    xp_ref[:, pl.ds(0, 1), :] = jnp.zeros((H + 2, 1, Cp), f32)
    xp_ref[:, pl.ds(W + 1, 1), :] = jnp.zeros((H + 2, 1, Cp), f32)
    xp_ref[pl.ds(1, H), pl.ds(1, W), :] = h.reshape(H, W, Cp)

    # ---- 3x3 depthwise conv: nine whole-plane shifted multiply-adds ----
    if stride == 1:
        acc = jnp.zeros((H, W, Cp), f32)
        for ky in range(3):
            for kx in range(3):
                tap = wd[3 * ky + kx: 3 * ky + kx + 1, :]               # (1, Cp)
                acc = acc + xp_ref[pl.ds(ky, H), pl.ds(kx, W), :] * tap
        d2 = _act(acc + bd, act).reshape(H * W, Cp)
    else:
        assert H % 2 == 0 and W % 2 == 0, "stride-2 blocks require even H, W"
        acc = jnp.zeros((Ho, W, Cp), f32)
        for ky in range(3):
            for kx in range(3):
                tap = wd[3 * ky + kx: 3 * ky + kx + 1, :]
                slab = xp_ref[pl.ds(ky, H), pl.ds(kx, W), :]            # (H, W, Cp)
                slab = slab.reshape(Ho, 2, W, Cp)[:, 0]                 # rows 0,2,.. (free)
                acc = acc + slab * tap
        dfull = _act(acc + bd, act)                                     # (Ho, W, Cp)
        d2 = dfull.reshape(Ho * Wo, 2, Cp)[:, 0, :]                     # cols 0,2,..

    # ---- squeeze-excite: whole-plane pooling + two tiny matmuls ----
    if use_se:
        pooled = jnp.mean(d2, axis=0, keepdims=True)                    # (1, Cp)
        hq = jnp.maximum(
            jnp.dot(pooled.astype(jnp.bfloat16), sw1,
                    preferred_element_type=f32) + sb1, 0.0)
        aq = jnp.dot(hq.astype(jnp.bfloat16), sw2,
                     preferred_element_type=f32) + sb2
        d2 = d2 * (jnp.clip(aq + 3.0, 0.0, 6.0) * (1.0 / 6.0))          # hsigmoid gate

    # ---- projection 1x1 conv (+ residual) ----
    y = jnp.dot(d2.astype(jnp.bfloat16), w2, preferred_element_type=f32) + b2
    if shortcut:
        y = y + x.astype(f32)
    return y.astype(jnp.bfloat16)


# ------------------------------ fused group kernel -----------------------------

def _group_kernel(*refs, meta):
    blocks = meta["blocks"]
    nin = 1 + (2 if meta["has_stem"] else 0) + (6 if meta["has_head"] else 0)
    nin += sum(6 + (4 if b["use_se"] else 0) for b in blocks)
    in_refs = refs[:nin]
    o_ref = refs[nin]
    xp_refs = refs[nin + 1:]

    it = iter(in_refs)
    x = next(it)[0]                                                     # (S, 128) bf16

    if meta["has_stem"]:
        ws, bs = next(it)[...], next(it)[...]
        x = _act(jnp.dot(x, ws, preferred_element_type=jnp.float32) + bs,
                 "hswish").astype(jnp.bfloat16)

    for bi, b in enumerate(blocks):
        w1, b1 = next(it)[...], next(it)[...]
        wd, bd = next(it)[...], next(it)[...]
        if b["use_se"]:
            sw1, sb1 = next(it)[...], next(it)[...]
            sw2, sb2 = next(it)[...], next(it)[...]
        else:
            sw1 = sb1 = sw2 = sb2 = None
        w2, b2 = next(it)[...], next(it)[...]
        x = _block_compute(x, w1, b1, wd, bd, sw1, sb1, sw2, sb2, w2, b2,
                           xp_refs[bi], H=b["H"], W=b["W"], stride=b["stride"],
                           act=b["act"], use_se=b["use_se"],
                           shortcut=b["shortcut"])

    if meta["has_head"]:
        wc, bc = next(it)[...], next(it)[...]
        wf1, bf1 = next(it)[...], next(it)[...]
        wf2, bf2 = next(it)[...], next(it)[...]
        h = _act(jnp.dot(x, wc, preferred_element_type=jnp.float32) + bc, "hswish")
        pooled = jnp.mean(h, axis=0, keepdims=True)                     # x.mean([2,3])
        z = _act(jnp.dot(pooled.astype(jnp.bfloat16), wf1,
                         preferred_element_type=jnp.float32) + bf1, "hswish")
        # TODO(synk): Dropout(0.8) is identity in eval mode.
        o_ref[0] = jnp.dot(z.astype(jnp.bfloat16), wf2,
                           preferred_element_type=jnp.float32) + bf2
    else:
        o_ref[0] = x


# ----------------------------------- wrapper -----------------------------------

def run_group(feat, group, params, N, H, W, n_class):
    args = [feat]
    blocks_meta, scratch = [], []
    if group["has_stem"]:
        args += [params["stem"]["w"], params["stem"]["b"]]
    curH, curW = H, W
    for bi in group["block_ids"]:
        blk = params["blocks"][bi]
        args += [blk["w1"], blk["b1"], blk["wd"], blk["bd"]]
        if blk["se"] is not None:
            args += [blk["se"]["w1"], blk["se"]["b1"], blk["se"]["w2"], blk["se"]["b2"]]
        args += [blk["w2"], blk["b2"]]
        cp = blk["w1"].shape[1]
        scratch.append(pltpu.VMEM((curH + 2, curW + 2, cp), jnp.float32))
        blocks_meta.append(dict(H=curH, W=curW, stride=blk["stride"], act=blk["act"],
                                use_se=blk["se"] is not None,
                                shortcut=blk["shortcut"]))
        curH = (curH - 1) // blk["stride"] + 1
        curW = (curW - 1) // blk["stride"] + 1
    if group["has_head"]:
        args += [params["head_conv"]["w"], params["head_conv"]["b"],
                 params["fc1"]["w"], params["fc1"]["b"],
                 params["fc2"]["w"], params["fc2"]["b"]]

    in_specs = [pl.BlockSpec((1, H * W, CPAD), lambda n: (n, 0, 0))]
    for a in args[1:]:
        in_specs.append(pl.BlockSpec(a.shape, lambda n, nd=a.ndim: (0,) * nd))

    if group["has_head"]:
        out_shape = jax.ShapeDtypeStruct((N, 1, n_class), jnp.float32)
        out_spec = pl.BlockSpec((1, 1, n_class), lambda n: (n, 0, 0))
    else:
        out_shape = jax.ShapeDtypeStruct((N, curH * curW, CPAD), jnp.bfloat16)
        out_spec = pl.BlockSpec((1, curH * curW, CPAD), lambda n: (n, 0, 0))

    meta = dict(blocks=blocks_meta, has_stem=group["has_stem"],
                has_head=group["has_head"])
    out = pl.pallas_call(
        functools.partial(_group_kernel, meta=meta),
        grid=(N,),
        out_shape=out_shape,
        in_specs=in_specs,
        out_specs=out_spec,
        scratch_shapes=scratch,
        compiler_params=pltpu.CompilerParams(
            dimension_semantics=("parallel",),      # shard batch across TCs on v7x
            vmem_limit_bytes=32 * 1024 * 1024),
    )(*args)
    return out, curH, curW


# ----------------------------- parameter initialization ------------------------

def _kaiming(key, shape, fan_out):
    # kaiming_normal_(mode='fan_out'): std = sqrt(2 / (cout * kH * kW))
    return math.sqrt(2.0 / fan_out) * jax.random.normal(key, shape, jnp.float32)


def init_pw(key, cin, cout, cin_pad, cout_pad):
    # 1x1 conv as (Cin_pad, Cout_pad) matmul weight with eval-BN scale folded
    # in; padded rows/cols are zero so padded lanes stay exactly zero.
    w = _kaiming(key, (cin, cout), cout) * BN_SCALE
    wp = jnp.zeros((cin_pad, cout_pad), jnp.float32).at[:cin, :cout].set(w)
    return {"w": wp.astype(jnp.bfloat16), "b": jnp.zeros((1, cout_pad), jnp.float32)}


def init_dw(key, c, c_pad):
    # 3x3 depthwise taps as (9, Cmid_pad) f32 (VPU operand), BN folded.
    w = _kaiming(key, (9, c), 9 * c) * BN_SCALE
    wp = jnp.zeros((9, c_pad), jnp.float32).at[:, :c].set(w)
    return {"w": wp, "b": jnp.zeros((1, c_pad), jnp.float32)}


def init_se(key, c, c_pad, reduction=4):
    cr = c // reduction
    cr_pad = _round_up(cr, 128)
    k1, k2 = jax.random.split(key)
    p1 = init_pw(k1, c, cr, c_pad, cr_pad)
    p2 = init_pw(k2, cr, c, cr_pad, c_pad)
    return {"w1": p1["w"], "b1": p1["b"], "w2": p2["w"], "b2": p2["b"]}


def init_linear(key, cin, cout):
    w = 0.01 * jax.random.normal(key, (cin, cout), jnp.float32)
    return {"w": w.astype(jnp.bfloat16), "b": jnp.zeros((1, cout), jnp.float32)}


# MobileNetV3 "Small": (out_c, exp_c, stride, use_se, act); the spec's
# InvertedResidual hardcodes a 3x3 depthwise conv (its ksize arg is unused).
SMALL_SETTING = [
    (16, 16, 2, True, "relu"),
    (24, 72, 2, False, "relu"),
    (24, 88, 1, False, "relu"),
    (40, 96, 2, True, "hswish"),
    (40, 240, 1, True, "hswish"),
    (40, 240, 1, True, "hswish"),
    (48, 120, 1, True, "hswish"),
    (48, 144, 1, True, "hswish"),
    (96, 288, 2, True, "hswish"),
    (96, 576, 1, True, "hswish"),
    (96, 576, 1, True, "hswish"),
]
LAST_CHANNEL = (576, 1024)

# Block fusion groups (one pallas_call each): stem+b0 | b1-b2 | b3-b7 | b8-b10+head
GROUPS = [
    dict(block_ids=[0], has_stem=True, has_head=False),
    dict(block_ids=[1, 2], has_stem=False, has_head=False),
    dict(block_ids=[3, 4, 5, 6, 7], has_stem=False, has_head=False),
    dict(block_ids=[8, 9, 10], has_stem=False, has_head=True),
]


def init_mobilenet_v3_small(key, n_class=10):
    keys = iter(jax.random.split(key, 4 * len(SMALL_SETTING) + 8))
    params = {"stem": init_pw(next(keys), 3, 16, CPAD, CPAD)}   # ConvBN(3,16,k=1,s=2,HS)
    in_c, blocks = 16, []
    for out_c, mid_c, s, use_se, act in SMALL_SETTING:
        mid_pad = _round_up(mid_c, 128)
        pw1 = init_pw(next(keys), in_c, mid_c, CPAD, mid_pad)
        dw = init_dw(next(keys), mid_c, mid_pad)
        pw2 = init_pw(next(keys), mid_c, out_c, mid_pad, CPAD)
        blocks.append({
            "w1": pw1["w"], "b1": pw1["b"],
            "wd": dw["w"], "bd": dw["b"],
            "se": init_se(next(keys), mid_c, mid_pad) if use_se else None,
            "w2": pw2["w"], "b2": pw2["b"],
            "stride": s, "act": act,
            "shortcut": (s == 1 and in_c == out_c),
        })
        in_c = out_c
    params["blocks"] = blocks
    params["head_conv"] = init_pw(next(keys), in_c, LAST_CHANNEL[0], CPAD, LAST_CHANNEL[0])
    params["fc1"] = init_linear(next(keys), LAST_CHANNEL[0], LAST_CHANNEL[1])
    params["fc2"] = init_linear(next(keys), LAST_CHANNEL[1], n_class)
    return params


# ------------------------------------ forward ----------------------------------

def mobilenet_v3_forward(params, x_nchw):
    # NCHW -> NHWC; stem ConvBN(3,16,k=1,s=2,p=0) = spatial subsample + matmul
    # (the matmul/BN/hswish part is fused into the first group kernel).
    x = jnp.transpose(x_nchw, (0, 2, 3, 1)).astype(jnp.float32)
    x = x[:, ::2, ::2, :]
    N, H, W, C = x.shape
    x = jnp.pad(x, ((0, 0), (0, 0), (0, 0), (0, CPAD - C)))      # lane-dense channels
    feat = x.reshape(N, H * W, CPAD).astype(jnp.bfloat16)
    n_class = params["fc2"]["w"].shape[1]
    for group in GROUPS:
        feat, H, W = run_group(feat, group, params, N, H, W, n_class)
    return feat.reshape(N, n_class)


if __name__ == "__main__":
    key = jax.random.PRNGKey(0)
    pkey, xkey = jax.random.split(key)

    n_class = 10
    params = init_mobilenet_v3_small(pkey, n_class=n_class)

    # small NCHW input; the module requires 3 input channels
    x = jax.random.normal(xkey, (2, 3, 32, 32), jnp.float32)

    out = mobilenet_v3_forward(params, x)
    out = jax.block_until_ready(out)
    assert out.shape == (2, n_class)
    assert bool(jnp.all(jnp.isfinite(out)))
    print("KERNEL_OK")
</pallas_src>

<mosaic_0001>
module attributes {stable_mosaic.version = 11 : i64} {
  func.func @_group_kernel(%arg0: i32, %arg1: memref<1x256x128xbf16, #tpu.memory_space<vmem>>, %arg2: memref<128x128xbf16, #tpu.memory_space<vmem>>, %arg3: memref<1x128xf32, #tpu.memory_space<vmem>>, %arg4: memref<128x128xbf16, #tpu.memory_space<vmem>>, %arg5: memref<1x128xf32, #tpu.memory_space<vmem>>, %arg6: memref<9x128xf32, #tpu.memory_space<vmem>>, %arg7: memref<1x128xf32, #tpu.memory_space<vmem>>, %arg8: memref<128x128xbf16, #tpu.memory_space<vmem>>, %arg9: memref<1x128xf32, #tpu.memory_space<vmem>>, %arg10: memref<128x128xbf16, #tpu.memory_space<vmem>>, %arg11: memref<1x128xf32, #tpu.memory_space<vmem>>, %arg12: memref<128x128xbf16, #tpu.memory_space<vmem>>, %arg13: memref<1x128xf32, #tpu.memory_space<vmem>>, %arg14: memref<1x64x128xbf16, #tpu.memory_space<vmem>>, %arg15: memref<18x18x128xf32, #tpu.memory_space<vmem>>) attributes {dimension_semantics = [#tpu.dimension_semantics<parallel>], iteration_bounds = array<i64: 2>, scalar_prefetch = 0 : i64, scratch_operands = 1 : i64, tpu.core_type = #tpu.core_type<tc>, window_params = [{transform_indices = @transform_0, window_bounds = array<i64: 1, 256, 128>}, {pipeline_mode = #tpu.pipeline_mode<synchronous>, transform_indices = @transform_1, window_bounds = array<i64: 128, 128>}, {pipeline_mode = #tpu.pipeline_mode<synchronous>, transform_indices = @transform_2, window_bounds = array<i64: 1, 128>}, {pipeline_mode = #tpu.pipeline_mode<synchronous>, transform_indices = @transform_3, window_bounds = array<i64: 128, 128>}, {pipeline_mode = #tpu.pipeline_mode<synchronous>, transform_indices = @transform_4, window_bounds = array<i64: 1, 128>}, {pipeline_mode = #tpu.pipeline_mode<synchronous>, transform_indices = @transform_5, window_bounds = array<i64: 9, 128>}, {pipeline_mode = #tpu.pipeline_mode<synchronous>, transform_indices = @transform_6, window_bounds = array<i64: 1, 128>}, {pipeline_mode = #tpu.pipeline_mode<synchronous>, transform_indices = @transform_7, window_bounds = array<i64: 128, 128>}, {pipeline_mode = #tpu.pipeline_mode<synchronous>, transform_indices = @transform_8, window_bounds = array<i64: 1, 128>}, {pipeline_mode = #tpu.pipeline_mode<synchronous>, transform_indices = @transform_9, window_bounds = array<i64: 128, 128>}, {pipeline_mode = #tpu.pipeline_mode<synchronous>, transform_indices = @transform_10, window_bounds = array<i64: 1, 128>}, {pipeline_mode = #tpu.pipeline_mode<synchronous>, transform_indices = @transform_11, window_bounds = array<i64: 128, 128>}, {pipeline_mode = #tpu.pipeline_mode<synchronous>, transform_indices = @transform_12, window_bounds = array<i64: 1, 128>}, {transform_indices = @transform_13, window_bounds = array<i64: 1, 64, 128>}]} {
    %c0 = arith.constant 0 : index
    %c0_0 = arith.constant 0 : index
    %c0_1 = arith.constant 0 : index
    %0 = vector.load %arg1[%c0, %c0_0, %c0_1] : memref<1x256x128xbf16, #tpu.memory_space<vmem>>, vector<1x256x128xbf16>
    %1 = vector.shape_cast %0 : vector<1x256x128xbf16> to vector<256x128xbf16>
    %c0_2 = arith.constant 0 : index
    %c0_3 = arith.constant 0 : index
    %2 = vector.load %arg2[%c0_2, %c0_3] : memref<128x128xbf16, #tpu.memory_space<vmem>>, vector<128x128xbf16>
    %c0_4 = arith.constant 0 : index
    %c0_5 = arith.constant 0 : index
    %3 = vector.load %arg3[%c0_4, %c0_5] : memref<1x128xf32, #tpu.memory_space<vmem>>, vector<1x128xf32>
    %cst = arith.constant dense<0.000000e+00> : vector<256x128xf32>
    %4 = tpu.matmul %1, %2, %cst {dimension_numbers = #tpu.dot_dimension_numbers<[1], [0], [0], [1], [0, 0, 1, 1], [], []>} : vector<256x128xbf16>, vector<128x128xbf16>, vector<256x128xf32> -> vector<256x128xf32>
    %5 = vector.broadcast %3 : vector<1x128xf32> to vector<256x128xf32>
    %6 = arith.addf %4, %5 : vector<256x128xf32>
    %cst_6 = arith.constant 3.000000e+00 : f32
    %7 = vector.broadcast %cst_6 : f32 to vector<256x128xf32>
    %8 = arith.addf %6, %7 : vector<256x128xf32>
    %cst_7 = arith.constant 0.000000e+00 : f32
    %cst_8 = arith.constant 6.000000e+00 : f32
    %9 = vector.broadcast %cst_7 : f32 to vector<256x128xf32>
    %10 = arith.maximumf %9, %8 : vector<256x128xf32>
    %11 = vector.broadcast %cst_8 : f32 to vector<256x128xf32>
    %12 = arith.minimumf %11, %10 : vector<256x128xf32>
    %cst_9 = arith.constant 0.166666672 : f32
    %13 = vector.broadcast %cst_9 : f32 to vector<256x128xf32>
    %14 = arith.mulf %12, %13 : vector<256x128xf32>
    %15 = arith.mulf %6, %14 : vector<256x128xf32>
    %16 = arith.truncf %15 : vector<256x128xf32> to vector<256x128xbf16>
    %c0_10 = arith.constant 0 : index
    %c0_11 = arith.constant 0 : index
    %17 = vector.load %arg4[%c0_10, %c0_11] : memref<128x128xbf16, #tpu.memory_space<vmem>>, vector<128x128xbf16>
    %c0_12 = arith.constant 0 : index
    %c0_13 = arith.constant 0 : index
    %18 = vector.load %arg5[%c0_12, %c0_13] : memref<1x128xf32, #tpu.memory_space<vmem>>, vector<1x128xf32>
    %c0_14 = arith.constant 0 : index
    %c0_15 = arith.constant 0 : index
    %19 = vector.load %arg6[%c0_14, %c0_15] : memref<9x128xf32, #tpu.memory_space<vmem>>, vector<9x128xf32>
    %c0_16 = arith.constant 0 : index
    %c0_17 = arith.constant 0 : index
    %20 = vector.load %arg7[%c0_16, %c0_17] : memref<1x128xf32, #tpu.memory_space<vmem>>, vector<1x128xf32>
    %c0_18 = arith.constant 0 : index
    %c0_19 = arith.constant 0 : index
    %21 = vector.load %arg8[%c0_18, %c0_19] : memref<128x128xbf16, #tpu.memory_space<vmem>>, vector<128x128xbf16>
    %c0_20 = arith.constant 0 : index
    %c0_21 = arith.constant 0 : index
    %22 = vector.load %arg9[%c0_20, %c0_21] : memref<1x128xf32, #tpu.memory_space<vmem>>, vector<1x128xf32>
    %c0_22 = arith.constant 0 : index
    %c0_23 = arith.constant 0 : index
    %23 = vector.load %arg10[%c0_22, %c0_23] : memref<128x128xbf16, #tpu.memory_space<vmem>>, vector<128x128xbf16>
    %c0_24 = arith.constant 0 : index
    %c0_25 = arith.constant 0 : index
    %24 = vector.load %arg11[%c0_24, %c0_25] : memref<1x128xf32, #tpu.memory_space<vmem>>, vector<1x128xf32>
    %c0_26 = arith.constant 0 : index
    %c0_27 = arith.constant 0 : index
    %25 = vector.load %arg12[%c0_26, %c0_27] : memref<128x128xbf16, #tpu.memory_space<vmem>>, vector<128x128xbf16>
    %c0_28 = arith.constant 0 : index
    %c0_29 = arith.constant 0 : index
    %26 = vector.load %arg13[%c0_28, %c0_29] : memref<1x128xf32, #tpu.memory_space<vmem>>, vector<1x128xf32>
    %cst_30 = arith.constant dense<0.000000e+00> : vector<256x128xf32>
    %27 = tpu.matmul %16, %17, %cst_30 {dimension_numbers = #tpu.dot_dimension_numbers<[1], [0], [0], [1], [0, 0, 1, 1], [], []>} : vector<256x128xbf16>, vector<128x128xbf16>, vector<256x128xf32> -> vector<256x128xf32>
    %28 = vector.broadcast %18 : vector<1x128xf32> to vector<256x128xf32>
    %29 = arith.addf %27, %28 : vector<256x128xf32>
    %cst_31 = arith.constant 0.000000e+00 : f32
    %30 = vector.broadcast %cst_31 : f32 to vector<256x128xf32>
    %31 = arith.maximumf %29, %30 : vector<256x128xf32>
    %cst_32 = arith.constant 0.000000e+00 : f32
    %32 = vector.broadcast %cst_32 : f32 to vector<1x18x128xf32>
    %c0_33 = arith.constant 0 : index
    %c0_34 = arith.constant 0 : index
    %c0_35 = arith.constant 0 : index
    %33 = vector.load %arg15[%c0_33, %c0_34, %c0_35] : memref<18x18x128xf32, #tpu.memory_space<vmem>>, vector<1x18x128xf32>
    tpu.vector_store %arg15[%c0_33, %c0_34, %c0_35], %32 {strides = array<i32>} : memref<18x18x128xf32, #tpu.memory_space<vmem>>, vector<1x18x128xf32>,
    %cst_36 = arith.constant 0.000000e+00 : f32
    %34 = vector.broadcast %cst_36 : f32 to vector<1x18x128xf32>
    %c17 = arith.constant 17 : index
    %c0_37 = arith.constant 0 : index
    %c0_38 = arith.constant 0 : index
    %35 = vector.load %arg15[%c17, %c0_37, %c0_38] : memref<18x18x128xf32, #tpu.memory_space<vmem>>, vector<1x18x128xf32>
    tpu.vector_store %arg15[%c17, %c0_37, %c0_38], %34 {strides = array<i32>} : memref<18x18x128xf32, #tpu.memory_space<vmem>>, vector<1x18x128xf32>,
    %cst_39 = arith.constant 0.000000e+00 : f32
    %36 = vector.broadcast %cst_39 : f32 to vector<18x1x128xf32>
    %c0_40 = arith.constant 0 : index
    %c0_41 = arith.constant 0 : index
    %c0_42 = arith.constant 0 : index
    %37 = vector.load %arg15[%c0_40, %c0_41, %c0_42] : memref<18x18x128xf32, #tpu.memory_space<vmem>>, vector<18x1x128xf32>
    tpu.vector_store %arg15[%c0_40, %c0_41, %c0_42], %36 {strides = array<i32>} : memref<18x18x128xf32, #tpu.memory_space<vmem>>, vector<18x1x128xf32>,
    %cst_43 = arith.constant 0.000000e+00 : f32
    %38 = vector.broadcast %cst_43 : f32 to vector<18x1x128xf32>
    %c0_44 = arith.constant 0 : index
    %c17_45 = arith.constant 17 : index
    %c0_46 = arith.constant 0 : index
    %39 = vector.load %arg15[%c0_44, %c17_45, %c0_46] : memref<18x18x128xf32, #tpu.memory_space<vmem>>, vector<18x1x128xf32>
    tpu.vector_store %arg15[%c0_44, %c17_45, %c0_46], %38 {strides = array<i32>} : memref<18x18x128xf32, #tpu.memory_space<vmem>>, vector<18x1x128xf32>,
    %40 = vector.shape_cast %31 : vector<256x128xf32> to vector<16x16x128xf32>
    %c1 = arith.constant 1 : index
    %c1_47 = arith.constant 1 : index
    %c0_48 = arith.constant 0 : index
    %41 = vector.load %arg15[%c1, %c1_47, %c0_48] : memref<18x18x128xf32, #tpu.memory_space<vmem>>, vector<16x16x128xf32>
    tpu.vector_store %arg15[%c1, %c1_47, %c0_48], %40 {strides = array<i32>} : memref<18x18x128xf32, #tpu.memory_space<vmem>>, vector<16x16x128xf32>,
    %cst_49 = arith.constant 0.000000e+00 : f32
    %42 = vector.broadcast %cst_49 : f32 to vector<8x16x128xf32>
    %43 = vector.extract_strided_slice %19 {offsets = [0, 0], sizes = [1, 128], strides = [1, 1]} : vector<9x128xf32> to vector<1x128xf32>
    %c0_50 = arith.constant 0 : index
    %c0_51 = arith.constant 0 : index
    %c0_52 = arith.constant 0 : index
    %44 = vector.load %arg15[%c0_50, %c0_51, %c0_52] : memref<18x18x128xf32, #tpu.memory_space<vmem>>, vector<16x16x128xf32>
    %45 = vector.shape_cast %44 : vector<16x16x128xf32> to vector<8x2x16x128xf32>
    %46 = vector.extract_strided_slice %45 {offsets = [0, 0, 0, 0], sizes = [8, 1, 16, 128], strides = [1, 1, 1, 1]} : vector<8x2x16x128xf32> to vector<8x1x16x128xf32>
    %47 = vector.shape_cast %46 : vector<8x1x16x128xf32> to vector<8x16x128xf32>
    %48 = vector.shape_cast %43 : vector<1x128xf32> to vector<1x1x128xf32>
    %49 = vector.broadcast %48 : vector<1x1x128xf32> to vector<8x16x128xf32>
    %50 = arith.mulf %47, %49 : vector<8x16x128xf32>
    %51 = arith.addf %42, %50 : vector<8x16x128xf32>
    %52 = vector.extract_strided_slice %19 {offsets = [1, 0], sizes = [1, 128], strides = [1, 1]} : vector<9x128xf32> to vector<1x128xf32>
    %c0_53 = arith.constant 0 : index
    %c1_54 = arith.constant 1 : index
    %c0_55 = arith.constant 0 : index
    %53 = vector.load %arg15[%c0_53, %c1_54, %c0_55] : memref<18x18x128xf32, #tpu.memory_space<vmem>>, vector<16x16x128xf32>
    %54 = vector.shape_cast %53 : vector<16x16x128xf32> to vector<8x2x16x128xf32>
    %55 = vector.extract_strided_slice %54 {offsets = [0, 0, 0, 0], sizes = [8, 1, 16, 128], strides = [1, 1, 1, 1]} : vector<8x2x16x128xf32> to vector<8x1x16x128xf32>
    %56 = vector.shape_cast %55 : vector<8x1x16x128xf32> to vector<8x16x128xf32>
    %57 = vector.shape_cast %52 : vector<1x128xf32> to vector<1x1x128xf32>
    %58 = vector.broadcast %57 : vector<1x1x128xf32> to vector<8x16x128xf32>
    %59 = arith.mulf %56, %58 : vector<8x16x128xf32>
    %60 = arith.addf %51, %59 : vector<8x16x128xf32>
    %61 = vector.extract_strided_slice %19 {offsets = [2, 0], sizes = [1, 128], strides = [1, 1]} : vector<9x128xf32> to vector<1x128xf32>
    %c0_56 = arith.constant 0 : index
    %c2 = arith.constant 2 : index
    %c0_57 = arith.constant 0 : index
    %62 = vector.load %arg15[%c0_56, %c2, %c0_57] : memref<18x18x128xf32, #tpu.memory_space<vmem>>, vector<16x16x128xf32>
    %63 = vector.shape_cast %62 : vector<16x16x128xf32> to vector<8x2x16x128xf32>
    %64 = vector.extract_strided_slice %63 {offsets = [0, 0, 0, 0], sizes = [8, 1, 16, 128], strides = [1, 1, 1, 1]} : vector<8x2x16x128xf32> to vector<8x1x16x128xf32>
    %65 = vector.shape_cast %64 : vector<8x1x16x128xf32> to vector<8x16x128xf32>
    %66 = vector.shape_cast %61 : vector<1x128xf32> to vector<1x1x128xf32>
    %67 = vector.broadcast %66 : vector<1x1x128xf32> to vector<8x16x128xf32>
    %68 = arith.mulf %65, %67 : vector<8x16x128xf32>
    %69 = arith.addf %60, %68 : vector<8x16x128xf32>
    %70 = vector.extract_strided_slice %19 {offsets = [3, 0], sizes = [1, 128], strides = [1, 1]} : vector<9x128xf32> to vector<1x128xf32>
    %c1_58 = arith.constant 1 : index
    %c0_59 = arith.constant 0 : index
    %c0_60 = arith.constant 0 : index
    %71 = vector.load %arg15[%c1_58, %c0_59, %c0_60] : memref<18x18x128xf32, #tpu.memory_space<vmem>>, vector<16x16x128xf32>
    %72 = vector.shape_cast %71 : vector<16x16x128xf32> to vector<8x2x16x128xf32>
    %73 = vector.extract_strided_slice %72 {offsets = [0, 0, 0, 0], sizes = [8, 1, 16, 128], strides = [1, 1, 1, 1]} : vector<8x2x16x128xf32> to vector<8x1x16x128xf32>
    %74 = vector.shape_cast %73 : vector<8x1x16x128xf32> to vector<8x16x128xf32>
    %75 = vector.shape_cast %70 : vector<1x128xf32> to vector<1x1x128xf32>
    %76 = vector.broadcast %75 : vector<1x1x128xf32> to vector<8x16x128xf32>
    %77 = arith.mulf %74, %76 : vector<8x16x128xf32>
    %78 = arith.addf %69, %77 : vector<8x16x128xf32>
    %79 = vector.extract_strided_slice %19 {offsets = [4, 0], sizes = [1, 128], strides = [1, 1]} : vector<9x128xf32> to vector<1x128xf32>
    %c1_61 = arith.constant 1 : index
    %c1_62 = arith.constant 1 : index
    %c0_63 = arith.constant 0 : index
    %80 = vector.load %arg15[%c1_61, %c1_62, %c0_63] : memref<18x18x128xf32, #tpu.memory_space<vmem>>, vector<16x16x128xf32>
    %81 = vector.shape_cast %80 : vector<16x16x128xf32> to vector<8x2x16x128xf32>
    %82 = vector.extract_strided_slice %81 {offsets = [0, 0, 0, 0], sizes = [8, 1, 16, 128], strides = [1, 1, 1, 1]} : vector<8x2x16x128xf32> to vector<8x1x16x128xf32>
    %83 = vector.shape_cast %82 : vector<8x1x16x128xf32> to vector<8x16x128xf32>
    %84 = vector.shape_cast %79 : vector<1x128xf32> to vector<1x1x128xf32>
    %85 = vector.broadcast %84 : vector<1x1x128xf32> to vector<8x16x128xf32>
    %86 = arith.mulf %83, %85 : vector<8x16x128xf32>
    %87 = arith.addf %78, %86 : vector<8x16x128xf32>
    %88 = vector.extract_strided_slice %19 {offsets = [5, 0], sizes = [1, 128], strides = [1, 1]} : vector<9x128xf32> to vector<1x128xf32>
    %c1_64 = arith.constant 1 : index
    %c2_65 = arith.constant 2 : index
    %c0_66 = arith.constant 0 : index
    %89 = vector.load %arg15[%c1_64, %c2_65, %c0_66] : memref<18x18x128xf32, #tpu.memory_space<vmem>>, vector<16x16x128xf32>
    %90 = vector.shape_cast %89 : vector<16x16x128xf32> to vector<8x2x16x128xf32>
    %91 = vector.extract_strided_slice %90 {offsets = [0, 0, 0, 0], sizes = [8, 1, 16, 128], strides = [1, 1, 1, 1]} : vector<8x2x16x128xf32> to vector<8x1x16x128xf32>
    %92 = vector.shape_cast %91 : vector<8x1x16x128xf32> to vector<8x16x128xf32>
    %93 = vector.shape_cast %88 : vector<1x128xf32> to vector<1x1x128xf32>
    %94 = vector.broadcast %93 : vector<1x1x128xf32> to vector<8x16x128xf32>
    %95 = arith.mulf %92, %94 : vector<8x16x128xf32>
    %96 = arith.addf %87, %95 : vector<8x16x128xf32>
    %97 = vector.extract_strided_slice %19 {offsets = [6, 0], sizes = [1, 128], strides = [1, 1]} : vector<9x128xf32> to vector<1x128xf32>
    %c2_67 = arith.constant 2 : index
    %c0_68 = arith.constant 0 : index
    %c0_69 = arith.constant 0 : index
    %98 = vector.load %arg15[%c2_67, %c0_68, %c0_69] : memref<18x18x128xf32, #tpu.memory_space<vmem>>, vector<16x16x128xf32>
    %99 = vector.shape_cast %98 : vector<16x16x128xf32> to vector<8x2x16x128xf32>
    %100 = vector.extract_strided_slice %99 {offsets = [0, 0, 0, 0], sizes = [8, 1, 16, 128], strides = [1, 1, 1, 1]} : vector<8x2x16x128xf32> to vector<8x1x16x128xf32>
    %101 = vector.shape_cast %100 : vector<8x1x16x128xf32> to vector<8x16x128xf32>
    %102 = vector.shape_cast %97 : vector<1x128xf32> to vector<1x1x128xf32>
    %103 = vector.broadcast %102 : vector<1x1x128xf32> to vector<8x16x128xf32>
    %104 = arith.mulf %101, %103 : vector<8x16x128xf32>
    %105 = arith.addf %96, %104 : vector<8x16x128xf32>
    %106 = vector.extract_strided_slice %19 {offsets = [7, 0], sizes = [1, 128], strides = [1, 1]} : vector<9x128xf32> to vector<1x128xf32>
    %c2_70 = arith.constant 2 : index
    %c1_71 = arith.constant 1 : index
    %c0_72 = arith.constant 0 : index
    %107 = vector.load %arg15[%c2_70, %c1_71, %c0_72] : memref<18x18x128xf32, #tpu.memory_space<vmem>>, vector<16x16x128xf32>
    %108 = vector.shape_cast %107 : vector<16x16x128xf32> to vector<8x2x16x128xf32>
    %109 = vector.extract_strided_slice %108 {offsets = [0, 0, 0, 0], sizes = [8, 1, 16, 128], strides = [1, 1, 1, 1]} : vector<8x2x16x128xf32> to vector<8x1x16x128xf32>
    %110 = vector.shape_cast %109 : vector<8x1x16x128xf32> to vector<8x16x128xf32>
    %111 = vector.shape_cast %106 : vector<1x128xf32> to vector<1x1x128xf32>
    %112 = vector.broadcast %111 : vector<1x1x128xf32> to vector<8x16x128xf32>
    %113 = arith.mulf %110, %112 : vector<8x16x128xf32>
    %114 = arith.addf %105, %113 : vector<8x16x128xf32>
    %115 = vector.extract_strided_slice %19 {offsets = [8, 0], sizes = [1, 128], strides = [1, 1]} : vector<9x128xf32> to vector<1x128xf32>
    %c2_73 = arith.constant 2 : index
    %c2_74 = arith.constant 2 : index
    %c0_75 = arith.constant 0 : index
    %116 = vector.load %arg15[%c2_73, %c2_74, %c0_75] : memref<18x18x128xf32, #tpu.memory_space<vmem>>, vector<16x16x128xf32>
    %117 = vector.shape_cast %116 : vector<16x16x128xf32> to vector<8x2x16x128xf32>
    %118 = vector.extract_strided_slice %117 {offsets = [0, 0, 0, 0], sizes = [8, 1, 16, 128], strides = [1, 1, 1, 1]} : vector<8x2x16x128xf32> to vector<8x1x16x128xf32>
    %119 = vector.shape_cast %118 : vector<8x1x16x128xf32> to vector<8x16x128xf32>
    %120 = vector.shape_cast %115 : vector<1x128xf32> to vector<1x1x128xf32>
    %121 = vector.broadcast %120 : vector<1x1x128xf32> to vector<8x16x128xf32>
    %122 = arith.mulf %119, %121 : vector<8x16x128xf32>
    %123 = arith.addf %114, %122 : vector<8x16x128xf32>
    %124 = vector.shape_cast %20 : vector<1x128xf32> to vector<1x1x128xf32>
    %125 = vector.broadcast %124 : vector<1x1x128xf32> to vector<8x16x128xf32>
    %126 = arith.addf %123, %125 : vector<8x16x128xf32>
    %cst_76 = arith.constant 0.000000e+00 : f32
    %127 = vector.broadcast %cst_76 : f32 to vector<8x16x128xf32>
    %128 = arith.maximumf %126, %127 : vector<8x16x128xf32>
    %129 = vector.shape_cast %128 : vector<8x16x128xf32> to vector<64x2x128xf32>
    %130 = vector.extract_strided_slice %129 {offsets = [0, 0, 0], sizes = [64, 1, 128], strides = [1, 1, 1]} : vector<64x2x128xf32> to vector<64x1x128xf32>
    %131 = vector.shape_cast %130 : vector<64x1x128xf32> to vector<64x128xf32>
    %cst_77 = arith.constant dense<0.000000e+00> : vector<128xf32>
    %132 = vector.multi_reduction <add>, %131, %cst_77 [0] : vector<64x128xf32> to vector<128xf32>
    %133 = vector.shape_cast %132 : vector<128xf32> to vector<1x128xf32>
    %cst_78 = arith.constant 6.400000e+01 : f32
    %134 = vector.broadcast %cst_78 : f32 to vector<1x128xf32>
    %135 = arith.divf %133, %134 : vector<1x128xf32>
    %136 = arith.truncf %135 : vector<1x128xf32> to vector<1x128xbf16>
    %cst_79 = arith.constant dense<0.000000e+00> : vector<1x128xf32>
    %137 = tpu.matmul %136, %21, %cst_79 {dimension_numbers = #tpu.dot_dimension_numbers<[1], [0], [0], [1], [0, 0, 1, 1], [], []>} : vector<1x128xbf16>, vector<128x128xbf16>, vector<1x128xf32> -> vector<1x128xf32>
    %138 = arith.addf %137, %22 : vector<1x128xf32>
    %cst_80 = arith.constant 0.000000e+00 : f32
    %139 = vector.broadcast %cst_80 : f32 to vector<1x128xf32>
    %140 = arith.maximumf %138, %139 : vector<1x128xf32>
    %141 = arith.truncf %140 : vector<1x128xf32> to vector<1x128xbf16>
    %cst_81 = arith.constant dense<0.000000e+00> : vector<1x128xf32>
    %142 = tpu.matmul %141, %23, %cst_81 {dimension_numbers = #tpu.dot_dimension_numbers<[1], [0], [0], [1], [0, 0, 1, 1], [], []>} : vector<1x128xbf16>, vector<128x128xbf16>, vector<1x128xf32> -> vector<1x128xf32>
    %143 = arith.addf %142, %24 : vector<1x128xf32>
    %cst_82 = arith.constant 3.000000e+00 : f32
    %144 = vector.broadcast %cst_82 : f32 to vector<1x128xf32>
    %145 = arith.addf %143, %144 : vector<1x128xf32>
    %cst_83 = arith.constant 0.000000e+00 : f32
    %cst_84 = arith.constant 6.000000e+00 : f32
    %146 = vector.broadcast %cst_83 : f32 to vector<1x128xf32>
    %147 = arith.maximumf %146, %145 : vector<1x128xf32>
    %148 = vector.broadcast %cst_84 : f32 to vector<1x128xf32>
    %149 = arith.minimumf %148, %147 : vector<1x128xf32>
    %cst_85 = arith.constant 0.166666672 : f32
    %150 = vector.broadcast %cst_85 : f32 to vector<1x128xf32>
    %151 = arith.mulf %149, %150 : vector<1x128xf32>
    %152 = vector.broadcast %151 : vector<1x128xf32> to vector<64x128xf32>
    %153 = arith.mulf %131, %152 : vector<64x128xf32>
    %154 = arith.truncf %153 : vector<64x128xf32> to vector<64x128xbf16>
    %cst_86 = arith.constant dense<0.000000e+00> : vector<64x128xf32>
    %155 = tpu.matmul %154, %25, %cst_86 {dimension_numbers = #tpu.dot_dimension_numbers<[1], [0], [0], [1], [0, 0, 1, 1], [], []>} : vector<64x128xbf16>, vector<128x128xbf16>, vector<64x128xf32> -> vector<64x128xf32>
    %156 = vector.broadcast %26 : vector<1x128xf32> to vector<64x128xf32>
    %157 = arith.addf %155, %156 : vector<64x128xf32>
    %158 = arith.truncf %157 : vector<64x128xf32> to vector<64x128xbf16>
    %c0_87 = arith.constant 0 : index
    %c0_88 = arith.constant 0 : index
    %c0_89 = arith.constant 0 : index
    %159 = vector.load %arg14[%c0_87, %c0_88, %c0_89] : memref<1x64x128xbf16, #tpu.memory_space<vmem>>, vector<1x64x128xbf16>
    %160 = vector.shape_cast %159 : vector<1x64x128xbf16> to vector<64x128xbf16>
    %161 = vector.shape_cast %158 : vector<64x128xbf16> to vector<1x64x128xbf16>
    tpu.vector_store %arg14[%c0_87, %c0_88, %c0_89], %161 {strides = array<i32>} : memref<1x64x128xbf16, #tpu.memory_space<vmem>>, vector<1x64x128xbf16>,
    return
  }
  func.func @transform_0(%arg0: i32) -> (i32, i32, i32) {
    %c0_i32 = arith.constant 0 : i32
    %c0_i32_0 = arith.constant 0 : i32
    %c0_i32_1 = arith.constant 0 : i32
    return %arg0, %c0_i32, %c0_i32_0 : i32, i32, i32
  }
  func.func @transform_1(%arg0: i32) -> (i32, i32) {
    %c0_i32 = arith.constant 0 : i32
    %c0_i32_0 = arith.constant 0 : i32
    %c0_i32_1 = arith.constant 0 : i32
    return %c0_i32, %c0_i32_0 : i32, i32
  }
  func.func @transform_2(%arg0: i32) -> (i32, i32) {
    %c0_i32 = arith.constant 0 : i32
    %c0_i32_0 = arith.constant 0 : i32
    %c0_i32_1 = arith.constant 0 : i32
    return %c0_i32, %c0_i32_0 : i32, i32
  }
  func.func @transform_3(%arg0: i32) -> (i32, i32) {
    %c0_i32 = arith.constant 0 : i32
    %c0_i32_0 = arith.constant 0 : i32
    %c0_i32_1 = arith.constant 0 : i32
    return %c0_i32, %c0_i32_0 : i32, i32
  }
  func.func @transform_4(%arg0: i32) -> (i32, i32) {
    %c0_i32 = arith.constant 0 : i32
    %c0_i32_0 = arith.constant 0 : i32
    %c0_i32_1 = arith.constant 0 : i32
    return %c0_i32, %c0_i32_0 : i32, i32
  }
  func.func @transform_5(%arg0: i32) -> (i32, i32) {
    %c0_i32 = arith.constant 0 : i32
    %c0_i32_0 = arith.constant 0 : i32
    %c0_i32_1 = arith.constant 0 : i32
    return %c0_i32, %c0_i32_0 : i32, i32
  }
  func.func @transform_6(%arg0: i32) -> (i32, i32) {
    %c0_i32 = arith.constant 0 : i32
    %c0_i32_0 = arith.constant 0 : i32
    %c0_i32_1 = arith.constant 0 : i32
    return %c0_i32, %c0_i32_0 : i32, i32
  }
  func.func @transform_7(%arg0: i32) -> (i32, i32) {
    %c0_i32 = arith.constant 0 : i32
    %c0_i32_0 = arith.constant 0 : i32
    %c0_i32_1 = arith.constant 0 : i32
    return %c0_i32, %c0_i32_0 : i32, i32
  }
  func.func @transform_8(%arg0: i32) -> (i32, i32) {
    %c0_i32 = arith.constant 0 : i32
    %c0_i32_0 = arith.constant 0 : i32
    %c0_i32_1 = arith.constant 0 : i32
    return %c0_i32, %c0_i32_0 : i32, i32
  }
  func.func @transform_9(%arg0: i32) -> (i32, i32) {
    %c0_i32 = arith.constant 0 : i32
    %c0_i32_0 = arith.constant 0 : i32
    %c0_i32_1 = arith.constant 0 : i32
    return %c0_i32, %c0_i32_0 : i32, i32
  }
  func.func @transform_10(%arg0: i32) -> (i32, i32) {
    %c0_i32 = arith.constant 0 : i32
    %c0_i32_0 = arith.constant 0 : i32
    %c0_i32_1 = arith.constant 0 : i32
    return %c0_i32, %c0_i32_0 : i32, i32
  }
  func.func @transform_11(%arg0: i32) -> (i32, i32) {
    %c0_i32 = arith.constant 0 : i32
    %c0_i32_0 = arith.constant 0 : i32
    %c0_i32_1 = arith.constant 0 : i32
    return %c0_i32, %c0_i32_0 : i32, i32
  }
  func.func @transform_12(%arg0: i32) -> (i32, i32) {
    %c0_i32 = arith.constant 0 : i32
    %c0_i32_0 = arith.constant 0 : i32
    %c0_i32_1 = arith.constant 0 : i32
    return %c0_i32, %c0_i32_0 : i32, i32
  }
  func.func @transform_13(%arg0: i32) -> (i32, i32, i32) {
    %c0_i32 = arith.constant 0 : i32
    %c0_i32_0 = arith.constant 0 : i32
    %c0_i32_1 = arith.constant 0 : i32
    return %arg0, %c0_i32, %c0_i32_0 : i32, i32, i32
  }
}

</mosaic_0001>

<bundles_post_ra>
// kernel: tpu_custom_call.1
= control target key start
LH: loop header
LB: loop body
LE: loop exit
PB: predicated region body
PF: predicated region fallthrough
CT: control target
= control target key end

     0   :  { %s6100_s0 = inlined_call_operand.hbm [shape: bf16[2,256,128], index: 0, kind: input, shape index: {}]   ;;  %s6101_s1 = inlined_call_operand.hbm [shape: bf16[128,128], index: 1, kind: input, shape index: {}]   ;;  %s6102_s2 = inlined_call_operand.vmem [shape: f32[1,128], index: 2, kind: input, shape index: {}]   ;;  %s6103_s3 = inlined_call_operand.hbm [shape: bf16[128,128], index: 3, kind: input, shape index: {}]   ;;  %s6104_s4 = inlined_call_operand.vmem [shape: f32[1,128], index: 4, kind: input, shape index: {}]   ;;  %s6105_s5 = inlined_call_operand.vmem [shape: f32[9,128], index: 5, kind: input, shape index: {}]   ;;  %s6106_s6 = inlined_call_operand.vmem [shape: f32[1,128], index: 6, kind: input, shape index: {}]   ;;  %s6107_s7 = inlined_call_operand.hbm [shape: bf16[128,128], index: 7, kind: input, shape index: {}]   ;;  %s6108_s8 = inlined_call_operand.vmem [shape: f32[1,128], index: 8, kind: input, shape index: {}]   ;;  %s6109_s9 = inlined_call_operand.hbm [shape: bf16[128,128], index: 9, kind: input, shape index: {}]   ;;  %s6110_s10 = inlined_call_operand.vmem [shape: f32[1,128], index: 10, kind: input, shape index: {}]   ;;  %s6111_s11 = inlined_call_operand.hbm [shape: bf16[128,128], index: 11, kind: input, shape index: {}]   ;;  %s6112_s12 = inlined_call_operand.vmem [shape: f32[1,128], index: 12, kind: input, shape index: {}]   ;;  %s6113_s13 = inlined_call_operand.hbm [shape: bf16[2,64,128], index: 13, kind: output, shape index: {}]  }
   0x1   :  { %6185 = sst [smem:[#allocation70_spill]] %s6101_s1 }
   0x2   :  { %6186 = sst [smem:[#allocation71_spill]] %s6106_s6 }
   0x3   :  { %6187 = sst [smem:[#allocation72_spill]] %s6108_s8 }
   0x4   :  { %6188 = sst [smem:[#allocation73_spill]] %s6110_s10 }
   0x5   :  { %6189 = sst [smem:[#allocation74_spill]] %s6112_s12 }
   0x6   :  { %6190 = sst [smem:[#allocation75_spill]] %s6113_s13 }
   0x7   :  { %18 = vsyncpa [#allocation4], 0 }
   0x8   :  { %20 = vsyncpa [#allocation4 + $0x1], 0 }
   0x9   :  { %21 = vsyncpa [#allocation7], 0 }
   0xa   :  { %22 = vsyncpa [#allocation10], 0 }
   0xb   :  { %23 = vsyncpa [#allocation13], 0 }
   0xc   :  { %24 = vsyncpa [#allocation5], 0 }
   0xd   :  { %26 = vsyncpa [#allocation5 + $0x1], 0  ;;  %s4426_s25 = smov 0   ;;  %s4428_s26 = smov 0  }
   0xe   :  { %s4430_s27 = smov 0   ;;  %s4432_s28 = smov 0  }
   0xf LB: > { %s4342_s29 = smov [#allocation6]   ;;  %s4447_s14 = sadd.s32 4294967295, %s4340_s28   ;;  %s4340_s28 = sphi %s4432_s28, %s6342_s28   ;;  %s4336_s27 = sphi %s4430_s27, %s6341_s27   ;;  %s4332_s26 = sphi %s4428_s26, %s6340_s26   ;;  %s4328_s25 = sphi %s4426_s25, %s6339_s25  }
  0x10   : > { %s353_s30 = sshll.u32 %s4342_s29, 4  ;;  %p3552_p0 = scmp.ge.s32.totalorder %s4340_s28, 1  ;;  %s4452_s30 = int_to_ptr.vmem [resolvable:$true] %s353_s30 }
  0x11   : > { %p6115_p1 = scmp.eq.s32.totalorder %s4447_s14, 0  ;;  %p341_p2 = scmp.lt.s32.totalorder %s4340_s28, 3 }
  0x12   : > { %s4343_s16 = smov [#allocation9]   ;;  %s4344_s19 = smov [#allocation8]  }
  0x13   : > { %p4454_p3 = pnand %p3552_p0, %p341_p2  ;;  %s391_s17 = sshll.u32 %s4343_s16, 4  ;;  %s4467_s17 = int_to_ptr.vmem [resolvable:$true] %s391_s17 }
  0x14   : > { %s369_s20 = sshll.u32 %s4344_s19, 4  ;;  %s6193_s1 = sld [smem:[#allocation70_spill]]  ;;  %s4469_s20 = int_to_ptr.vmem [resolvable:$true] %s369_s20 }
  0x15   : > { %s6191_s15 = scalar_select %p4454_p3, 1, 0 }
  0x16   : > { %p3955_p5 = pneg %p4454_p3 }
  0x18   : > { %p4463_p6 = pnand %p3955_p5, %p6115_p1 }
  0x1a   : > { %s4092_s23 = scalar_lea.hbm %s6193_s1, 1024  ;;  %p4479_p8 = pneg %p4463_p6 }
  0x1b   : > { %p4093_p7 = scmp.ne.s32.totalorder %s6193_s1, %s4092_s23  ;;  %p4099_p11 = scmp.lt.u32.totalorder %s4092_s23, %s6193_s1 }
  0x1d   : > { %p4095_p9 = pnand %p4479_p8, %p4093_p7 }
  0x1f   : > { %p4096_p10 = pneg %p4095_p9 }
  0x21   : > { %p4101_p12 = pnand %p4099_p11, %p4096_p10 }
  0x23   : > { %4104 = shalt.err (!%p4101_p12)
}
  0x24   : > { %s4105_s21 = scalar_lea.vmem %s4452_s30, 1024  ;;  %p4113_p5 = scmp.lt.s32.totalorder %s4452_s30, %s4452_s30 }
  0x25   : > { %p4106_p13 = scmp.ne.s32.totalorder %s4452_s30, %s4105_s21  ;;  %p4114_p4 = scmp.lt.s32.totalorder %s4105_s21, %s4105_s21 }
  0x27   : > { %p4108_p0 = pnand %p4106_p13, %p4479_p8  ;;  %p4115_p7 = por %p4114_p4, %p4113_p5 }
  0x29   : > { %p4109_p2 = pneg %p4108_p0 }
  0x2b   : > { %p4116_p9 = pnand %p4115_p7, %p4109_p2 }
  0x2d   : > { %4119 = shalt.err (!%p4116_p9)
}
  0x2e   : > { %s6117_s22 = smov 64   ;;  %s4346_s13 = smov 4  }
  0x2f   : > { %3958 = dma.hbm_to_vmem [thread:$0]  (!%p4463_p6), %s6193_s1, 1024, %s4452_s30, [#allocation7], %s6117_s22, %s6117_s22, %s4346_s13  }
  0x30   : > { %s4120_s21 = scalar_lea.hbm %s6107_s7, 1024 }
  0x31   : > { %p4121_p4 = scmp.ne.s32.totalorder %s6107_s7, %s4120_s21  ;;  %p4127_p12 = scmp.lt.u32.totalorder %s4120_s21, %s6107_s7 }
  0x33   : > { %p4123_p10 = pnand %p4121_p4, %p4479_p8 }
  0x35   : > { %p4124_p11 = pneg %p4123_p10 }
  0x37   : > { %p4129_p13 = pnand %p4127_p12, %p4124_p11 }
  0x39   : > { %4132 = shalt.err (!%p4129_p13)
}
  0x3a   : > { %s4133_s30 = scalar_lea.vmem %s4467_s17, 1024  ;;  %p4141_p7 = scmp.lt.s32.totalorder %s4467_s17, %s4467_s17 }
  0x3b   : > { %p4134_p0 = scmp.ne.s32.totalorder %s4467_s17, %s4133_s30  ;;  %p4142_p9 = scmp.lt.s32.totalorder %s4133_s30, %s4133_s30 }
  0x3d   : > { %p4136_p2 = pnand %p4134_p0, %p4479_p8  ;;  %p4143_p4 = por %p4142_p9, %p4141_p7 }
  0x3f   : > { %p4137_p5 = pneg %p4136_p2 }
  0x41   : > { %p4144_p10 = pnand %p4143_p4, %p4137_p5 }
  0x43   : > { %4147 = shalt.err (!%p4144_p10)
}
  0x44   : > { %3964 = dma.hbm_to_vmem [thread:$0]  (!%p4463_p6), %s6107_s7, 1024, %s4467_s17, [#allocation10], %s6117_s22, %s6117_s22, %s4346_s13  }
  0x45   : > { %s4148_s23 = scalar_lea.hbm %s6103_s3, 1024 }
  0x46   : > { %p4149_p11 = scmp.ne.s32.totalorder %s6103_s3, %s4148_s23  ;;  %p4155_p0 = scmp.lt.u32.totalorder %s4148_s23, %s6103_s3 }
  0x48   : > { %p4151_p12 = pnand %p4149_p11, %p4479_p8 }
  0x4a   : > { %p4152_p13 = pneg %p4151_p12 }
  0x4c   : > { %p4157_p2 = pnand %p4155_p0, %p4152_p13 }
  0x4e   : > { %4160 = shalt.err (!%p4157_p2)
}
  0x4f   : > { %s4161_s17 = scalar_lea.vmem %s4469_s20, 1024  ;;  %p4169_p4 = scmp.lt.s32.totalorder %s4469_s20, %s4469_s20 }
  0x50   : > { %p4162_p5 = scmp.ne.s32.totalorder %s4469_s20, %s4161_s17  ;;  %p4170_p10 = scmp.lt.s32.totalorder %s4161_s17, %s4161_s17 }
  0x52   : > { %p4164_p7 = pnand %p4162_p5, %p4479_p8  ;;  %p4171_p11 = por %p4170_p10, %p4169_p4 }
  0x54   : > { %p4165_p9 = pneg %p4164_p7 }
  0x56   : > { %p4172_p12 = pnand %p4171_p11, %p4165_p9 }
  0x58   : > { %4175 = shalt.err (!%p4172_p12)
}
  0x59   : > { %3961 = dma.hbm_to_vmem [thread:$0]  (!%p4463_p6), %s6103_s3, 1024, %s4469_s20, [#allocation7], %s6117_s22, %s6117_s22, %s4346_s13  }
  0x5a   : > { %s4347_s8 = smov [#allocation11]   ;;  %s4348_s12 = smov [#allocation12]  }
  0x5b   : > { %s407_s10 = sshll.u32 %s4347_s8, 4  ;;  %s423_s23 = sshll.u32 %s4348_s12, 4  ;;  %s408_s10 = int_to_ptr.vmem [resolvable:$true] %s407_s10  ;;  %s424_s23 = int_to_ptr.vmem [resolvable:$true] %s423_s23 }
  0x5c   : > { %s4176_s19 = scalar_lea.hbm %s6109_s9, 1024 }
  0x5d   : > { %p4177_p13 = scmp.ne.s32.totalorder %s6109_s9, %s4176_s19  ;;  %p4183_p5 = scmp.lt.u32.totalorder %s4176_s19, %s6109_s9 }
  0x5f   : > { %p4179_p0 = pnand %p4177_p13, %p4479_p8 }
  0x61   : > { %p4180_p2 = pneg %p4179_p0 }
  0x63   : > { %p4185_p7 = pnand %p4183_p5, %p4180_p2 }
  0x65   : > { %4188 = shalt.err (!%p4185_p7)
}
  0x66   : > { %s4189_s20 = scalar_lea.vmem %s408_s10, 1024  ;;  %p4197_p11 = scmp.lt.s32.totalorder %s408_s10, %s408_s10 }
  0x67   : > { %p4190_p9 = scmp.ne.s32.totalorder %s408_s10, %s4189_s20  ;;  %p4198_p12 = scmp.lt.s32.totalorder %s4189_s20, %s4189_s20 }
  0x69   : > { %p4192_p4 = pnand %p4190_p9, %p4479_p8  ;;  %p4199_p1 = por %p4198_p12, %p4197_p11 }
  0x6b   : > { %p4193_p10 = pneg %p4192_p4 }
  0x6d   : > { %p4200_p3 = pnand %p4199_p1, %p4193_p10 }
  0x6f   : > { %4203 = shalt.err (!%p4200_p3)
}
  0x70   : > { %3967 = dma.hbm_to_vmem [thread:$0]  (!%p4463_p6), %s6109_s9, 1024, %s408_s10, [#allocation10], %s6117_s22, %s6117_s22, %s4346_s13  }
  0x71   : > { %s4204_s24 = scalar_lea.hbm %s6111_s11, 1024 }
  0x72   : > { %p4205_p1 = scmp.ne.s32.totalorder %s6111_s11, %s4204_s24  ;;  %p4211_p0 = scmp.lt.u32.totalorder %s4204_s24, %s6111_s11 }
  0x74   : > { %p4207_p3 = pnand %p4205_p1, %p4479_p8 }
  0x76   : > { %p4208_p13 = pneg %p4207_p3 }
  0x78   : > { %p4213_p2 = pnand %p4211_p0, %p4208_p13 }
  0x7a   : > { %4216 = shalt.err (!%p4213_p2)
}
  0x7b   : > { %s4217_s30 = scalar_lea.vmem %s424_s23, 1024  ;;  %p4225_p4 = scmp.lt.s32.totalorder %s424_s23, %s424_s23 }
  0x7c   : > { %p4218_p5 = scmp.ne.s32.totalorder %s424_s23, %s4217_s30  ;;  %p4226_p10 = scmp.lt.s32.totalorder %s4217_s30, %s4217_s30 }
  0x7e   : > { %p4220_p7 = pnand %p4218_p5, %p4479_p8  ;;  %p4227_p11 = por %p4226_p10, %p4225_p4 }
  0x80   : > { %p4221_p9 = pneg %p4220_p7 }
  0x82   : > { %p4228_p12 = pnand %p4227_p11, %p4221_p9 }
  0x84   : > { %4231 = shalt.err (!%p4228_p12)
}
  0x85   : > { %3970 = dma.hbm_to_vmem [thread:$0]  (!%p4463_p6), %s6111_s11, 1024, %s424_s23, [#allocation13], %s6117_s22, %s6117_s22, %s4346_s13  }
  0x86   : > { %s3551_s18 = sadd.s32 4294967294, %s4340_s28   ;;  %s4599_s16 = sadd.s32 1, %s4340_s28  }
  0x87   : > { %s39_s1 = sadd.s32 1, %s4336_s27  ;;  %s36_s6 = ssub.s32 %s4340_s28, %s4599_s16 }
  0x88   : > { %p46_p8 = scmp.ne.s32.totalorder %s4336_s27, %s4332_s26  ;;  %p37_p1 = scmp.eq.s32.totalorder %s36_s6, 0 }
  0x89   : > { %p47_p3 = scmp.eq.s32.totalorder %s4340_s28, 0  ;;  %p52_p13 = scmp.ne.s32.totalorder %s4332_s26, %s4328_s25 }
  0x8a   : > { %p328_p0 = scmp.eq.s32.totalorder %s4447_s14, 1  ;;  %p6195_p5 = scmp.eq.s32.totalorder %s4447_s14, 0 }
  0x8b   : > { %s4611_s8 = scalar_select %p37_p1, %s4336_s27, %s39_s1  }
  0x8c   : > { %p48_p2 = por %p47_p3, %p46_p8  ;;  %p4615_p7 = por %p6195_p5, %p52_p13 }
  0x8d   : > { %p4619_p6 = por %p328_p0, %p46_p8  ;;  %p334_p9 = scmp.eq.s32.totalorder %s3551_s18, 1 }
  0x8e   : > { %p3984_p4 = scmp.lt.s32.totalorder %s4340_s28, 2  ;;  %s440_s24 = sand.u32 1, %s4336_s27  }
  0x8f   : > { %s6197_s23 = scalar_select %p4619_p6, 1, 0 }
  0x90   : > { %p4625_p10 = por %p334_p9, %p52_p13  ;;  %s3559_s19 = sshll.u32 %s440_s24, 7 }
  0x91   : > { %s3644_s21 = sshll.u32 %s4340_s28, 11  ;;  %s444_s20 = scalar_lea.vmem [#allocation3], %s3559_s19 }
  0x92   : > { %s6198_s29 = scalar_select %p4625_p10, 1, 0 }
  0x93   : > { %s4633_s10 = scalar_lea.hbm %s6100_s0, %s3644_s21  ;;  %s451_s1 = sshll.u32 %s444_s20, 4  ;;  %s4639_s1 = int_to_ptr.vmem [resolvable:$true] %s451_s1 }
  0x94   : > { %p4635_p11 = pnand %p3984_p4, %p48_p2  ;;  %s4641_s6 = scalar_lea.sflag [#allocation4], %s440_s24 }
  0x95   : > { %s4232_s22 = scalar_lea.hbm %s4633_s10, 2048  ;;  %s4237_s17 = scalar_lea.hbm %s6100_s0, 4096 }
  0x96   : > { %p4233_p12 = scmp.ne.s32.totalorder %s4633_s10, %s4232_s22  ;;  %p4234_p8 = pneg %p4635_p11 }
  0x97   : > { %p4238_p13 = scmp.lt.u32.totalorder %s4633_s10, %s6100_s0  ;;  %p4239_p0 = scmp.lt.u32.totalorder %s4237_s17, %s4232_s22 }
  0x98   : > { %p4235_p1 = pnand %p4234_p8, %p4233_p12  ;;  %p4241_p5 = scmp.lt.u32.totalorder %s4232_s22, %s4633_s10 }
  0x99   : > { %p4240_p2 = por %p4239_p0, %p4238_p13 }
  0x9a   : > { %p4236_p3 = pneg %p4235_p1 }
  0x9b   : > { %p4242_p9 = por %p4241_p5, %p4240_p2 }
  0x9d   : > { %p4243_p4 = pnand %p4242_p9, %p4236_p3 }
  0x9f   : > { %4246 = shalt.err (!%p4243_p4)
}
  0xa0   : > { %s4247_s24 = scalar_lea.vmem %s4639_s1, 2048  ;;  %s4349_s19 = smov [#allocation3]  }
  0xa1   : > { %p4248_p12 = scmp.ne.s32.totalorder %s4639_s1, %s4247_s24  ;;  %s4252_s21 = sshll.u32 %s4349_s19, 4  ;;  %s4253_s21 = int_to_ptr.vmem [resolvable:$false] %s4252_s21 }
  0xa2   : > { %s4254_s30 = scalar_lea.vmem %s4253_s21, 4096  ;;  %p4255_p6 = scmp.lt.s32.totalorder %s4639_s1, %s4253_s21 }
  0xa3   : > { %p4250_p1 = pnand %p4248_p12, %p4234_p8  ;;  %p4256_p13 = scmp.lt.s32.totalorder %s4254_s30, %s4247_s24 }
  0xa5   : > { %p4251_p10 = pneg %p4250_p1  ;;  %p4257_p0 = por %p4256_p13, %p4255_p6 }
  0xa7   : > { %p4258_p2 = pnand %p4257_p0, %p4251_p10 }
  0xa9   : > { %4261 = shalt.err (!%p4258_p2)
}
  0xaa   : > { %s6200_s22 = smov 64   ;;  %p6201_p8 = scmp.ne.s32.totalorder %s6191_s15, 0 }
  0xab   : > { %3974 = dma.hbm_to_vmem [thread:$0]  (!%p4635_p11), %s4633_s10, 2048, %s4639_s1, %s4641_s6, %s6200_s22, %s6200_s22, %s4346_s13  }
  0xac   : > { %463 = sbr.rel (%p6201_p8) target bundleno = 1609 (0x649), region = 72 }
  0xb3   : > { %s4675_s17 = sand.u32 1, %s4332_s26  }
  0xb4   : > { %s3563_s20 = sshll.u32 %s4675_s17, 7  ;;  %s466_s24 = scalar_lea.sflag [#allocation4], %s4675_s17 }
  0xb5   : > { %s4679_s19 = scalar_lea.vmem [#allocation3], %s3563_s20 }
  0xb6   : > { %4307 = dma.done.wait (%p4615_p7), %s466_s24, 2048  }
  0xb7   : > { %4309 = vsyncadd (%p4615_p7), %s466_s24, 4294965248  ;;  %p6202_p6 = scmp.eq.s32.totalorder %s4447_s14, 0 }
  0xb9   : > { %4311 = dma.done.wait (%p6202_p6), [#allocation7], 2048   ;;  %p6203_p10 = pmov %p6202_p6 }
  0xba   : > { %p6204_p11 = pmov %p6202_p6 }
  0xbb   : > { %4313 = vsyncadd (%p6203_p10), [#allocation7], 4294965248 }
  0xbc   : > { %4315 = dma.done.wait (%p6204_p11), [#allocation10], 2048   ;;  %p6205_p3 = pmov %p6202_p6 }
  0xbe   : > { %4317 = vsyncadd (%p6205_p3), [#allocation10], 4294965248  ;;  %p6206_p5 = pmov %p6205_p3 }
  0xbf   : > { %p6207_p9 = pmov %p6205_p3 }
  0xc0   : > { %4319 = dma.done.wait (%p6206_p5), [#allocation13], 1024  }
  0xc1   : > { %4321 = vsyncadd (%p6207_p9), [#allocation13], 4294966272  ;;  %v4350_v0 = vmov 0.0   ;;  %v4035_v1 = vld [vmem:[#allocation6] sm:$0xff]   ;;  %v4036_v2 = vld [vmem:[#allocation6 + $0x8] sm:$0xff]   ;;  %vm4351_vm0 = vmmov 0  }
  0xc2   : > { %1392 = vst [vmem:[#allocation2 + $0x1a0] sm:$0xff] %v4350_v0  ;;  %1387 = vst [vmem:[#allocation2] sm:$0xff] %v4350_v0  ;;  %3755 = vmatprep.subr.bf16.mxu0 %v4035_v1  ;;  %3915 = vmatprep.subr.bf16.mxu1 %v4035_v1  ;;  %v4037_v3 = vld [vmem:[#allocation6 + $0x10] sm:$0xff]   ;;  %v4038_v4 = vld [vmem:[#allocation6 + $0x18] sm:$0xff]   ;;  %s6209_s20 = sld [smem:[#allocation71_spill]]  ;;  %vm2578_vm1 = vcmask 1041409  }
  0xc3   : > { %1388 = vst [vmem:[#allocation2 + $0x8] sm:$0xff] %v4350_v0  ;;  %1389 = vst [vmem:[#allocation2 + $0x10] sm:$0x3] %v4350_v0  ;;  %3756 = vmatpush3.bf16.msra.mxu0 %v4035_v1  ;;  %3923 = vmatpush3.bf16.msra.mxu1 %v4035_v1  ;;  %v4043_v5 = vld [vmem:[%s4679_s19] sm:$0xff]   ;;  %v4040_v8 = vld [vmem:[#allocation6 + $0x28] sm:$0xff]   ;;  %vm2580_vm2 = vcmask 1042434  }
  0xc4   : > { %1395 = vst [vmem:[#allocation2 + $0x18] sm:$0x1] %v4350_v0  ;;  %1396 = vst [vmem:[#allocation2 + $0x30] sm:$0x1] %v4350_v0  ;;  %3757 = vmatprep.subr.bf16.mxu0 %v4036_v2  ;;  %3916 = vmatprep.subr.bf16.mxu1 %v4036_v2  ;;  %v4039_v6 = vld [vmem:[#allocation6 + $0x20] sm:$0xff]   ;;  %v4041_v9 = vld [vmem:[#allocation6 + $0x30] sm:$0xff]  }
  0xc5   : > { %1397 = vst [vmem:[#allocation2 + $0x48] sm:$0x1] %v4350_v0  ;;  %1398 = vst [vmem:[#allocation2 + $0x60] sm:$0x1] %v4350_v0  ;;  %3771 = vmatprep.mubr.bf16.mxu0 %v4043_v5  ;;  %v4049_v7 = vld [vmem:[%s4679_s19 + $0x40] sm:$0xff]   ;;  %v4042_v10 = vld [vmem:[#allocation6 + $0x38] sm:$0xff]  }
  0xc6   : > { %1399 = vst [vmem:[#allocation2 + $0x78] sm:$0x1] %v4350_v0  ;;  %1400 = vst [vmem:[#allocation2 + $0x90] sm:$0x1] %v4350_v0  ;;  %3787 = vmatprep.mubr.bf16.mxu1 %v4049_v7  ;;  %v4059_v11 = vld [vmem:[#allocation8] sm:$0xff]   ;;  %v4044_v12 = vld [vmem:[%s4679_s19 + $0x8] sm:$0xff]  }
  0xc7   : > { %1401 = vst [vmem:[#allocation2 + $0xa8] sm:$0x1] %v4350_v0  ;;  %1402 = vst [vmem:[#allocation2 + $0xc0] sm:$0x1] %v4350_v0  ;;  %3758 = vmatpush3.bf16.msra.mxu0 %v4036_v2  ;;  %3924 = vmatpush3.bf16.msra.mxu1 %v4036_v2  ;;  %v4050_v13 = vld [vmem:[%s4679_s19 + $0x48] sm:$0xff]   ;;  %v4045_v14 = vld [vmem:[%s4679_s19 + $0x10] sm:$0xff]  }
  0xc8   : > { %1403 = vst [vmem:[#allocation2 + $0xd8] sm:$0x1] %v4350_v0  ;;  %1404 = vst [vmem:[#allocation2 + $0xf0] sm:$0x1] %v4350_v0  ;;  %3759 = vmatprep.subr.bf16.mxu0 %v4037_v3  ;;  %3917 = vmatprep.subr.bf16.mxu1 %v4037_v3  ;;  %v4053_v15 = vld [vmem:[%s4679_s19 + $0x50] sm:$0xff]   ;;  %v4060_v16 = vld [vmem:[#allocation8 + $0x8] sm:$0xff]  }
  0xc9   : > { %1405 = vst [vmem:[#allocation2 + $0x108] sm:$0x1] %v4350_v0  ;;  %1406 = vst [vmem:[#allocation2 + $0x120] sm:$0x1] %v4350_v0  ;;  %v4061_v17 = vld [vmem:[#allocation8 + $0x10] sm:$0xff]   ;;  %v4046_v18 = vld [vmem:[%s4679_s19 + $0x18] sm:$0xff]  }
  0xca   : > { %1407 = vst [vmem:[#allocation2 + $0x138] sm:$0x1] %v4350_v0  ;;  %1408 = vst [vmem:[#allocation2 + $0x150] sm:$0x1] %v4350_v0  ;;  %v4054_v19 = vld [vmem:[%s4679_s19 + $0x58] sm:$0xff]   ;;  %v4047_v20 = vld [vmem:[%s4679_s19 + $0x20] sm:$0xff]  }
  0xcb   : > { %1409 = vst [vmem:[#allocation2 + $0x168] sm:$0x1] %v4350_v0  ;;  %1410 = vst [vmem:[#allocation2 + $0x180] sm:$0x1] %v4350_v0  ;;  %3760 = vmatpush3.bf16.msra.mxu0 %v4037_v3  ;;  %3925 = vmatpush3.bf16.msra.mxu1 %v4037_v3  ;;  %v4055_v21 = vld [vmem:[%s4679_s19 + $0x60] sm:$0xff]   ;;  %v4062_v22 = vld [vmem:[#allocation8 + $0x18] sm:$0xff]  }
  0xcc   : > { %1413 = vst [vmem:[#allocation2 + $0x29] sm:$0x1] %v4350_v0  ;;  %1414 = vst [vmem:[#allocation2 + $0x41] sm:$0x1] %v4350_v0  ;;  %3761 = vmatprep.subr.bf16.mxu0 %v4038_v4  ;;  %3918 = vmatprep.subr.bf16.mxu1 %v4038_v4  ;;  %v4048_v23 = vld [vmem:[%s4679_s19 + $0x28] sm:$0xff]   ;;  %v4051_v25 = vld [vmem:[%s4679_s19 + $0x30] sm:$0xff]  }
  0xcd   : > { %1415 = vst [vmem:[#allocation2 + $0x59] sm:$0x1] %v4350_v0  ;;  %1416 = vst [vmem:[#allocation2 + $0x71] sm:$0x1] %v4350_v0  ;;  %v4056_v24 = vld [vmem:[%s4679_s19 + $0x68] sm:$0xff]   ;;  %v4057_v26 = vld [vmem:[%s4679_s19 + $0x70] sm:$0xff]  }
  0xce   : > { %1417 = vst [vmem:[#allocation2 + $0x89] sm:$0x1] %v4350_v0  ;;  %1418 = vst [vmem:[#allocation2 + $0xa1] sm:$0x1] %v4350_v0  ;;  %v4052_v27 = vld [vmem:[%s4679_s19 + $0x38] sm:$0xff]   ;;  %v4063_v29 = vld [vmem:[#allocation8 + $0x20] sm:$0xff]  }
  0xcf   : > { %1419 = vst [vmem:[#allocation2 + $0xb9] sm:$0x1] %v4350_v0  ;;  %1420 = vst [vmem:[#allocation2 + $0xd1] sm:$0x1] %v4350_v0  ;;  %3762 = vmatpush3.bf16.msra.mxu0 %v4038_v4  ;;  %3926 = vmatpush3.bf16.msra.mxu1 %v4038_v4  ;;  %v4058_v28 = vld [vmem:[%s4679_s19 + $0x78] sm:$0xff]   ;;  %v4064_v30 = vld [vmem:[#allocation8 + $0x28] sm:$0xff]  }
  0xd0   : > { %1421 = vst [vmem:[#allocation2 + $0xe9] sm:$0x1] %v4350_v0  ;;  %1422 = vst [vmem:[#allocation2 + $0x101] sm:$0x1] %v4350_v0  ;;  %3763 = vmatprep.subr.bf16.mxu0 %v4039_v6  ;;  %3919 = vmatprep.subr.bf16.mxu1 %v4039_v6  ;;  %v4065_v31 = vld [vmem:[#allocation8 + $0x30] sm:$0xff]   ;;  %v4066_v32 = vld [vmem:[#allocation8 + $0x38] sm:$0xff]  }
  0xd1   : > { %1423 = vst [vmem:[#allocation2 + $0x119] sm:$0x1] %v4350_v0  ;;  %1424 = vst [vmem:[#allocation2 + $0x131] sm:$0x1] %v4350_v0  ;;  %v4756_v33 = vld [vmem:[%s6102_s2] ss:$0 sm:$0xff] }
  0xd2   : > { %1425 = vst [vmem:[#allocation2 + $0x149] sm:$0x1] %v4350_v0  ;;  %1426 = vst [vmem:[#allocation2 + $0x161] sm:$0x1] %v4350_v0  ;;  %vm2582_vm3 = vcmask 1043459   ;;  %vm2584_vm4 = vcmask 1044484  }
  0xd3   : > { %1427 = vst [vmem:[#allocation2 + $0x179] sm:$0x1] %v4350_v0  ;;  %1428 = vst [vmem:[#allocation2 + $0x191] sm:$0x1] %v4350_v0  ;;  %3764 = vmatpush3.bf16.msra.mxu0 %v4039_v6  ;;  %3927 = vmatpush3.bf16.msra.mxu1 %v4039_v6  ;;  %vm2586_vm5 = vcmask 1045509   ;;  %vm2588_vm6 = vcmask 1046534  }
  0xd4   : > { %1394 = vst [vmem:[#allocation2] sm:$0x1] %v4350_v0  ;;  %1412 = vst [vmem:[#allocation2 + $0x11] sm:$0x1] %v4350_v0  ;;  %3765 = vmatprep.subr.bf16.mxu0 %v4040_v8  ;;  %3920 = vmatprep.subr.bf16.mxu1 %v4040_v8  ;;  %vm2590_vm7 = vcmask 1047559   ;;  %s6289_s15 = sld [smem:[#allocation72_spill]] }
  0xd5   : > { %s6290_s10 = sld [smem:[#allocation73_spill]]  ;;  %s6334_s6 = sld [smem:[#allocation74_spill]] }
  0xd6   : > { %s3569_s21 = sshll.u32 %s4675_s17, 5  ;;  %p6336_p4 = scmp.ne.s32.totalorder %s6197_s23, 0 }
  0xd7   : > { %3766 = vmatpush3.bf16.msra.mxu0 %v4040_v8  ;;  %3928 = vmatpush3.bf16.msra.mxu1 %v4040_v8  ;;  %s531_s30 = scalar_lea.vmem [#allocation14], %s3569_s21 }
  0xd8   : > { %3767 = vmatprep.subr.bf16.mxu0 %v4041_v9  ;;  %3921 = vmatprep.subr.bf16.mxu1 %v4041_v9  ;;  %s3430_s22 = sshll.u32 %s531_s30, 4  ;;  %s6051_s22 = int_to_ptr.vmem [resolvable:$true] %s3430_s22 }
  0xd9   : > { %s4262_s12 = scalar_lea.vmem %s6051_s22, 512 }
  0xda   : > { %p4263_p7 = scmp.ne.s32.totalorder %s6051_s22, %s4262_s12 }
  0xdb   : > { %3768 = vmatpush3.bf16.msra.mxu0 %v4041_v9  ;;  %3929 = vmatpush3.bf16.msra.mxu1 %v4041_v9 }
  0xdc   : > { %3769 = vmatprep.subr.bf16.mxu0 %v4042_v10  ;;  %3922 = vmatprep.subr.bf16.mxu1 %v4042_v10  ;;  %p4264_p12 = pnand %p4263_p7, %p6336_p4 }
  0xde   : > { %p4265_p1 = pneg %p4264_p12 }
  0xdf   : > { %3770 = vmatpush3.bf16.msra.mxu0 %v4042_v10  ;;  %3930 = vmatpush3.bf16.msra.mxu1 %v4042_v10 }
  0xe0   : > { %3803 = vmatprep.subr.bf16.mxu1 %v4059_v11  ;;  %3851 = vmatprep.subr.bf16.mxu0 %v4350_v0 }
  0xe2   : > { %3772 = vmatmul.mubr.bf16.vlgmr.msra.gmra.mrb[0].mxu0 %v4044_v12  ;;  %3788 = vmatmul.mubr.bf16.vlgmr.msra.gmra.mrb[0].mxu1 %v4050_v13 }
  0xe3   : > { %3775 = vmatprep.mubr.bf16.mxu0 %v4045_v14  ;;  %3791 = vmatprep.mubr.bf16.mxu1 %v4053_v15 }
  0xe4   : > { %3804 = vmatpush3.bf16.msra.mxu1 %v4059_v11 }
  0xe5   : > { %3805 = vmatprep.subr.bf16.mxu1 %v4060_v16 }
  0xe8   : > { %3806 = vmatpush3.bf16.msra.mxu1 %v4060_v16 }
  0xe9   : > { %3807 = vmatprep.subr.bf16.mxu1 %v4061_v17 }
  0xea   : > { %3776 = vmatmul.mubr.bf16.gmra.mrb[4].mxu0 %v4046_v18  ;;  %3792 = vmatmul.mubr.bf16.gmra.mrb[4].mxu1 %v4054_v19 }
  0xeb   : > { %3779 = vmatprep.mubr.bf16.mxu0 %v4047_v20  ;;  %3795 = vmatprep.mubr.bf16.mxu1 %v4055_v21 }
  0xec   : > { %3808 = vmatpush3.bf16.msra.mxu1 %v4061_v17 }
  0xed   : > { %3809 = vmatprep.subr.bf16.mxu1 %v4062_v22 }
  0xf0   : > { %3810 = vmatpush3.bf16.msra.mxu1 %v4062_v22 }
  0xf1   : > { %3811 = vmatprep.subr.bf16.mxu1 %v4063_v29 }
  0xf2   : > { %3780 = vmatmul.mubr.bf16.gmra.mrb[8].mxu0 %v4048_v23  ;;  %3796 = vmatmul.mubr.bf16.gmra.mrb[8].mxu1 %v4056_v24 }
  0xf3   : > { %3783 = vmatprep.mubr.bf16.mxu0 %v4051_v25  ;;  %3799 = vmatprep.mubr.bf16.mxu1 %v4057_v26 }
  0xf4   : > { %3812 = vmatpush3.bf16.msra.mxu1 %v4063_v29 }
  0xf5   : > { %3813 = vmatprep.subr.bf16.mxu1 %v4064_v30 }
  0xf8   : > { %3814 = vmatpush3.bf16.msra.mxu1 %v4064_v30 }
  0xf9   : > { %3815 = vmatprep.subr.bf16.mxu1 %v4065_v31 }
  0xfa   : > { %3784 = vmatmul.mubr.bf16.gmra.mrb[12].mxu0 %v4052_v27  ;;  %3800 = vmatmul.mubr.bf16.gmra.mrb[12].mxu1 %v4058_v28 }
  0xfb   : > { %3867 = vmatprep.mubr.msk.bf16.mxu0 %vm4351_vm0, %v4350_v0 }
  0xfc   : > { %3816 = vmatpush3.bf16.msra.mxu1 %v4065_v31 }
  0xfd   : > { %3817 = vmatprep.subr.bf16.mxu1 %v4066_v32 }
 0x100   : > { %3818 = vmatpush3.bf16.msra.mxu1 %v4066_v32 }
 0x101   : > { %3871 = vmatprep.subr.bf16.mxu1 %v4350_v0 }
 0x1b5   : > { %v3773_v34 = vpop.f32.mrb[0].mxu0  ;;  %v3789_v35 = vpop.f32.mrb[0].mxu1 }
 0x1b6   : > { %v775_v36 = vadd.f32 %v3773_v34, %v4756_v33  ;;  %v766_v37 = vpop.f32.mrb[1].mxu0  ;;  %v839_v38 = vadd.f32 %v3789_v35, %v4756_v33  ;;  %v830_v39 = vpop.f32.mrb[1].mxu1 }
 0x1b7   : > { %v767_v40 = vadd.f32 %v4756_v33, %v766_v37  ;;  %v3774_v41 = vpop.f32.mrb[2].mxu0  ;;  %v831_v42 = vadd.f32 %v4756_v33, %v830_v39  ;;  %v3790_v43 = vpop.f32.mrb[2].mxu1 }
 0x1b8   : > { %v895_v44 = vadd.f32 3.0, %v775_v36  ;;  %v778_v45 = vadd.f32 %v3774_v41, %v4756_v33  ;;  %v769_v46 = vpop.f32.mrb[3].mxu0  ;;  %v911_v47 = vadd.f32 3.0, %v839_v38  ;;  %v4764_v48 = vadd.f32 %v3790_v43, %v4756_v33  ;;  %v833_v49 = vpop.f32.mrb[3].mxu1 }
 0x1b9   : > { %v893_v50 = vadd.f32 3.0, %v767_v40  ;;  %v770_v51 = vadd.f32 %v4756_v33, %v769_v46  ;;  %v909_v52 = vadd.f32 3.0, %v831_v42  ;;  %v4768_v53 = vadd.f32 %v4756_v33, %v833_v49 }
 0x1ba   : > { %v927_v54 = vmax.f32 %v895_v44, 0.0  ;;  %v896_v55 = vadd.f32 3.0, %v778_v45  ;;  %v943_v56 = vmax.f32 %v911_v47, 0.0  ;;  %v912_v57 = vadd.f32 3.0, %v4764_v48 }
 0x1bb   : > { %v925_v58 = vmax.f32 %v893_v50, 0.0  ;;  %v894_v59 = vadd.f32 3.0, %v770_v51  ;;  %v941_v60 = vmax.f32 %v909_v52, 0.0  ;;  %v910_v61 = vadd.f32 3.0, %v4768_v53 }
 0x1bc   : > { %v959_v62 = vmin.f32 %v927_v54, 6.0  ;;  %v928_v63 = vmax.f32 %v896_v55, 0.0  ;;  %v975_v1 = vmin.f32 %v943_v56, 6.0  ;;  %v944_v2 = vmax.f32 %v912_v57, 0.0 }
 0x1bd   : > { %v957_v3 = vmin.f32 %v925_v58, 6.0  ;;  %v926_v4 = vmax.f32 %v894_v59, 0.0  ;;  %v3777_v5 = vpop.f32.mrb[4].mxu0  ;;  %v973_v6 = vmin.f32 %v941_v60, 6.0  ;;  %v942_v7 = vmax.f32 %v910_v61, 0.0  ;;  %v4772_v8 = vpop.f32.mrb[4].mxu1 }
 0x1be   : > { %v991_v9 = vmul.f32 0.16666667, %v959_v62  ;;  %v960_v10 = vmin.f32 %v928_v63, 6.0  ;;  %v791_v11 = vadd.f32 %v3777_v5, %v4756_v33  ;;  %v782_v12 = vpop.f32.mrb[5].mxu0  ;;  %v1007_v13 = vmul.f32 0.16666667, %v975_v1 }
 0x1bf   : > { %v989_v14 = vmul.f32 0.16666667, %v957_v3  ;;  %v958_v15 = vmin.f32 %v926_v4, 6.0  ;;  %v783_v16 = vadd.f32 %v4756_v33, %v782_v12  ;;  %v3778_v17 = vpop.f32.mrb[6].mxu0  ;;  %v1005_v18 = vmul.f32 0.16666667, %v973_v6 }
 0x1c0   : > { %v1023_v19 = vmul.f32 %v991_v9, %v775_v36  ;;  %v992_v20 = vmul.f32 0.16666667, %v960_v10  ;;  %v899_v21 = vadd.f32 3.0, %v791_v11  ;;  %v794_v22 = vadd.f32 %v3778_v17, %v4756_v33  ;;  %v785_v23 = vpop.f32.mrb[7].mxu0  ;;  %v4777_v24 = vpop.f32.mrb[5].mxu1 }
 0x1c1   : > { %v1021_v25 = vmul.f32 %v989_v14, %v767_v40  ;;  %v990_v26 = vmul.f32 0.16666667, %v958_v15  ;;  %v897_v27 = vadd.f32 3.0, %v783_v16  ;;  %v786_v28 = vadd.f32 %v4756_v33, %v785_v23  ;;  %v4780_v29 = vpop.f32.mrb[6].mxu1 }
 0x1c2   : > { %v1024_v30 = vmul.f32 %v992_v20, %v778_v45  ;;  %v931_v31 = vmax.f32 %v899_v21, 0.0  ;;  %v900_v32 = vadd.f32 3.0, %v794_v22  ;;  %v4782_v34 = vmul.f32 %v1007_v13, %v839_v38  ;;  %v4784_v35 = vpop.f32.mrb[7].mxu1 }
 0x1c3   : > { %v1022_v36 = vmul.f32 %v990_v26, %v770_v51  ;;  %v929_v37 = vmax.f32 %v897_v27, 0.0  ;;  %v898_v39 = vadd.f32 3.0, %v786_v28  ;;  %v4786_v41 = vmul.f32 %v1005_v18, %v831_v42 }
 0x1c4   : > { %v1054_v43 = vpack.c.bf16 %v1024_v30, %v1023_v19  ;;  %v963_v40 = vmin.f32 %v931_v31, 6.0  ;;  %v932_v44 = vmax.f32 %v900_v32, 0.0  ;;  %v976_v46 = vmin.f32 %v944_v2, 6.0 }
 0x1c5   : > { %v961_v47 = vmin.f32 %v929_v37, 6.0  ;;  %v930_v49 = vmax.f32 %v898_v39, 0.0  ;;  %v3781_v50 = vpop.f32.mrb[8].mxu0  ;;  %v1053_v52 = vpack.c.bf16 %v1022_v36, %v1021_v25  ;;  %v974_v45 = vmin.f32 %v942_v7, 6.0  ;;  %v4788_v54 = vpop.f32.mrb[8].mxu1 }
 0x1c6   : > { %v995_v38 = vmul.f32 0.16666667, %v963_v40  ;;  %v964_v55 = vmin.f32 %v932_v44, 6.0  ;;  %v807_v56 = vadd.f32 %v3781_v50, %v4756_v33  ;;  %v798_v51 = vpop.f32.mrb[9].mxu0  ;;  %v1008_v57 = vmul.f32 0.16666667, %v976_v46 }
 0x1c7   : > { %v993_v58 = vmul.f32 0.16666667, %v961_v47  ;;  %v962_v42 = vmin.f32 %v930_v49, 6.0  ;;  %v799_v59 = vadd.f32 %v4756_v33, %v798_v51  ;;  %v3782_v60 = vpop.f32.mrb[10].mxu0  ;;  %3819 = vmatprep.mubr.bf16.mxu1 %v1053_v52  ;;  %v1006_v61 = vmul.f32 0.16666667, %v974_v45 }
 0x1c8   : > { %v1027_v62 = vmul.f32 %v995_v38, %v791_v11  ;;  %v996_v63 = vmul.f32 0.16666667, %v964_v55  ;;  %v903_v1 = vadd.f32 3.0, %v807_v56  ;;  %v810_v2 = vadd.f32 %v3782_v60, %v4756_v33  ;;  %v801_v3 = vpop.f32.mrb[11].mxu0  ;;  %3820 = vmatmul.mubr.bf16.vlgmr.msra.gmra.mrb[16].mxu1 %v1054_v43  ;;  %v4793_v4 = vpop.f32.mrb[9].mxu1 }
 0x1c9   : > { %v1025_v5 = vmul.f32 %v993_v58, %v783_v16  ;;  %v994_v6 = vmul.f32 0.16666667, %v962_v42  ;;  %v901_v7 = vadd.f32 3.0, %v799_v59  ;;  %v802_v9 = vadd.f32 %v4756_v33, %v801_v3  ;;  %v4796_v10 = vpop.f32.mrb[10].mxu1 }
 0x1ca   : > { %v1028_v12 = vmul.f32 %v996_v63, %v794_v22  ;;  %v935_v13 = vmax.f32 %v903_v1, 0.0  ;;  %v904_v14 = vadd.f32 3.0, %v810_v2  ;;  %v4799_v11 = vmul.f32 %v1008_v57, %v4764_v48  ;;  %v4801_v15 = vpop.f32.mrb[11].mxu1 }
 0x1cb   : > { %v1026_v17 = vmul.f32 %v994_v6, %v786_v28  ;;  %v933_v18 = vmax.f32 %v901_v7, 0.0  ;;  %v902_v19 = vadd.f32 3.0, %v802_v9  ;;  %v4804_v20 = vmul.f32 %v1006_v61, %v4768_v53 }
 0x1cc   : > { %v967_v16 = vmin.f32 %v935_v13, 6.0  ;;  %v936_v21 = vmax.f32 %v904_v14, 0.0  ;;  %v1056_v23 = vpack.c.bf16 %v1028_v12, %v1027_v62  ;;  %v855_v25 = vadd.f32 %v4772_v8, %v4756_v33 }
 0x1cd   : > { %v965_v22 = vmin.f32 %v933_v18, 6.0  ;;  %v934_v26 = vmax.f32 %v902_v19, 0.0  ;;  %v3785_v27 = vpop.f32.mrb[12].mxu0  ;;  %v1055_v30 = vpack.c.bf16 %v1026_v17, %v1025_v5  ;;  %v847_v48 = vadd.f32 %v4756_v33, %v4777_v24  ;;  %v4810_v31 = vpop.f32.mrb[12].mxu1 }
 0x1ce   : > { %v999_v28 = vmul.f32 0.16666667, %v967_v16  ;;  %v968_v32 = vmin.f32 %v936_v21, 6.0  ;;  %v823_v53 = vadd.f32 %v3785_v27, %v4756_v33  ;;  %v814_v36 = vpop.f32.mrb[13].mxu0  ;;  %v915_v37 = vadd.f32 3.0, %v855_v25  ;;  %v4813_v39 = vpop.f32.mrb[13].mxu1 }
 0x1cf   : > { %v997_v43 = vmul.f32 0.16666667, %v965_v22  ;;  %v966_v40 = vmin.f32 %v934_v26, 6.0  ;;  %v815_v8 = vadd.f32 %v4756_v33, %v814_v36  ;;  %v3786_v44 = vpop.f32.mrb[14].mxu0  ;;  %3823 = vmatprep.mubr.bf16.mxu1 %v1055_v30  ;;  %v913_v46 = vadd.f32 3.0, %v847_v48  ;;  %v4816_v47 = vpop.f32.mrb[14].mxu1 }
 0x1d0   : > { %v1031_v24 = vmul.f32 %v999_v28, %v807_v56  ;;  %v1000_v49 = vmul.f32 0.16666667, %v968_v32  ;;  %v907_v50 = vadd.f32 3.0, %v823_v53  ;;  %v826_v52 = vadd.f32 %v3786_v44, %v4756_v33  ;;  %v817_v45 = vpop.f32.mrb[15].mxu0  ;;  %3824 = vmatmul.mubr.bf16.gmra.mrb[20].mxu1 %v1056_v23  ;;  %v4819_v38 = vpop.f32.mrb[15].mxu1 }
 0x1d1   : > { %v1029_v55 = vmul.f32 %v997_v43, %v799_v59  ;;  %v998_v51 = vmul.f32 0.16666667, %v966_v40  ;;  %v905_v57 = vadd.f32 3.0, %v815_v8  ;;  %v818_v58 = vadd.f32 %v4756_v33, %v817_v45 }
 0x1d2   : > { %v1032_v42 = vmul.f32 %v1000_v49, %v810_v2  ;;  %v939_v60 = vmax.f32 %v907_v50, 0.0  ;;  %v908_v61 = vadd.f32 3.0, %v826_v52  ;;  %v947_v62 = vmax.f32 %v915_v37, 0.0 }
 0x1d3   : > { %v1030_v63 = vmul.f32 %v998_v51, %v802_v9  ;;  %v937_v1 = vmax.f32 %v905_v57, 0.0  ;;  %v906_v56 = vadd.f32 3.0, %v818_v58  ;;  %v945_v3 = vmax.f32 %v913_v46, 0.0 }
 0x1d4   : > { %v971_v5 = vmin.f32 %v939_v60, 6.0  ;;  %v940_v6 = vmax.f32 %v908_v61, 0.0  ;;  %v979_v7 = vmin.f32 %v947_v62, 6.0  ;;  %v858_v12 = vadd.f32 %v4780_v29, %v4756_v33 }
 0x1d5   : > { %v969_v13 = vmin.f32 %v937_v1, 6.0  ;;  %v938_v59 = vmax.f32 %v906_v56, 0.0  ;;  %v977_v14 = vmin.f32 %v945_v3, 6.0  ;;  %v850_v17 = vadd.f32 %v4756_v33, %v4784_v35 }
 0x1d6   : > { %v1003_v2 = vmul.f32 0.16666667, %v971_v5  ;;  %v972_v18 = vmin.f32 %v940_v6, 6.0  ;;  %v1011_v19 = vmul.f32 0.16666667, %v979_v7  ;;  %v916_v16 = vadd.f32 3.0, %v858_v12 }
 0x1d7   : > { %v1001_v9 = vmul.f32 0.16666667, %v969_v13  ;;  %v970_v21 = vmin.f32 %v938_v59, 6.0  ;;  %v1009_v23 = vmul.f32 0.16666667, %v977_v14  ;;  %v914_v22 = vadd.f32 3.0, %v850_v17 }
 0x1d8   : > { %v1035_v26 = vmul.f32 %v1003_v2, %v823_v53  ;;  %v1004_v27 = vmul.f32 0.16666667, %v972_v18  ;;  %v4826_v30 = vmul.f32 %v1011_v19, %v855_v25  ;;  %v948_v28 = vmax.f32 %v916_v16, 0.0 }
 0x1d9   : > { %v1033_v29 = vmul.f32 %v1001_v9, %v815_v8  ;;  %v1002_v32 = vmul.f32 0.16666667, %v970_v21  ;;  %v4828_v36 = vmul.f32 %v1009_v23, %v847_v48  ;;  %v946_v37 = vmax.f32 %v914_v22, 0.0 }
 0x1da   : > { %v1036_v43 = vmul.f32 %v1004_v27, %v826_v52  ;;  %v980_v35 = vmin.f32 %v948_v28, 6.0  ;;  %v1057_v40 = vpack.c.bf16 %v1030_v63, %v1029_v55  ;;  %v1058_v44 = vpack.c.bf16 %v1032_v42, %v1031_v24 }
 0x1db   : > { %v1034_v46 = vmul.f32 %v1002_v32, %v818_v58  ;;  %v978_v49 = vmin.f32 %v946_v37, 6.0  ;;  %v871_v50 = vadd.f32 %v4788_v54, %v4756_v33  ;;  %v863_v53 = vadd.f32 %v4756_v33, %v4793_v4 }
 0x1dc   : > { %v1012_v25 = vmul.f32 0.16666667, %v980_v35  ;;  %3827 = vmatprep.mubr.bf16.mxu1 %v1057_v40  ;;  %v874_v8 = vadd.f32 %v4796_v10, %v4756_v33  ;;  %v866_v48 = vadd.f32 %v4756_v33, %v4801_v15  ;;  %v1060_v52 = vpack.c.bf16 %v1036_v43, %v1035_v26 }
 0x1dd   : > { %v1010_v45 = vmul.f32 0.16666667, %v978_v49  ;;  %3828 = vmatmul.mubr.bf16.gmra.mrb[24].mxu1 %v1058_v44  ;;  %v919_v24 = vadd.f32 3.0, %v871_v50  ;;  %v917_v55 = vadd.f32 3.0, %v863_v53  ;;  %v1059_v51 = vpack.c.bf16 %v1034_v46, %v1033_v29 }
 0x1de   : > { %v1044_v57 = vmul.f32 %v1012_v25, %v858_v12  ;;  %v920_v58 = vadd.f32 3.0, %v874_v8  ;;  %v918_v54 = vadd.f32 3.0, %v866_v48  ;;  %v1061_v4 = vpack.c.bf16 %v4804_v20, %v4786_v41 }
 0x1df   : > { %v1042_v42 = vmul.f32 %v1010_v45, %v850_v17  ;;  %v951_v60 = vmax.f32 %v919_v24, 0.0  ;;  %v949_v61 = vmax.f32 %v917_v55, 0.0  ;;  %3831 = vmatprep.mubr.bf16.mxu1 %v1059_v51  ;;  %v887_v10 = vadd.f32 %v4810_v31, %v4756_v33  ;;  %v4072_v45 = vld [vmem:[#allocation9 + $0x28] sm:$0xff]   ;;  %v4869_v55 = vld [vmem:[%s6104_s4] ss:$0 sm:$0xff] }
 0x1e0   : > { %v952_v15 = vmax.f32 %v920_v58, 0.0  ;;  %v950_v62 = vmax.f32 %v918_v54, 0.0  ;;  %v879_v63 = vadd.f32 %v4756_v33, %v4813_v39  ;;  %v890_v1 = vadd.f32 %v4816_v47, %v4756_v33  ;;  %v4875_v58 = vld [vmem:[%s6105_s5] sm:$0xff] }
 0x1e1   : > { %v983_v56 = vmin.f32 %v951_v60, 6.0  ;;  %v981_v3 = vmin.f32 %v949_v61, 6.0  ;;  %v923_v5 = vadd.f32 3.0, %v887_v10  ;;  %v882_v41 = vadd.f32 %v4756_v33, %v4819_v38 }
 0x1e2   : > { %v984_v20 = vmin.f32 %v952_v15, 6.0  ;;  %v982_v6 = vmin.f32 %v950_v62, 6.0  ;;  %v921_v7 = vadd.f32 3.0, %v879_v63  ;;  %v924_v12 = vadd.f32 3.0, %v890_v1  ;;  %v1515_v15 = vld [vmem:[#allocation2 + $0x1] sm:$0xff] }
 0x1e3   : > { %v1015_v13 = vmul.f32 0.16666667, %v983_v56  ;;  %v1013_v31 = vmul.f32 0.16666667, %v981_v3  ;;  %v955_v59 = vmax.f32 %v923_v5, 0.0  ;;  %v922_v14 = vadd.f32 3.0, %v882_v41 }
 0x1e4   : > { %v1016_v17 = vmul.f32 0.16666667, %v984_v20  ;;  %v1014_v2 = vmul.f32 0.16666667, %v982_v6  ;;  %v953_v39 = vmax.f32 %v921_v7, 0.0  ;;  %v956_v18 = vmax.f32 %v924_v12, 0.0 }
 0x1e5   : > { %v1047_v19 = vmul.f32 %v1015_v13, %v871_v50  ;;  %v1045_v47 = vmul.f32 %v1013_v31, %v863_v53  ;;  %3832 = vmatmul.mubr.bf16.gmra.mrb[28].mxu1 %v1060_v52  ;;  %v987_v16 = vmin.f32 %v955_v59, 6.0  ;;  %v954_v9 = vmax.f32 %v922_v14, 0.0  ;;  %v4071_v52 = vld [vmem:[#allocation9 + $0x20] sm:$0xff]   ;;  %v4074_v56 = vld [vmem:[#allocation9 + $0x38] sm:$0xff]  }
 0x1e6   : > { %v1048_v21 = vmul.f32 %v1016_v17, %v874_v8  ;;  %v1046_v23 = vmul.f32 %v1014_v2, %v866_v48  ;;  %3835 = vmatprep.mubr.bf16.mxu1 %v1061_v4  ;;  %v985_v33 = vmin.f32 %v953_v39, 6.0  ;;  %v988_v38 = vmin.f32 %v956_v18, 6.0  ;;  %v4070_v8 = vld [vmem:[#allocation9 + $0x18] sm:$0xff]  }
 0x1e7   : > { %v1019_v22 = vmul.f32 0.16666667, %v987_v16  ;;  %v986_v26 = vmin.f32 %v954_v9, 6.0  ;;  %v1062_v27 = vpack.c.bf16 %v4799_v11, %v4782_v34  ;;  %v1063_v28 = vpack.c.bf16 %v1042_v42, %v4828_v36  ;;  %v4067_v34 = vld [vmem:[#allocation9] sm:$0xff]   ;;  %v4068_v11 = vld [vmem:[#allocation9 + $0x8] sm:$0xff]   ;;  %v4069_v36 = vld [vmem:[#allocation9 + $0x10] sm:$0xff]  }
 0x1e8   : > { %v1017_v29 = vmul.f32 0.16666667, %v985_v33  ;;  %v1020_v32 = vmul.f32 0.16666667, %v988_v38  ;;  %v1064_v37 = vpack.c.bf16 %v1044_v57, %v4826_v30  ;;  %v1065_v43 = vpack.c.bf16 %v1046_v23, %v1045_v47  ;;  %3852 = vmatpush3.bf16.msra.mxu0 %v4067_v34  ;;  %v4854_v30 = vld [vmem:[#allocation2 + $0x1a0] sm:$0xff]  ;;  %v1516_v31 = vld [vmem:[#allocation2 + $0x9] sm:$0xff] }
 0x1e9   : > { %v1051_v35 = vmul.f32 %v1019_v22, %v887_v10  ;;  %v1018_v40 = vmul.f32 0.16666667, %v986_v26  ;;  %v1066_v44 = vpack.c.bf16 %v1048_v21, %v1047_v19  ;;  %3853 = vmatprep.subr.bf16.mxu0 %v4854_v30  ;;  %v1479_v48 = vlaneseq  ;;  %v4073_v57 = vld [vmem:[#allocation9 + $0x30] sm:$0xff]   ;;  %v1568_v9 = vld [vmem:[#allocation2 + $0xa] sm:$0xff] }
 0x1ea   : > { %v1049_v46 = vmul.f32 %v1017_v29, %v879_v63  ;;  %v1052_v49 = vmul.f32 %v1020_v32, %v890_v1  ;;  %v1463_v10 = vld [vmem:[#allocation2] sm:$0xff] }
 0x1eb   : > { %v1050_v50 = vmul.f32 %v1018_v40, %v882_v41  ;;  %v1567_v59 = vld [vmem:[#allocation2 + $0x2] sm:$0xff] }
 0x1ec   : > { %v1068_v53 = vpack.c.bf16 %v1052_v49, %v1051_v35  ;;  %3854 = vmatpush3.bf16.msra.mxu0 %v4068_v11 }
 0x1ed   : > { %3836 = vmatmul.mubr.bf16.gmra.mrb[32].mxu1 %v1062_v27  ;;  %v1067_v25 = vpack.c.bf16 %v1050_v50, %v1049_v46  ;;  %3855 = vmatprep.subr.bf16.mxu0 %v4854_v30 }
 0x1ee   : > { %3839 = vmatprep.mubr.bf16.mxu1 %v1063_v28 }
 0x1f0   : > { %3856 = vmatpush3.bf16.msra.mxu0 %v4069_v36 }
 0x1f1   : > { %3857 = vmatprep.subr.bf16.mxu0 %v4854_v30 }
 0x1f4   : > { %3858 = vmatpush3.bf16.msra.mxu0 %v4070_v8 }
 0x1f5   : > { %3840 = vmatmul.mubr.bf16.gmra.mrb[36].mxu1 %v1064_v37  ;;  %3859 = vmatprep.subr.bf16.mxu0 %v4854_v30 }
 0x1f6   : > { %3843 = vmatprep.mubr.bf16.mxu1 %v1065_v43 }
 0x1f8   : > { %3860 = vmatpush3.bf16.msra.mxu0 %v4071_v52 }
 0x1f9   : > { %3861 = vmatprep.subr.bf16.mxu0 %v4854_v30 }
 0x1fc   : > { %3862 = vmatpush3.bf16.msra.mxu0 %v4072_v45 }
 0x1fd   : > { %3844 = vmatmul.mubr.bf16.gmra.mrb[40].mxu1 %v1066_v44  ;;  %3863 = vmatprep.subr.bf16.mxu0 %v4854_v30 }
 0x1fe   : > { %3847 = vmatprep.mubr.bf16.mxu1 %v1067_v25 }
 0x200   : > { %3864 = vmatpush3.bf16.msra.mxu0 %v4073_v57 }
 0x201   : > { %3865 = vmatprep.subr.bf16.mxu0 %v4854_v30 }
 0x204   : > { %3866 = vmatpush3.bf16.msra.mxu0 %v4074_v56 }
 0x205   : > { %3848 = vmatmul.mubr.bf16.gmra.mrb[44].mxu1 %v1068_v53 }
 0x206   : > { %3887 = vmatprep.mubr.msk.bf16.mxu1 %vm4351_vm0, %v4350_v0  ;;  %v4860_v0 = vshrl.u32 %v1479_v48, 7 }
 0x208   : > { %v4864_v24 = vsub.s32 0, %v4860_v0  ;;  %v1533_v51 = vsub.s32 1, %v4860_v0  ;;  %v1585_v54 = vsub.s32 2, %v4860_v0  ;;  %v1637_v17 = vsub.s32 3, %v4860_v0 }
 0x209   : > { %v1689_v16 = vsub.s32 4, %v4860_v0  ;;  %v1741_v23 = vsub.s32 5, %v4860_v0  ;;  %v1794_v22 = vsub.s32 6, %v4860_v0  ;;  %v1846_v53 = vsub.s32 7, %v4860_v0 }
 0x20a   : > { %6208 = vst [vmem:[#allocation20_spill] sm:$0xff] %v4864_v24  ;;  %v4881_v42 = vrot.slane %v4875_v58, %v4864_v24  ;;  %v4885_v62 = vrot.slane %v4875_v58, %v1533_v51  ;;  %v4893_v5 = vrot.slane %v4875_v58, %v1585_v54  ;;  %v4918_v26 = vrot.slane %v4875_v58, %v1637_v17 }
 0x20b   : > { %v4926_v46 = vrot.slane %v4875_v58, %v1689_v16  ;;  %v4933_v34 = vrot.slane %v4875_v58, %v1741_v23 }
 0x20c   : > { %v1483_v7 = vmul.f32 %v4881_v42, %v1463_v10  ;;  %v1535_v12 = vmul.f32 %v4885_v62, %v1515_v15  ;;  %v1484_v39 = vmul.f32 %v4854_v30, %v4881_v42  ;;  %v1536_v18 = vmul.f32 %v4885_v62, %v1516_v31 }
 0x20d   : > { %v1587_v47 = vmul.f32 %v4893_v5, %v1567_v59  ;;  %v1588_v32 = vmul.f32 %v4893_v5, %v1568_v9  ;;  %v4951_v15 = vrot.slane %v4875_v58, %v1846_v53 }
 0x20e   : > { %v1551_v19 = vadd.f32 %v1535_v12, %v1483_v7  ;;  %v1552_v29 = vadd.f32 %v1536_v18, %v1484_v39 }
 0x210   : > { %v1603_v44 = vadd.f32 %v1587_v47, %v1551_v19  ;;  %v1604_v45 = vadd.f32 %v1588_v32, %v1552_v29  ;;  %v4352_v19 = vmov 1983009808  }
 0x211   : > { %v4967_v47 = vunpack.c.l.s4 %v4352_v19 }
 0x29b   : > { %v3821_v4 = vpop.f32.mrb[16].mxu1 }
 0x29c   : > { %v1237_v60 = vadd.f32 %v3821_v4, %v4869_v55  ;;  %v1228_v61 = vpop.f32.mrb[17].mxu1  ;;  %v4944_v4 = vrot.slane %v4875_v58, %v1794_v22  ;;  %v4962_v58 = vld [vmem:[%s6105_s5 + $0x8] ss:$0 sm:$0xff] }
 0x29d   : > { %v4888_v63 = vadd.f32 %v4869_v55, %v1228_v61  ;;  %v3822_v1 = vpop.f32.mrb[18].mxu1 }
 0x29e   : > { %v4890_v3 = vmax.f32 %v1237_v60, 0.0  ;;  %v1240_v41 = vadd.f32 %v3822_v1, %v4869_v55  ;;  %v1231_v20 = vpop.f32.mrb[19].mxu1 }
 0x29f   : > { %v1355_v6 = vmax.f32 %v4888_v63, 0.0  ;;  %v4901_v13 = vadd.f32 %v4869_v55, %v1231_v20 }
 0x2a0   : > { %1433 = vst [vmem:[#allocation2 + $0x31] sm:$0xff] %v4890_v3  ;;  %v4904_v14 = vmax.f32 %v1240_v41, 0.0  ;;  %v1537_v54 = vmul.f32 %v4885_v62, %v4890_v3 }
 0x2a1   : > { %1431 = vst [vmem:[#allocation2 + $0x19] sm:$0xff] %v1355_v6  ;;  %v1356_v2 = vmax.f32 %v4901_v13, 0.0  ;;  %v1691_v61 = vmul.f32 %v4926_v46, %v1355_v6 }
 0x2a2   : > { %1434 = vst [vmem:[#allocation2 + $0x39] sm:$0xff] %v4904_v14  ;;  %v1538_v17 = vmul.f32 %v4885_v62, %v4904_v14 }
 0x2a3   : > { %1432 = vst [vmem:[#allocation2 + $0x21] sm:$0xff] %v1356_v2  ;;  %v3825_v21 = vpop.f32.mrb[20].mxu1  ;;  %v1692_v13 = vmul.f32 %v4926_v46, %v1356_v2  ;;  %v1848_v2 = vmul.f32 %v4951_v15, %v4890_v3 }
 0x2a4   : > { %v1253_v33 = vadd.f32 %v3825_v21, %v4869_v55  ;;  %v1244_v38 = vpop.f32.mrb[21].mxu1 }
 0x2a5   : > { %v1245_v27 = vadd.f32 %v4869_v55, %v1244_v38  ;;  %v3826_v28 = vpop.f32.mrb[22].mxu1 }
 0x2a6   : > { %v4922_v37 = vmax.f32 %v1253_v33, 0.0  ;;  %v1256_v43 = vadd.f32 %v3826_v28, %v4869_v55  ;;  %v1247_v35 = vpop.f32.mrb[23].mxu1 }
 0x2a7   : > { %v1465_v40 = vld [vmem:[#allocation2 + $0x30] sm:$0xff]  ;;  %v1359_v49 = vmax.f32 %v1245_v27, 0.0  ;;  %v4929_v50 = vadd.f32 %v4869_v55, %v1247_v35 }
 0x2a8   : > { %v1619_v25 = vld [vmem:[#allocation2 + $0x18] sm:$0xff]  ;;  %1437 = vst [vmem:[#allocation2 + $0x61] sm:$0xff] %v4922_v37  ;;  %v1485_v11 = vmul.f32 %v4881_v42, %v1465_v40  ;;  %v4938_v8 = vmax.f32 %v1256_v43, 0.0  ;;  %v1796_v31 = vmul.f32 %v4944_v4, %v1465_v40 }
 0x2a9   : > { %v1639_v36 = vmul.f32 %v4918_v26, %v1619_v25  ;;  %1435 = vst [vmem:[#allocation2 + $0x49] sm:$0xff] %v1359_v49  ;;  %v1360_v48 = vmax.f32 %v4929_v50, 0.0  ;;  %v1569_v52 = vld [vmem:[#allocation2 + $0x32] sm:$0xff]  ;;  %v1570_v21 = vld [vmem:[#allocation2 + $0x3a] sm:$0xff]  ;;  %v1693_v32 = vmul.f32 %v4926_v46, %v1359_v49 }
 0x2aa   : > { %v1620_v51 = vld [vmem:[#allocation2 + $0x20] sm:$0xff]  ;;  %v1466_v10 = vld [vmem:[#allocation2 + $0x38] sm:$0xff]  ;;  %1438 = vst [vmem:[#allocation2 + $0x69] sm:$0xff] %v4938_v8  ;;  %v1553_v1 = vadd.f32 %v1537_v54, %v1485_v11  ;;  %v1589_v41 = vmul.f32 %v4893_v5, %v1569_v52  ;;  %v1900_v35 = vmul.f32 %v4962_v58, %v1569_v52  ;;  %v1989_v54 = vunpack.c.0.s8 %v4967_v47 }
 0x2ab   : > { %v1723_v57 = vld [vmem:[#allocation2 + $0x1a] sm:$0xff]  ;;  %v1655_v60 = vadd.f32 %v1639_v36, %v1603_v44  ;;  %1436 = vst [vmem:[#allocation2 + $0x51] sm:$0xff] %v1360_v48  ;;  %v1640_v63 = vmul.f32 %v4918_v26, %v1620_v51  ;;  %v1724_v20 = vld [vmem:[#allocation2 + $0x22] sm:$0xff]  ;;  %v1486_v6 = vmul.f32 %v4881_v42, %v1466_v10  ;;  %v1797_v28 = vmul.f32 %v4944_v4, %v1466_v10 }
 0x2ac   : > { %v1743_v7 = vmul.f32 %v4933_v34, %v1723_v57  ;;  %v1744_v18 = vmul.f32 %v4933_v34, %v1724_v20  ;;  %v1605_v23 = vadd.f32 %v1589_v41, %v1553_v1  ;;  %v1590_v36 = vmul.f32 %v4893_v5, %v1570_v21  ;;  %v4986_v10 = vld [vmem:[%s6209_s20] ss:$0 sm:$0xff]  ;;  %s3653_s20 = sshll.u32 %s4447_s14, 9  ;;  %s3417_s14 = scalar_lea.sflag [#allocation5], %s4675_s17 }
 0x2ad   : > { %v1707_v56 = vadd.f32 %v1691_v61, %v1655_v60  ;;  %v1656_v12 = vadd.f32 %v1640_v63, %v1604_v45  ;;  %v1554_v27 = vadd.f32 %v1538_v17, %v1486_v6  ;;  %v1849_v45 = vmul.f32 %v4951_v15, %v4904_v14 }
 0x2ae   : > { %v1850_v41 = vmul.f32 %v4951_v15, %v4922_v37  ;;  %v1694_v20 = vmul.f32 %v4926_v46, %v1360_v48  ;;  %v1540_v47 = vmul.f32 %v4885_v62, %v4938_v8 }
 0x2af   : > { %v1759_v59 = vadd.f32 %v1743_v7, %v1707_v56  ;;  %v1708_v39 = vadd.f32 %v1692_v13, %v1656_v12  ;;  %v1467_v52 = vld [vmem:[#allocation2 + $0x60] sm:$0xff]  ;;  %v1606_v61 = vadd.f32 %v1590_v36, %v1554_v27  ;;  %v1539_v56 = vmul.f32 %v4885_v62, %v4922_v37 }
 0x2b0   : > { %v1621_v16 = vld [vmem:[#allocation2 + $0x48] sm:$0xff]  ;;  %v3829_v9 = vpop.f32.mrb[24].mxu1  ;;  %v1798_v12 = vmul.f32 %v4944_v4, %v1467_v52  ;;  %v1487_v37 = vmul.f32 %v4881_v42, %v1467_v52 }
 0x2b1   : > { %v1812_v33 = vadd.f32 %v1796_v31, %v1759_v59  ;;  %v1641_v38 = vmul.f32 %v4918_v26, %v1621_v16  ;;  %v1260_v22 = vpop.f32.mrb[25].mxu1  ;;  %v1760_v29 = vadd.f32 %v1744_v18, %v1708_v39  ;;  %v1269_v3 = vadd.f32 %v3829_v9, %v4869_v55  ;;  %v1468_v13 = vld [vmem:[#allocation2 + $0x68] sm:$0xff] }
 0x2b2   : > { %v3830_v43 = vpop.f32.mrb[26].mxu1  ;;  %v1622_v53 = vld [vmem:[#allocation2 + $0x50] sm:$0xff]  ;;  %v4980_v57 = vadd.f32 %v4869_v55, %v1260_v22  ;;  %v1901_v18 = vmul.f32 %v4962_v58, %v1570_v21 }
 0x2b3   : > { %v1864_v40 = vadd.f32 %v1848_v2, %v1812_v33  ;;  %v1657_v44 = vadd.f32 %v1641_v38, %v1605_v23  ;;  %v1725_v25 = vld [vmem:[#allocation2 + $0x4a] sm:$0xff]  ;;  %v1263_v11 = vpop.f32.mrb[27].mxu1  ;;  %v1813_v51 = vadd.f32 %v1797_v28, %v1760_v29  ;;  %v1642_v1 = vmul.f32 %v4918_v26, %v1622_v53  ;;  %v1726_v7 = vld [vmem:[#allocation2 + $0x52] sm:$0xff]  ;;  %v1571_v33 = vld [vmem:[#allocation2 + $0x62] sm:$0xff] }
 0x2b4   : > { %v1745_v14 = vmul.f32 %v4933_v34, %v1725_v25  ;;  %v4997_v6 = vmax.f32 %v1269_v3, 0.0  ;;  %v1363_v17 = vmax.f32 %v4980_v57, 0.0  ;;  %v1272_v50 = vadd.f32 %v3830_v43, %v4869_v55  ;;  %v1572_v53 = vld [vmem:[#allocation2 + $0x6a] sm:$0xff] }
 0x2b5   : > { %v1916_v49 = vadd.f32 %v1900_v35, %v1864_v40  ;;  %v1709_v60 = vadd.f32 %v1693_v32, %v1657_v44  ;;  %v1865_v63 = vadd.f32 %v1849_v45, %v1813_v51  ;;  %v1658_v31 = vadd.f32 %v1642_v1, %v1606_v61 }
 0x2b6   : > { %1441 = vst [vmem:[#allocation2 + $0x91] sm:$0xff] %v4997_v6  ;;  %v1746_v9 = vmul.f32 %v4933_v34, %v1726_v7  ;;  %1439 = vst [vmem:[#allocation2 + $0x79] sm:$0xff] %v1363_v17  ;;  %v1488_v23 = vmul.f32 %v4881_v42, %v1468_v13  ;;  %v1799_v38 = vmul.f32 %v4944_v4, %v1468_v13  ;;  %v1366_v22 = vmax.f32 %v1272_v50, 0.0 }
 0x2b7   : > { %v1761_v59 = vadd.f32 %v1745_v14, %v1709_v60  ;;  %v1938_v19 = vadd.f32 %v4986_v10, %v1916_v49  ;;  %v1710_v16 = vadd.f32 %v1694_v20, %v1658_v31  ;;  %v5014_v27 = vadd.f32 %v4869_v55, %v1263_v11 }
 0x2b8   : > { %v3833_v39 = vpop.f32.mrb[28].mxu1  ;;  %v1917_v29 = vadd.f32 %v1901_v18, %v1865_v63  ;;  %v1555_v44 = vadd.f32 %v1539_v56, %v1487_v37  ;;  %v1851_v25 = vmul.f32 %v4951_v15, %v4938_v8  ;;  %1442 = vst [vmem:[#allocation2 + $0x99] sm:$0xff] %v1366_v22  ;;  %v1591_v36 = vmul.f32 %v4893_v5, %v1571_v33 }
 0x2b9   : > { %v1276_v48 = vpop.f32.mrb[29].mxu1  ;;  %v1814_v2 = vadd.f32 %v1798_v12, %v1761_v59  ;;  %v1762_v32 = vadd.f32 %v1746_v9, %v1710_v16  ;;  %v1285_v35 = vadd.f32 %v3833_v39, %v4869_v55  ;;  %v1954_v40 = vmax.f32 %v1938_v19, 0.0 }
 0x2ba   : > { %v3834_v21 = vpop.f32.mrb[30].mxu1  ;;  %v1364_v3 = vmax.f32 %v5014_v27, 0.0  ;;  %v1277_v51 = vadd.f32 %v4869_v55, %v1276_v48  ;;  %v1556_v49 = vadd.f32 %v1540_v47, %v1488_v23  ;;  %v1902_v52 = vmul.f32 %v4962_v58, %v1571_v33 }
 0x2bb   : > { %v1279_v28 = vpop.f32.mrb[31].mxu1  ;;  %v1866_v43 = vadd.f32 %v1850_v41, %v1814_v2  ;;  %v1815_v45 = vadd.f32 %v1799_v38, %v1762_v32  ;;  %v1369_v11 = vmax.f32 %v1285_v35, 0.0  ;;  %v1288_v60 = vadd.f32 %v3834_v21, %v4869_v55 }
 0x2bc   : > { %1440 = vst [vmem:[#allocation2 + $0x81] sm:$0xff] %v1364_v3  ;;  %v5025_v61 = vadd.f32 %v4869_v55, %v1279_v28  ;;  %v1939_v8 = vadd.f32 %v4986_v10, %v1917_v29  ;;  %v5029_v63 = vsub.s32 %v1989_v54, %v4860_v0  ;;  %v1592_v1 = vmul.f32 %v4893_v5, %v1572_v53 }
 0x2bd   : > { %v1867_v14 = vadd.f32 %v1851_v25, %v1815_v45  ;;  %v1469_v56 = vld [vmem:[#allocation2 + $0x90] sm:$0xff]  ;;  %1445 = vst [vmem:[#allocation2 + $0xc1] sm:$0xff] %v1369_v11  ;;  %v1986_v20 = vcombine.high %v1954_v40, %v1954_v40  ;;  %v1918_v7 = vadd.f32 %v1902_v52, %v1866_v43  ;;  %v1623_v12 = vld [vmem:[#allocation2 + $0x78] sm:$0xff]  ;;  %v1367_v13 = vmax.f32 %v1277_v51, 0.0 }
 0x2be   : > { %6210 = vst [vmem:[#allocation21_spill] sm:$0xff] %v5029_v63  ;;  %v5034_v31 = vmax.f32 %v1288_v60, 0.0  ;;  %v1607_v39 = vadd.f32 %v1591_v36, %v1555_v44  ;;  %v1643_v18 = vmul.f32 %v4918_v26, %v1623_v12  ;;  %v1368_v0 = vmax.f32 %v5025_v61, 0.0 }
 0x2bf   : > { %v1608_v19 = vadd.f32 %v1592_v1, %v1556_v49  ;;  %v1903_v37 = vmul.f32 %v4962_v58, %v1572_v53  ;;  %v1489_v50 = vmul.f32 %v4881_v42, %v1469_v56  ;;  %1443 = vst [vmem:[#allocation2 + $0xa9] sm:$0xff] %v1367_v13  ;;  %v1541_v47 = vmul.f32 %v4885_v62, %v4997_v6  ;;  %v1470_v21 = vld [vmem:[#allocation2 + $0x98] sm:$0xff] }
 0x2c0   : > { %v5032_v41 = vpop.f32.mrb[32].mxu1  ;;  %1446 = vst [vmem:[#allocation2 + $0xc9] sm:$0xff] %v5034_v31  ;;  %v1852_v16 = vmul.f32 %v4951_v15, %v4997_v6  ;;  %v1659_v9 = vadd.f32 %v1643_v18, %v1607_v39  ;;  %v1695_v2 = vmul.f32 %v4926_v46, %v1363_v17  ;;  %v1573_v23 = vld [vmem:[#allocation2 + $0x92] sm:$0xff]  ;;  %1444 = vst [vmem:[#allocation2 + $0xb1] sm:$0xff] %v1368_v0  ;;  %v5052_v33 = vmax.f32 %v1939_v8, 0.0  ;;  %v5064_v44 = vld [vmem:[#allocation2 + $0x9a] sm:$0xff] }
 0x2c1   : > { %v1292_v59 = vpop.f32.mrb[33].mxu1  ;;  %v5055_v38 = vrot.slane %v1954_v40, %v5029_v63  ;;  %v5058_v27 = vrot.slane %v1986_v20, %v5029_v63  ;;  %v1940_v6 = vadd.f32 %v4986_v10, %v1918_v7  ;;  %v1490_v57 = vmul.f32 %v4881_v42, %v1470_v21 }
 0x2c2   : > { %v3838_v54 = vpop.f32.mrb[34].mxu1  ;;  %v1711_v28 = vadd.f32 %v1695_v2, %v1659_v9  ;;  %v1542_v17 = vmul.f32 %v4885_v62, %v1366_v22  ;;  %v1853_v29 = vmul.f32 %v4951_v15, %v1366_v22  ;;  %v1557_v35 = vadd.f32 %v1541_v47, %v1489_v50 }
 0x2c3   : > { %v5041_v48 = vpop.f32.mrb[35].mxu1  ;;  %6211 = vst [vmem:[#allocation22_spill] sm:$0xff] %v5055_v38  ;;  %6212 = vst [vmem:[#allocation23_spill] sm:$0xff] %v5058_v27  ;;  %v1624_v32 = vld [vmem:[#allocation2 + $0x80] sm:$0xff]  ;;  %v1593_v40 = vmul.f32 %v4893_v5, %v1573_v23  ;;  %v1696_v25 = vmul.f32 %v4926_v46, %v1364_v3  ;;  %v1800_v36 = vmul.f32 %v4944_v4, %v1469_v56  ;;  %v5079_v8 = vmax.f32 %v1940_v6, 0.0 }
 0x2c4   : > { %v1727_v43 = vld [vmem:[#allocation2 + $0x7a] sm:$0xff]  ;;  %v1644_v53 = vmul.f32 %v4918_v26, %v1624_v32  ;;  %v1728_v45 = vld [vmem:[#allocation2 + $0x82] sm:$0xff]  ;;  %v5072_v49 = vmul.f32 %v4885_v62, %v1369_v11  ;;  %v5075_v22 = vmul.f32 %v4951_v15, %v1369_v11  ;;  %v1919_v60 = vadd.f32 %v1903_v37, %v1867_v14 }
 0x2c5   : > { %v1747_v51 = vmul.f32 %v4933_v34, %v1727_v43  ;;  %v1697_v20 = vmul.f32 %v4926_v46, %v1367_v13  ;;  %v1558_v56 = vadd.f32 %v1542_v17, %v1490_v57  ;;  %v1594_v7 = vmul.f32 %v4893_v5, %v5064_v44  ;;  %v1471_v50 = vld [vmem:[#allocation2 + $0xc0] sm:$0xff] }
 0x2c6   : > { %v1660_v1 = vadd.f32 %v1644_v53, %v1608_v19  ;;  %v1625_v39 = vld [vmem:[#allocation2 + $0xa8] sm:$0xff]  ;;  %v5088_v11 = vmul.f32 %v4885_v62, %v5034_v31  ;;  %v1609_v14 = vadd.f32 %v1593_v40, %v1557_v35  ;;  %v1748_v19 = vmul.f32 %v4933_v34, %v1728_v45 }
 0x2c7   : > { %v1763_v12 = vadd.f32 %v1747_v51, %v1711_v28  ;;  %v1645_v13 = vmul.f32 %v4918_v26, %v1625_v39  ;;  %v1626_v47 = vld [vmem:[#allocation2 + $0xb0] sm:$0xff]  ;;  %v1801_v2 = vmul.f32 %v4944_v4, %v1470_v21  ;;  %v1301_v57 = vadd.f32 %v5032_v41, %v4869_v55 }
 0x2c8   : > { %v5077_v52 = vpop.f32.mrb[36].mxu1  ;;  %v1712_v37 = vadd.f32 %v1696_v25, %v1660_v1  ;;  %v1729_v28 = vld [vmem:[#allocation2 + $0xaa] sm:$0xff]  ;;  %v5100_v17 = vadd.f32 %v4869_v55, %v1292_v59  ;;  %v1904_v32 = vmul.f32 %v4962_v58, %v1573_v23  ;;  %v1304_v40 = vadd.f32 %v3838_v54, %v4869_v55  ;;  %v1730_v59 = vld [vmem:[#allocation2 + $0xb2] sm:$0xff] }
 0x2c9   : > { %v5082_v3 = vpop.f32.mrb[37].mxu1  ;;  %v1816_v6 = vadd.f32 %v1800_v36, %v1763_v12  ;;  %v1661_v35 = vadd.f32 %v1645_v13, %v1609_v14  ;;  %v1610_v53 = vadd.f32 %v1594_v7, %v1558_v56  ;;  %v1491_v45 = vmul.f32 %v4881_v42, %v1471_v50  ;;  %v4075_v36 = vld [vmem:[#allocation11] sm:$0xff]   ;;  %v1472_v12 = vld [vmem:[#allocation2 + $0xc8] sm:$0xff]  ;;  %v4076_v14 = vld [vmem:[#allocation11 + $0x8] sm:$0xff]  }
 0x2ca   : > { %v5090_v18 = vpop.f32.mrb[38].mxu1  ;;  %v1764_v43 = vadd.f32 %v1748_v19, %v1712_v37  ;;  %v1646_v21 = vmul.f32 %v4918_v26, %v1626_v47  ;;  %v1802_v1 = vmul.f32 %v4944_v4, %v1471_v50  ;;  %v1749_v39 = vmul.f32 %v4933_v34, %v1729_v28  ;;  %3872 = vmatpush3.bf16.msra.mxu1 %v4075_v36  ;;  %v4077_v36 = vld [vmem:[#allocation11 + $0x10] sm:$0xff]  }
 0x2cb   : > { %v5094_v9 = vpop.f32.mrb[39].mxu1  ;;  %v1868_v25 = vadd.f32 %v1852_v16, %v1816_v6  ;;  %v1713_v41 = vadd.f32 %v1697_v20, %v1661_v35  ;;  %v1698_v54 = vmul.f32 %v4926_v46, %v1368_v0  ;;  %v5111_v56 = vmax.f32 %v1301_v57, 0.0  ;;  %3873 = vmatprep.subr.bf16.mxu1 %v4854_v30  ;;  %v1575_v57 = vld [vmem:[#allocation2 + $0xc2] sm:$0xff] }
 0x2cc   : > { %v1817_v51 = vadd.f32 %v1801_v2, %v1764_v43  ;;  %v1662_v23 = vadd.f32 %v1646_v21, %v1610_v53  ;;  %v1371_v16 = vmax.f32 %v5100_v17, 0.0  ;;  %v5118_v19 = vmax.f32 %v1304_v40, 0.0 }
 0x2cd   : > { %v1765_v20 = vadd.f32 %v1749_v39, %v1713_v41  ;;  %v5122_v50 = vadd.f32 %v4869_v55, %v5041_v48  ;;  %v1492_v0 = vmul.f32 %v4881_v42, %v1472_v12  ;;  %v1855_v13 = vmul.f32 %v4951_v15, %v5034_v31  ;;  %1449 = vst [vmem:[#allocation2 + $0xf1] sm:$0xff] %v5111_v56 }
 0x2ce   : > { %v5116_v37 = vadd.f32 %v1853_v29, %v1817_v51  ;;  %v1714_v47 = vadd.f32 %v1698_v54, %v1662_v23  ;;  %v1750_v29 = vmul.f32 %v4933_v34, %v1730_v59  ;;  %1447 = vst [vmem:[#allocation2 + $0xd9] sm:$0xff] %v1371_v16  ;;  %v1941_v48 = vadd.f32 %v4986_v10, %v1919_v60 }
 0x2cf   : > { %v2020_v6 = vcombine.high %v5079_v8, %v5079_v8  ;;  %v1920_v28 = vadd.f32 %v1904_v32, %v1868_v25  ;;  %v1818_v43 = vadd.f32 %v1802_v1, %v1765_v20  ;;  %1450 = vst [vmem:[#allocation2 + $0xf9] sm:$0xff] %v5118_v19  ;;  %v1559_v35 = vadd.f32 %v5072_v49, %v1491_v45  ;;  %v1576_v45 = vld [vmem:[#allocation2 + $0xca] sm:$0xff] }
 0x2d0   : > { %v5114_v7 = vpop.f32.mrb[40].mxu1  ;;  %v1803_v40 = vmul.f32 %v4944_v4, %v1472_v12  ;;  %v1766_v53 = vadd.f32 %v1750_v29, %v1714_v47  ;;  %v1372_v21 = vmax.f32 %v5122_v50, 0.0  ;;  %3874 = vmatpush3.bf16.msra.mxu1 %v4076_v14  ;;  %v1317_v32 = vadd.f32 %v5077_v52, %v4869_v55  ;;  %v4078_v14 = vld [vmem:[#allocation11 + $0x18] sm:$0xff]  }
 0x2d1   : > { %v5124_v61 = vpop.f32.mrb[41].mxu1  ;;  %v1870_v60 = vadd.f32 %v5075_v22, %v1818_v43  ;;  %v5150_v25 = vadd.f32 %v4869_v55, %v5082_v3  ;;  %v1320_v51 = vadd.f32 %v5090_v18, %v4869_v55  ;;  %3875 = vmatprep.subr.bf16.mxu1 %v4854_v30  ;;  %v1560_v49 = vadd.f32 %v5088_v11, %v1492_v0 }
 0x2d2   : > { %v5134_v2 = vpop.f32.mrb[42].mxu1  ;;  %v1595_v1 = vmul.f32 %v4893_v5, %v1575_v57  ;;  %v1906_v41 = vmul.f32 %v4962_v58, %v1575_v57  ;;  %v1819_v22 = vadd.f32 %v1803_v40, %v1766_v53  ;;  %1448 = vst [vmem:[#allocation2 + $0xe1] sm:$0xff] %v1372_v21  ;;  %v1942_v52 = vadd.f32 %v4986_v10, %v1920_v28 }
 0x2d3   : > { %v5140_v31 = vpop.f32.mrb[43].mxu1  ;;  %v5161_v3 = vmax.f32 %v1317_v32, 0.0  ;;  %v6119_v12 = vmax.f32 %v5150_v25, 0.0  ;;  %v5164_v18 = vmax.f32 %v1320_v51, 0.0  ;;  %v5166_v59 = vmax.f32 %v1941_v48, 0.0 }
 0x2d4   : > { %v5170_v11 = vrot.slane %v5079_v8, %v5029_v63  ;;  %v5172_v39 = vadd.f32 %v1855_v13, %v1819_v22  ;;  %v5178_v54 = vcombine.high %v5055_v38, %v5055_v38  ;;  %3876 = vmatpush3.bf16.msra.mxu1 %v4077_v36  ;;  %v5181_v20 = vrot.slane %v2020_v6, %v5029_v63  ;;  %v1473_v29 = vld [vmem:[#allocation2 + $0xf0] sm:$0xff] }
 0x2d5   : > { %v1905_v0 = vmul.f32 %v4962_v58, %v5064_v44  ;;  %v1596_v47 = vmul.f32 %v4893_v5, %v1576_v45  ;;  %v1922_v8 = vadd.f32 %v1906_v41, %v1870_v60  ;;  %v1627_v13 = vld [vmem:[#allocation2 + $0xd8] sm:$0xff]  ;;  %1453 = vst [vmem:[#allocation2 + $0x121] sm:$0xff] %v5161_v3  ;;  %1451 = vst [vmem:[#allocation2 + $0x109] sm:$0xff] %v6119_v12  ;;  %3877 = vmatprep.subr.bf16.mxu1 %v4854_v30  ;;  %v4079_v41 = vld [vmem:[#allocation11 + $0x20] sm:$0xff]  }
 0x2d6   : > { %6213 = vst [vmem:[#allocation24_spill] sm:$0xff] %v5170_v11  ;;  %6214 = vst [vmem:[#allocation25_spill] sm:$0xff] %v5178_v54  ;;  %v1611_v6 = vadd.f32 %v1595_v1, %v1559_v35  ;;  %v1907_v28 = vmul.f32 %v4962_v58, %v1576_v45  ;;  %v1493_v44 = vmul.f32 %v4881_v42, %v1473_v29  ;;  %v1577_v43 = vld [vmem:[#allocation2 + $0xf2] sm:$0xff]  ;;  %v5198_v53 = vmax.f32 %v1942_v52, 0.0 }
 0x2d7   : > { %6215 = vst [vmem:[#allocation26_spill] sm:$0xff] %v5181_v20  ;;  %1454 = vst [vmem:[#allocation2 + $0x129] sm:$0xff] %v5164_v18  ;;  %v1647_v57 = vmul.f32 %v4918_v26, %v1627_v13  ;;  %v1612_v36 = vadd.f32 %v1596_v47, %v1560_v49  ;;  %v1545_v60 = vmul.f32 %v4885_v62, %v5111_v56 }
 0x2d8   : > { %v5174_v23 = vpop.f32.mrb[44].mxu1  ;;  %v1856_v32 = vmul.f32 %v4951_v15, %v5111_v56  ;;  %v1699_v45 = vmul.f32 %v4926_v46, %v1371_v16  ;;  %v5211_v1 = vadd.f32 %v4869_v55, %v5094_v9  ;;  %v1333_v49 = vadd.f32 %v5114_v7, %v4869_v55  ;;  %3878 = vmatpush3.bf16.msra.mxu1 %v4078_v14 }
 0x2d9   : > { %v5190_v48 = vpop.f32.mrb[45].mxu1  ;;  %v1663_v35 = vadd.f32 %v1647_v57, %v1611_v6  ;;  %v5216_v22 = vadd.f32 %v1905_v0, %v5116_v37  ;;  %v1944_v56 = vadd.f32 %v4986_v10, %v1922_v8  ;;  %v1561_v52 = vadd.f32 %v1545_v60, %v1493_v44  ;;  %v1628_v17 = vld [vmem:[#allocation2 + $0xe0] sm:$0xff]  ;;  %3879 = vmatprep.subr.bf16.mxu1 %v4854_v30  ;;  %v1474_v8 = vld [vmem:[#allocation2 + $0xf8] sm:$0xff] }
 0x2da   : > { %v5196_v40 = vpop.f32.mrb[46].mxu1  ;;  %v1597_v47 = vmul.f32 %v4893_v5, %v1577_v43  ;;  %v1731_v13 = vld [vmem:[#allocation2 + $0xda] sm:$0xff]  ;;  %v1546_v9 = vmul.f32 %v4885_v62, %v5118_v19  ;;  %v1648_v7 = vmul.f32 %v4918_v26, %v1628_v17  ;;  %v1804_v0 = vmul.f32 %v4944_v4, %v1473_v29  ;;  %v1732_v57 = vld [vmem:[#allocation2 + $0xe2] sm:$0xff] }
 0x2db   : > { %v5204_v51 = vpop.f32.mrb[47].mxu1  ;;  %v1715_v16 = vadd.f32 %v1699_v45, %v1663_v35  ;;  %v1751_v14 = vmul.f32 %v4933_v34, %v1731_v13  ;;  %v1857_v6 = vmul.f32 %v4951_v15, %v5118_v19  ;;  %v1700_v44 = vmul.f32 %v4926_v46, %v1372_v21  ;;  %v4080_v37 = vld [vmem:[#allocation11 + $0x28] sm:$0xff]  }
 0x2dc   : > { %v1664_v60 = vadd.f32 %v1648_v7, %v1612_v36  ;;  %v1629_v45 = vld [vmem:[#allocation2 + $0x108] sm:$0xff]  ;;  %v6121_v17 = vmax.f32 %v5211_v1, 0.0  ;;  %v5234_v13 = vmax.f32 %v1333_v49, 0.0  ;;  %3880 = vmatpush3.bf16.msra.mxu1 %v4079_v41  ;;  %v5238_v29 = vrot.slane %v5198_v53, %v5029_v63  ;;  %v1578_v36 = vld [vmem:[#allocation2 + $0xfa] sm:$0xff] }
 0x2dd   : > { %v1767_v35 = vadd.f32 %v1751_v14, %v1715_v16  ;;  %v5240_v12 = vmax.f32 %v1944_v56, 0.0  ;;  %v1613_v19 = vadd.f32 %v1597_v47, %v1561_v52  ;;  %v1649_v50 = vmul.f32 %v4918_v26, %v1629_v45  ;;  %3881 = vmatprep.subr.bf16.mxu1 %v4854_v30 }
 0x2de   : > { %6216 = vst [vmem:[#allocation27_spill] sm:$0xff] %v5238_v29  ;;  %v1494_v21 = vmul.f32 %v4881_v42, %v1474_v8  ;;  %v1716_v16 = vadd.f32 %v1700_v44, %v1664_v60  ;;  %v1752_v49 = vmul.f32 %v4933_v34, %v1732_v57  ;;  %1452 = vst [vmem:[#allocation2 + $0x111] sm:$0xff] %v6121_v17  ;;  %v6217_v52 = vmax.f32 %v5150_v25, 0.0 }
 0x2df   : > { %v1820_v7 = vadd.f32 %v1804_v0, %v1767_v35  ;;  %1457 = vst [vmem:[#allocation2 + $0x151] sm:$0xff] %v5234_v13  ;;  %v1547_v41 = vmul.f32 %v4885_v62, %v5161_v3  ;;  %v1665_v56 = vadd.f32 %v1649_v50, %v1613_v19  ;;  %v5256_v14 = vadd.f32 %v4869_v55, %v5124_v61  ;;  %v4081_v35 = vld [vmem:[#allocation11 + $0x30] sm:$0xff]  }
 0x2e0   : > { %v1701_v47 = vmul.f32 %v4926_v46, %v6217_v52  ;;  %v1805_v44 = vmul.f32 %v4944_v4, %v1474_v8  ;;  %v1768_v0 = vadd.f32 %v1752_v49, %v1716_v16  ;;  %v5261_v60 = vmul.f32 %v4951_v15, %v5161_v3  ;;  %3882 = vmatpush3.bf16.msra.mxu1 %v4080_v37  ;;  %v1475_v50 = vld [vmem:[#allocation2 + $0x120] sm:$0xff]  ;;  %v1476_v16 = vld [vmem:[#allocation2 + $0x128] sm:$0xff] }
 0x2e1   : > { %v1872_v57 = vadd.f32 %v1856_v32, %v1820_v7  ;;  %v5264_v45 = vadd.f32 %v1907_v28, %v5172_v39  ;;  %v1598_v25 = vmul.f32 %v4893_v5, %v1578_v36  ;;  %v1908_v19 = vmul.f32 %v4962_v58, %v1577_v43  ;;  %3883 = vmatprep.subr.bf16.mxu1 %v4854_v30 }
 0x2e2   : > { %v1717_v61 = vadd.f32 %v1701_v47, %v1665_v56  ;;  %v5273_v3 = vrot.slane %v5240_v12, %v5029_v63  ;;  %v1562_v37 = vadd.f32 %v1546_v9, %v1494_v21  ;;  %v1821_v8 = vadd.f32 %v1805_v44, %v1768_v0  ;;  %v1579_v21 = vld [vmem:[#allocation2 + $0x122] sm:$0xff] }
 0x2e3   : > { %v6120_v39 = vmax.f32 %v5256_v14, 0.0  ;;  %v1336_v28 = vadd.f32 %v5134_v2, %v4869_v55  ;;  %v5280_v43 = vadd.f32 %v4869_v55, %v5140_v31  ;;  %v5284_v49 = vadd.f32 %v5174_v23, %v4869_v55  ;;  %v4082_v2 = vld [vmem:[#allocation11 + $0x38] sm:$0xff]  }
 0x2e4   : > { %6218 = vst [vmem:[#allocation28_spill] sm:$0xff] %v5273_v3  ;;  %v5287_v7 = vmul.f32 %v4962_v58, %v1578_v36  ;;  %v5289_v56 = vadd.f32 %v1857_v6, %v1821_v8  ;;  %v1495_v9 = vmul.f32 %v4881_v42, %v1475_v50  ;;  %v5294_v52 = vadd.f32 %v4869_v55, %v5190_v48 }
 0x2e5   : > { %3884 = vmatpush3.bf16.msra.mxu1 %v4081_v35  ;;  %v1630_v31 = vld [vmem:[#allocation2 + $0x110] sm:$0xff]  ;;  %1455 = vst [vmem:[#allocation2 + $0x139] sm:$0xff] %v6120_v39  ;;  %v5298_v23 = vmax.f32 %v1336_v28, 0.0  ;;  %v6127_v36 = vmax.f32 %v5280_v43, 0.0  ;;  %v6128_v6 = vmax.f32 %v5284_v49, 0.0  ;;  %v5304_v44 = vadd.f32 %v5196_v40, %v4869_v55 }
 0x2e6   : > { %v1733_v47 = vld [vmem:[#allocation2 + $0x10a] sm:$0xff]  ;;  %3885 = vmatprep.subr.bf16.mxu1 %v4854_v30  ;;  %v1614_v48 = vadd.f32 %v1598_v25, %v1562_v37  ;;  %v1496_v0 = vmul.f32 %v4881_v42, %v1476_v16  ;;  %v1650_v35 = vmul.f32 %v4918_v26, %v1630_v31  ;;  %v1806_v28 = vmul.f32 %v4944_v4, %v1475_v50  ;;  %v1734_v17 = vld [vmem:[#allocation2 + $0x112] sm:$0xff] }
 0x2e7   : > { %v1753_v8 = vmul.f32 %v4933_v34, %v1733_v47  ;;  %v1548_v32 = vmul.f32 %v4885_v62, %v5164_v18  ;;  %v1599_v39 = vmul.f32 %v4893_v5, %v1579_v21  ;;  %v1859_v40 = vmul.f32 %v4951_v15, %v5164_v18  ;;  %1458 = vst [vmem:[#allocation2 + $0x159] sm:$0xff] %v5298_v23  ;;  %v1580_v25 = vld [vmem:[#allocation2 + $0x12a] sm:$0xff] }
 0x2e8   : > { %1456 = vst [vmem:[#allocation2 + $0x141] sm:$0xff] %v6127_v36  ;;  %1461 = vst [vmem:[#allocation2 + $0x181] sm:$0xff] %v6128_v6  ;;  %v1924_v30 = vadd.f32 %v1908_v19, %v1872_v57  ;;  %v1666_v50 = vadd.f32 %v1650_v35, %v1614_v48  ;;  %v6219_v37 = vmax.f32 %v5211_v1, 0.0  ;;  %v1477_v54 = vld [vmem:[#allocation2 + $0x150] sm:$0xff]  ;;  %v1563_v18 = vadd.f32 %v1547_v41, %v1495_v9 }
 0x2e9   : > { %v1769_v47 = vadd.f32 %v1753_v8, %v1717_v61  ;;  %3886 = vmatpush3.bf16.msra.mxu1 %v4082_v2  ;;  %v1383_v38 = vmax.f32 %v5294_v52, 0.0  ;;  %v1386_v24 = vmax.f32 %v5304_v44, 0.0  ;;  %v5328_v36 = vadd.f32 %v4869_v55, %v5204_v51 }
 0x2ea   : > { %v1702_v31 = vmul.f32 %v4926_v46, %v6219_v37  ;;  %v1564_v6 = vadd.f32 %v1548_v32, %v1496_v0  ;;  %v1754_v19 = vmul.f32 %v4933_v34, %v1734_v17  ;;  %v1600_v1 = vmul.f32 %v4893_v5, %v1580_v25 }
 0x2eb   : > { %v1822_v48 = vadd.f32 %v1806_v28, %v1769_v47  ;;  %v1807_v61 = vmul.f32 %v4944_v4, %v1476_v16  ;;  %v1497_v2 = vmul.f32 %v4881_v42, %v1477_v54  ;;  %1459 = vst [vmem:[#allocation2 + $0x169] sm:$0xff] %v1383_v38  ;;  %1462 = vst [vmem:[#allocation2 + $0x189] sm:$0xff] %v1386_v24  ;;  %v1384_v41 = vmax.f32 %v5328_v36, 0.0 }
 0x2ec   : > { %v1718_v57 = vadd.f32 %v1702_v31, %v1666_v50  ;;  %v1946_v9 = vadd.f32 %v4986_v10, %v1924_v30  ;;  %v1910_v55 = vmul.f32 %v4962_v58, %v1579_v21  ;;  %v1631_v52 = vld [vmem:[#allocation2 + $0x138] sm:$0xff]  ;;  %v1615_v17 = vadd.f32 %v1599_v39, %v1563_v18 }
 0x2ed   : > { %v1874_v32 = vadd.f32 %v5261_v60, %v1822_v48  ;;  %v5339_v44 = vmul.f32 %v4962_v58, %v1580_v25  ;;  %v1549_v16 = vmul.f32 %v4885_v62, %v5234_v13  ;;  %v1651_v0 = vmul.f32 %v4918_v26, %v1631_v52  ;;  %1460 = vst [vmem:[#allocation2 + $0x171] sm:$0xff] %v1384_v41 }
 0x2ee   : > { %v1770_v51 = vadd.f32 %v1754_v19, %v1718_v57  ;;  %v1616_v35 = vadd.f32 %v1600_v1, %v1564_v6  ;;  %v6220_v8 = vmax.f32 %v5256_v14, 0.0  ;;  %v1478_v28 = vld [vmem:[#allocation2 + $0x158] sm:$0xff]  ;;  %v1550_v60 = vmul.f32 %v4885_v62, %v5298_v23 }
 0x2ef   : > { %v1581_v39 = vld [vmem:[#allocation2 + $0x152] sm:$0xff]  ;;  %v1565_v30 = vadd.f32 %v1549_v16, %v1497_v2  ;;  %v1667_v25 = vadd.f32 %v1651_v0, %v1615_v17  ;;  %v1498_v50 = vmul.f32 %v4881_v42, %v1478_v28  ;;  %v1632_v31 = vld [vmem:[#allocation2 + $0x140] sm:$0xff]  ;;  %v5351_v18 = vmax.f32 %v1946_v9, 0.0 }
 0x2f0   : > { %v1823_v36 = vadd.f32 %v1807_v61, %v1770_v51  ;;  %v1703_v21 = vmul.f32 %v4926_v46, %v6220_v8  ;;  %v1601_v37 = vmul.f32 %v4893_v5, %v1581_v39  ;;  %v1735_v47 = vld [vmem:[#allocation2 + $0x13a] sm:$0xff]  ;;  %v1808_v14 = vmul.f32 %v4944_v4, %v1477_v54 }
 0x2f1   : > { %v1860_v57 = vmul.f32 %v4951_v15, %v5234_v13  ;;  %v1582_v19 = vld [vmem:[#allocation2 + $0x15a] sm:$0xff]  ;;  %v1566_v62 = vadd.f32 %v1550_v60, %v1498_v50  ;;  %v1861_v1 = vmul.f32 %v4951_v15, %v5298_v23  ;;  %v6221_v42 = vmax.f32 %v5280_v43, 0.0  ;;  %v1736_v23 = vld [vmem:[#allocation2 + $0x142] sm:$0xff] }
 0x2f2   : > { %v1875_v6 = vadd.f32 %v1859_v40, %v1823_v36  ;;  %v1719_v48 = vadd.f32 %v1703_v21, %v1667_v25  ;;  %v1652_v2 = vmul.f32 %v4918_v26, %v1632_v31  ;;  %v1755_v9 = vmul.f32 %v4933_v34, %v1735_v47  ;;  %v1633_v51 = vld [vmem:[#allocation2 + $0x168] sm:$0xff] }
 0x2f3   : > { %v1704_v61 = vmul.f32 %v4926_v46, %v6221_v42  ;;  %v6222_v40 = vmax.f32 %v5284_v49, 0.0  ;;  %v1925_v13 = vadd.f32 %v5287_v7, %v5289_v56  ;;  %v1602_v52 = vmul.f32 %v4893_v5, %v1582_v19 }
 0x2f4   : > { %v1617_v17 = vadd.f32 %v1601_v37, %v1565_v30  ;;  %v1653_v43 = vmul.f32 %v4918_v26, %v1633_v51  ;;  %v1943_v16 = vadd.f32 %v4986_v10, %v5216_v22  ;;  %v1668_v0 = vadd.f32 %v1652_v2, %v1616_v35  ;;  %v1634_v21 = vld [vmem:[#allocation2 + $0x170] sm:$0xff]  ;;  %v1790_v22 = vld [vmem:[#allocation2 + $0x180] sm:$0xff] }
 0x2f5   : > { %v1862_v54 = vmul.f32 %v4951_v15, %v6222_v40  ;;  %v1771_v36 = vadd.f32 %v1755_v9, %v1719_v48  ;;  %v1705_v8 = vmul.f32 %v4926_v46, %v1383_v38  ;;  %v1863_v49 = vmul.f32 %v4951_v15, %v1386_v24  ;;  %v1737_v60 = vld [vmem:[#allocation2 + $0x16a] sm:$0xff]  ;;  %v1738_v35 = vld [vmem:[#allocation2 + $0x172] sm:$0xff]  ;;  %v1894_v51 = vld [vmem:[#allocation2 + $0x182] sm:$0xff] }
 0x2f6   : > { %v1618_v25 = vadd.f32 %v1602_v52, %v1566_v62  ;;  %v1669_v50 = vadd.f32 %v1653_v43, %v1617_v17  ;;  %v1654_v7 = vmul.f32 %v4918_v26, %v1634_v21  ;;  %v1945_v5 = vadd.f32 %v4986_v10, %v5264_v45  ;;  %v1791_v45 = vld [vmem:[#allocation2 + $0x188] sm:$0xff] }
 0x2f7   : > { %v1720_v56 = vadd.f32 %v1704_v61, %v1668_v0  ;;  %v1756_v30 = vmul.f32 %v4933_v34, %v1736_v23  ;;  %v1824_v37 = vadd.f32 %v1808_v14, %v1771_v36  ;;  %v1947_v31 = vadd.f32 %v4986_v10, %v1925_v13  ;;  %v1895_v0 = vld [vmem:[#allocation2 + $0x18a] sm:$0xff] }
 0x2f8   : > { %v1721_v38 = vadd.f32 %v1705_v8, %v1669_v50  ;;  %v1670_v47 = vadd.f32 %v1654_v7, %v1618_v25  ;;  %v1706_v24 = vmul.f32 %v4926_v46, %v1384_v41  ;;  %v1757_v15 = vmul.f32 %v4933_v34, %v1737_v60 }
 0x2f9   : > { %v1926_v48 = vadd.f32 %v1910_v55, %v1874_v32  ;;  %v1809_v26 = vmul.f32 %v4944_v4, %v1478_v28  ;;  %v1772_v62 = vadd.f32 %v1756_v30, %v1720_v56  ;;  %v1876_v42 = vadd.f32 %v1860_v57, %v1824_v37 }
 0x2fa   : > { %v1810_v61 = vmul.f32 %v4944_v4, %v1790_v22  ;;  %v1722_v2 = vadd.f32 %v1706_v24, %v1670_v47  ;;  %v1758_v14 = vmul.f32 %v4933_v34, %v1738_v35  ;;  %v1773_v9 = vadd.f32 %v1757_v15, %v1721_v38 }
 0x2fb   : > { %v1825_v40 = vadd.f32 %v1809_v26, %v1772_v62  ;;  %v1959_v13 = vmax.f32 %v1943_v16, 0.0  ;;  %v1961_v52 = vmax.f32 %v1945_v5, 0.0  ;;  %v2003_v46 = vcombine.high %v5052_v33, %v5052_v33 }
 0x2fc   : > { %v1912_v41 = vmul.f32 %v4962_v58, %v1581_v39  ;;  %v1811_v55 = vmul.f32 %v4944_v4, %v1791_v45  ;;  %v1774_v32 = vadd.f32 %v1758_v14, %v1722_v2  ;;  %v1826_v28 = vadd.f32 %v1810_v61, %v1773_v9 }
 0x2fd   : > { %v1948_v57 = vadd.f32 %v4986_v10, %v1926_v48  ;;  %v1913_v17 = vmul.f32 %v4962_v58, %v1582_v19  ;;  %v1877_v23 = vadd.f32 %v1861_v1, %v1825_v40  ;;  %v1927_v34 = vadd.f32 %v5339_v44, %v1875_v6 }
 0x2fe   : > { %v1928_v43 = vadd.f32 %v1912_v41, %v1876_v42  ;;  %v1914_v16 = vmul.f32 %v4962_v58, %v1894_v51  ;;  %v1827_v36 = vadd.f32 %v1811_v55, %v1774_v32  ;;  %v1878_v8 = vadd.f32 %v1862_v54, %v1826_v28 }
 0x2ff   : > { %v1929_v21 = vadd.f32 %v1913_v17, %v1877_v23  ;;  %v5394_v39 = vcombine.high %v5058_v27, %v5058_v27  ;;  %v5398_v4 = vrot.slane %v5052_v33, %v5029_v63  ;;  %v2037_v19 = vcombine.high %v5166_v59, %v5166_v59 }
 0x300   : > { %v1930_v1 = vadd.f32 %v1914_v16, %v1878_v8  ;;  %v1879_v44 = vadd.f32 %v1863_v49, %v1827_v36  ;;  %v1963_v6 = vmax.f32 %v1947_v31, 0.0  ;;  %v5403_v60 = vrot.slane %v2003_v46, %v5029_v63 }
 0x301   : > { %6223 = vst [vmem:[#allocation29_spill] sm:$0xff] %v5394_v39  ;;  %6224 = vst [vmem:[#allocation30_spill] sm:$0xff] %v5398_v4  ;;  %v1964_v25 = vmax.f32 %v1948_v57, 0.0  ;;  %v1915_v54 = vmul.f32 %v4962_v58, %v1895_v0  ;;  %v1949_v50 = vadd.f32 %v4986_v10, %v1927_v34  ;;  %v5409_v7 = vrot.slane %v5166_v59, %v5029_v63 }
 0x302   : > { %v1950_v33 = vadd.f32 %v4986_v10, %v1928_v43  ;;  %v5414_v5 = vcombine.high %v5170_v11, %v5170_v11  ;;  %v6227_v49 = vcombine.high %v5198_v53, %v5198_v53  ;;  %v2071_v30 = vcombine.high %v1959_v13, %v1959_v13 }
 0x303   : > { %6225 = vst [vmem:[#allocation31_spill] sm:$0xff] %v5409_v7  ;;  %v1931_v58 = vadd.f32 %v1915_v54, %v1879_v44  ;;  %v1951_v37 = vadd.f32 %v4986_v10, %v1929_v21  ;;  %v5425_v59 = vcombine.high %v5398_v4, %v5398_v4  ;;  %v5428_v22 = vrot.slane %v2037_v19, %v5029_v63 }
 0x304   : > { %6226 = vst [vmem:[#allocation32_spill] sm:$0xff] %v5414_v5  ;;  %v5420_v56 = vrot.slane %v6227_v49, %v5029_v63  ;;  %v1952_v35 = vadd.f32 %v4986_v10, %v1930_v1  ;;  %v5433_v31 = vcombine.high %v5403_v60, %v5403_v60  ;;  %v5437_v53 = vcombine.high %v5181_v20, %v5181_v20 }
 0x305   : > { %6229 = vst [vmem:[#allocation34_spill] sm:$0xff] %v5428_v22  ;;  %v2105_v38 = vcombine.high %v1961_v52, %v1961_v52  ;;  %v1965_v47 = vmax.f32 %v1949_v50, 0.0  ;;  %v5441_v24 = vcombine.high %v5409_v7, %v5409_v7  ;;  %v5445_v15 = vcombine.high %v5238_v29, %v5238_v29 }
 0x306   : > { %6228 = vst [vmem:[#allocation33_spill] sm:$0xff] %v5420_v56  ;;  %6230 = vst [vmem:[#allocation35_spill] sm:$0xff] %v5433_v31  ;;  %v5448_v48 = vrot.slane %v1959_v13, %v5029_v63  ;;  %v1966_v26 = vmax.f32 %v1950_v33, 0.0  ;;  %v5452_v62 = vcombine.high %v5420_v56, %v5420_v56  ;;  %v5455_v42 = vrot.slane %v2071_v30, %v5029_v63 }
 0x307   : > { %6231 = vst [vmem:[#allocation36_spill] sm:$0xff] %v5437_v53  ;;  %6232 = vst [vmem:[#allocation37_spill] sm:$0xff] %v5441_v24  ;;  %v6236_v45 = vcombine.high %v5240_v12, %v5240_v12  ;;  %v1953_v2 = vadd.f32 %v4986_v10, %v1931_v58  ;;  %v1967_v14 = vmax.f32 %v1951_v37, 0.0  ;;  %v5466_v9 = vcombine.high %v5428_v22, %v5428_v22 }
 0x308   : > { %6233 = vst [vmem:[#allocation38_spill] sm:$0xff] %v5445_v15  ;;  %6234 = vst [vmem:[#allocation39_spill] sm:$0xff] %v5448_v48  ;;  %v5469_v40 = vrot.slane %v1961_v52, %v5029_v63  ;;  %v1968_v51 = vmax.f32 %v1952_v35, 0.0  ;;  %v5472_v13 = vrot.slane %v2105_v38, %v5029_v63  ;;  %v2122_v46 = vcombine.high %v5351_v18, %v5351_v18 }
 0x309   : > { %6235 = vst [vmem:[#allocation40_spill] sm:$0xff] %v5452_v62  ;;  %v5461_v61 = vrot.slane %v6236_v45, %v5029_v63  ;;  %v2139_v12 = vcombine.high %v1963_v6, %v1963_v6  ;;  %v5478_v41 = vcombine.high %v5448_v48, %v5448_v48  ;;  %v5482_v10 = vcombine.high %v5273_v3, %v5273_v3 }
 0x30a   : > { %6238 = vst [vmem:[#allocation42_spill] sm:$0xff] %v5469_v40  ;;  %v2156_v55 = vcombine.high %v1964_v25, %v1964_v25  ;;  %v2173_v32 = vcombine.high %v1965_v47, %v1965_v47  ;;  %v5486_v52 = vcombine.high %v5455_v42, %v5455_v42  ;;  %v5494_v57 = vrot.slane %v5351_v18, %v5029_v63 }
 0x30b   : > { %6237 = vst [vmem:[#allocation41_spill] sm:$0xff] %v5461_v61  ;;  %6239 = vst [vmem:[#allocation43_spill] sm:$0xff] %v5478_v41  ;;  %v5490_v28 = vcombine.high %v5461_v61, %v5461_v61  ;;  %v2190_v17 = vcombine.high %v1966_v26, %v1966_v26  ;;  %v1969_v23 = vmax.f32 %v1953_v2, 0.0  ;;  %v5498_v34 = vcombine.high %v5469_v40, %v5469_v40 }
 0x30c   : > { %6240 = vst [vmem:[#allocation44_spill] sm:$0xff] %v5482_v10  ;;  %6241 = vst [vmem:[#allocation45_spill] sm:$0xff] %v5486_v52  ;;  %v5501_v43 = vrot.slane %v1963_v6, %v5029_v63  ;;  %v2207_v0 = vcombine.high %v1967_v14, %v1967_v14  ;;  %v5505_v16 = vcombine.high %v5472_v13, %v5472_v13 }
 0x30d   : > { %6242 = vst [vmem:[#allocation46_spill] sm:$0xff] %v5490_v28  ;;  %6243 = vst [vmem:[#allocation47_spill] sm:$0xff] %v5494_v57  ;;  %v5508_v36 = vrot.slane %v2122_v46, %v5029_v63  ;;  %v5511_v18 = vrot.slane %v2139_v12, %v5029_v63  ;;  %v2224_v8 = vcombine.high %v1968_v51, %v1968_v51 }
 0x30e   : > { %6244 = vst [vmem:[#allocation48_spill] sm:$0xff] %v5498_v34  ;;  %6245 = vst [vmem:[#allocation49_spill] sm:$0xff] %v5501_v43  ;;  %v5514_v21 = vrot.slane %v1964_v25, %v5029_v63  ;;  %v5517_v19 = vrot.slane %v2156_v55, %v5029_v63  ;;  %v5520_v1 = vrot.slane %v1965_v47, %v5029_v63  ;;  %v6264_v55 = vld [vmem:[#allocation20_spill] sm:$0xff] }
 0x30f   : > { %6246 = vst [vmem:[#allocation50_spill] sm:$0xff] %v5505_v16  ;;  %6247 = vst [vmem:[#allocation51_spill] sm:$0xff] %v5508_v36  ;;  %v5523_v44 = vrot.slane %v2173_v32, %v5029_v63  ;;  %v5527_v6 = vcombine.high %v5494_v57, %v5494_v57  ;;  %v5530_v54 = vrot.slane %v1966_v26, %v5029_v63  ;;  %v6265_v32 = vld [vmem:[#allocation22_spill] sm:$0xff] }
 0x310   : > { %6248 = vst [vmem:[#allocation52_spill] sm:$0xff] %v5514_v21  ;;  %6249 = vst [vmem:[#allocation53_spill] sm:$0xff] %v5517_v19  ;;  %v5533_v50 = vrot.slane %v2190_v17, %v5029_v63  ;;  %v5536_v25 = vrot.slane %v1967_v14, %v5029_v63  ;;  %v5540_v33 = vcombine.high %v5501_v43, %v5501_v43 }
 0x311   : > { %6250 = vst [vmem:[#allocation54_spill] sm:$0xff] %v5520_v1  ;;  %6251 = vst [vmem:[#allocation55_spill] sm:$0xff] %v5523_v44  ;;  %v5543_v49 = vrot.slane %v2207_v0, %v5029_v63  ;;  %v5546_v30 = vrot.slane %v1968_v51, %v5029_v63  ;;  %v2241_v58 = vcombine.high %v1969_v23, %v1969_v23 }
 0x312   : > { %6252 = vst [vmem:[#allocation56_spill] sm:$0xff] %v5527_v6  ;;  %6253 = vst [vmem:[#allocation57_spill] sm:$0xff] %v5530_v54  ;;  %v5550_v37 = vcombine.high %v5508_v36, %v5508_v36  ;;  %v5554_v35 = vcombine.high %v5511_v18, %v5511_v18  ;;  %v5557_v38 = vrot.slane %v2224_v8, %v5029_v63 }
 0x313   : > { %6254 = vst [vmem:[#allocation58_spill] sm:$0xff] %v5540_v33  ;;  %6255 = vst [vmem:[#allocation59_spill] sm:$0xff] %v5543_v49  ;;  %v5560_v47 = vrot.slane %v1969_v23, %v5029_v63  ;;  %v5564_v26 = vcombine.high %v5514_v21, %v5514_v21  ;;  %v5568_v45 = vcombine.high %v5517_v19, %v5517_v19 }
 0x314   : > { %6256 = vst [vmem:[#allocation60_spill] sm:$0xff] %v5546_v30  ;;  %6257 = vst [vmem:[#allocation61_spill] sm:$0xff] %v5550_v37  ;;  %v5572_v2 = vcombine.high %v5520_v1, %v5520_v1  ;;  %v5576_v14 = vcombine.high %v5523_v44, %v5523_v44  ;;  %v5580_v51 = vcombine.high %v5530_v54, %v5530_v54 }
 0x315   : > { %6258 = vst [vmem:[#allocation62_spill] sm:$0xff] %v5554_v35  ;;  %6259 = vst [vmem:[#allocation63_spill] sm:$0xff] %v5560_v47  ;;  %v5584_v46 = vcombine.high %v5533_v50, %v5533_v50  ;;  %v5588_v12 = vcombine.high %v5536_v25, %v5536_v25  ;;  %v2325_v17 = vrot.slane %v6265_v32, %v6264_v55 }
 0x316   : > { %6260 = vst [vmem:[#allocation64_spill] sm:$0xff] %v5564_v26  ;;  %6261 = vst [vmem:[#allocation65_spill] sm:$0xff] %v5568_v45  ;;  %v5594_v23 = vcombine.high %v5543_v49, %v5543_v49  ;;  %v5598_v0 = vcombine.high %v5546_v30, %v5546_v30  ;;  %v5601_v8 = vrot.slane %v2241_v58, %v5029_v63 }
 0x317   : > { %6262 = vst [vmem:[#allocation66_spill] sm:$0xff] %v5576_v14  ;;  %6263 = vst [vmem:[#allocation67_spill] sm:$0xff] %v5580_v51  ;;  %v6268_v14 = vld [vmem:[#allocation25_spill] sm:$0xff]  ;;  %v5607_v44 = vcombine.high %v5557_v38, %v5557_v38  ;;  %v5611_v32 = vcombine.high %v5560_v47, %v5560_v47  ;;  %v2337_v49 = vrot.slane %v5394_v39, %v6264_v55 }
 0x318   : > { %6266 = vst [vmem:[#allocation20_spill] sm:$0xff] %v5594_v23  ;;  %6267 = vst [vmem:[#allocation68_spill] sm:$0xff] %v5601_v8  ;;  %v2329_v35 = vrot.slane %v6268_v14, %v6264_v55  ;;  %v2333_v23 = vrot.slane %v5058_v27, %v6264_v55  ;;  %v2341_v58 = vrot.slane %v5398_v4, %v6264_v55 }
 0x319   : > { %6269 = vst [vmem:[#allocation69_spill] sm:$0xff] %v5611_v32  ;;  %v2357_v27 = vrot.slane %v5170_v11, %v6264_v55  ;;  %v2361_v39 = vrot.slane %v5414_v5, %v6264_v55  ;;  %v2365_v32 = vrot.slane %v5181_v20, %v6264_v55  ;;  %v2369_v4 = vrot.slane %v5437_v53, %v6264_v55 }
 0x31a   : > { %v2373_v63 = vrot.slane %v5409_v7, %v6264_v55  ;;  %v2377_v8 = vrot.slane %v5441_v24, %v6264_v55  ;;  %v2381_v14 = vrot.slane %v5428_v22, %v6264_v55  ;;  %v2389_v20 = vrot.slane %v5238_v29, %v6264_v55 }
 0x31b   : > { %v2393_v53 = vrot.slane %v5445_v15, %v6264_v55  ;;  %v2397_v5 = vrot.slane %v5420_v56, %v6264_v55  ;;  %v2401_v7 = vrot.slane %v5452_v62, %v6264_v55  ;;  %v2405_v24 = vrot.slane %v5448_v48, %v6264_v55 }
 0x31c   : > { %v2409_v22 = vrot.slane %v5478_v41, %v6264_v55  ;;  %v2421_v15 = vrot.slane %v5273_v3, %v6264_v55  ;;  %v2425_v56 = vrot.slane %v5482_v10, %v6264_v55  ;;  %v2429_v62 = vrot.slane %v5461_v61, %v6264_v55 }
 0x31d   : > { %v2433_v48 = vrot.slane %v5490_v28, %v6264_v55  ;;  %v2437_v41 = vrot.slane %v5469_v40, %v6264_v55  ;;  %v2441_v11 = vrot.slane %v5498_v34, %v6264_v55  ;;  %v2453_v10 = vrot.slane %v5494_v57, %v6264_v55 }
 0x31e   : > { %v2457_v61 = vrot.slane %v5527_v6, %v6264_v55  ;;  %v2461_v28 = vrot.slane %v5508_v36, %v6264_v55  ;;  %v2465_v40 = vrot.slane %v5550_v37, %v6264_v55  ;;  %v2469_v34 = vrot.slane %v5501_v43, %v6264_v55 }
 0x31f   : > { %v2473_v29 = vrot.slane %v5540_v33, %v6264_v55  ;;  %v2485_v3 = vrot.slane %v5514_v21, %v6264_v55  ;;  %v2489_v57 = vrot.slane %v5564_v26, %v6264_v55  ;;  %v2493_v6 = vrot.slane %v5517_v19, %v6264_v55 }
 0x320   : > { %v2497_v36 = vrot.slane %v5568_v45, %v6264_v55  ;;  %v2501_v37 = vrot.slane %v5520_v1, %v6264_v55  ;;  %v2517_v43 = vrot.slane %v5530_v54, %v6264_v55  ;;  %v2521_v33 = vrot.slane %v5580_v51, %v6264_v55 }
 0x321   : > { %v2579_v21 = vsel %vm2578_vm1, %v2329_v35, %v2325_v17  ;;  %v2592_v16 = vsel %vm2578_vm1, %v2361_v39, %v2357_v27  ;;  %v2599_v26 = vsel %vm2578_vm1, %v2393_v53, %v2389_v20  ;;  %v2606_v1 = vsel %vm2578_vm1, %v2425_v56, %v2421_v15 }
 0x322   : > { %v2581_v19 = vsel %vm2580_vm2, %v2333_v23, %v2579_v21  ;;  %v2593_v52 = vsel %vm2580_vm2, %v2365_v32, %v2592_v16  ;;  %v2600_v45 = vsel %vm2580_vm2, %v2397_v5, %v2599_v26  ;;  %v2607_v35 = vsel %vm2580_vm2, %v2429_v62, %v2606_v1 }
 0x323   : > { %v2583_v31 = vsel %vm2582_vm3, %v2337_v49, %v2581_v19  ;;  %v2594_v54 = vsel %vm2582_vm3, %v2369_v4, %v2593_v52  ;;  %v2601_v51 = vsel %vm2582_vm3, %v2401_v7, %v2600_v45  ;;  %v2608_v53 = vsel %vm2582_vm3, %v2433_v48, %v2607_v35 }
 0x324   : > { %v2585_v27 = vsel %vm2584_vm4, %v2341_v58, %v2583_v31  ;;  %v2595_v20 = vsel %vm2584_vm4, %v2373_v63, %v2594_v54  ;;  %v2602_v39 = vsel %vm2584_vm4, %v2405_v24, %v2601_v51  ;;  %v2525_v5 = vrot.slane %v5533_v50, %v6264_v55 }
 0x325   : > { %v2553_v56 = vrot.slane %v5598_v0, %v6264_v55  ;;  %v2596_v4 = vsel %vm2586_vm5, %v2377_v8, %v2595_v20  ;;  %v2609_v7 = vsel %vm2584_vm4, %v2437_v41, %v2608_v53  ;;  %v2529_v15 = vrot.slane %v5584_v46, %v6264_v55 }
 0x326   : > { %v2533_v63 = vrot.slane %v5536_v25, %v6264_v55  ;;  %v2549_v31 = vrot.slane %v5546_v30, %v6264_v55  ;;  %v2557_v24 = vrot.slane %v5557_v38, %v6264_v55  ;;  %v2561_v48 = vrot.slane %v5607_v44, %v6264_v55 }
 0x327   : > { %v6270_v62 = vrot.slane %v5425_v59, %v6264_v55  ;;  %v2597_v52 = vsel %vm2588_vm6, %v2381_v14, %v2596_v4  ;;  %v2603_v16 = vsel %vm2586_vm5, %v2409_v22, %v2602_v39  ;;  %v2610_v21 = vsel %vm2586_vm5, %v2441_v11, %v2609_v7  ;;  %v6277_v39 = vld [vmem:[#allocation45_spill] sm:$0xff]  ;;  %v6279_v4 = vld [vmem:[#allocation55_spill] sm:$0xff] }
 0x328   : > { %v2613_v19 = vsel %vm2578_vm1, %v2457_v61, %v2453_v10  ;;  %v2620_v1 = vsel %vm2578_vm1, %v2489_v57, %v2485_v3  ;;  %v2627_v54 = vsel %vm2578_vm1, %v2521_v33, %v2517_v43  ;;  %v2634_v51 = vsel %vm2578_vm1, %v2553_v56, %v2549_v31 }
 0x329   : > { %v2587_v41 = vsel %vm2586_vm5, %v6270_v62, %v2585_v27  ;;  %v2614_v49 = vsel %vm2580_vm2, %v2461_v28, %v2613_v19  ;;  %v2621_v26 = vsel %vm2580_vm2, %v2493_v6, %v2620_v1  ;;  %v2628_v45 = vsel %vm2580_vm2, %v2525_v5, %v2627_v54  ;;  %v6275_v27 = vld [vmem:[#allocation35_spill] sm:$0xff]  ;;  %v6281_v62 = vld [vmem:[#allocation69_spill] sm:$0xff] }
 0x32a   : > { %v2615_v14 = vsel %vm2582_vm3, %v2465_v40, %v2614_v49  ;;  %v2622_v22 = vsel %vm2582_vm3, %v2497_v36, %v2621_v26  ;;  %v2629_v11 = vsel %vm2582_vm3, %v2529_v15, %v2628_v45  ;;  %v2635_v61 = vsel %vm2580_vm2, %v2557_v24, %v2634_v51  ;;  %v6280_v24 = vld [vmem:[#allocation62_spill] sm:$0xff]  ;;  %v6284_v1 = vld [vmem:[#allocation59_spill] sm:$0xff]  ;;  %v6285_v45 = vld [vmem:[#allocation68_spill] sm:$0xff] }
 0x32b   : > { %v6271_v3 = vrot.slane %v5403_v60, %v6264_v55  ;;  %v6272_v28 = vrot.slane %v5455_v42, %v6264_v55  ;;  %v2616_v43 = vsel %vm2584_vm4, %v2469_v34, %v2615_v14  ;;  %v2623_v40 = vsel %vm2584_vm4, %v2501_v37, %v2622_v22  ;;  %v6287_v14 = vld [vmem:[#allocation66_spill] sm:$0xff] }
 0x32c   : > { %v2505_v36 = vrot.slane %v5572_v2, %v6264_v55  ;;  %v6273_v6 = vrot.slane %v5466_v9, %v6264_v55  ;;  %v2617_v32 = vsel %vm2586_vm5, %v2473_v29, %v2616_v43  ;;  %v2636_v17 = vsel %vm2582_vm3, %v2561_v48, %v2635_v61 }
 0x32d   : > { %v2589_v10 = vsel %vm2588_vm6, %v6271_v3, %v2587_v41  ;;  %v2604_v57 = vsel %vm2588_vm6, %v6272_v28, %v2603_v16  ;;  %v2477_v23 = vrot.slane %v5511_v18, %v6264_v55  ;;  %v2565_v34 = vrot.slane %v5560_v47, %v6264_v55 }
 0x32e   : > { %v2598_v33 = vsel %vm2590_vm7, %v6273_v6, %v2597_v52  ;;  %v6274_v37 = vrot.slane %v5472_v13, %v6264_v55  ;;  %v2630_v58 = vsel %vm2584_vm4, %v2533_v63, %v2629_v11  ;;  %v2537_v35 = vrot.slane %v5588_v12, %v6264_v55  ;;  %v6282_v52 = vld [vmem:[#allocation50_spill] sm:$0xff] }
 0x32f   : > { %v6276_v29 = vrot.slane %v6275_v27, %v6264_v55  ;;  %v6278_v53 = vrot.slane %v6277_v39, %v6264_v55  ;;  %v2624_v56 = vsel %vm2586_vm5, %v2505_v36, %v2623_v40  ;;  %v2509_v7 = vrot.slane %v6279_v4, %v6264_v55 }
 0x330   : > { %v2611_v8 = vsel %vm2588_vm6, %v6274_v37, %v2610_v21  ;;  %v2618_v15 = vsel %vm2588_vm6, %v2477_v23, %v2617_v32  ;;  %v2637_v63 = vsel %vm2584_vm4, %v2565_v34, %v2636_v17  ;;  %v2481_v48 = vrot.slane %v6280_v24, %v6264_v55 }
 0x331   : > { %v2591_v20 = vsel %vm2590_vm7, %v6276_v29, %v2589_v10  ;;  %v2605_v5 = vsel %vm2590_vm7, %v6278_v53, %v2604_v57  ;;  %v2569_v41 = vrot.slane %v6281_v62, %v6264_v55  ;;  %v6283_v16 = vrot.slane %v6282_v52, %v6264_v55  ;;  %v6288_v57 = vld [vmem:[#allocation20_spill] sm:$0xff] }
 0x332   : > { %v2649_v31 = vadd.f32 %v2598_v33, %v2591_v20  ;;  %v2631_v19 = vsel %vm2586_vm5, %v2537_v35, %v2630_v58  ;;  %v2541_v54 = vrot.slane %v6284_v1, %v6264_v55  ;;  %v2625_v49 = vsel %vm2588_vm6, %v2509_v7, %v2624_v56  ;;  %v1105_v7 = vld [vmem:[%s6289_s15] sm:$0x1]  ;;  %s6335_s15 = sld [smem:[#allocation75_spill]] }
 0x333   : > { %v2612_v21 = vsel %vm2590_vm7, %v6283_v16, %v2611_v8  ;;  %v5804_v51 = vcombine.high %v6285_v45, %v6285_v45  ;;  %v2513_v22 = vrot.slane %v6287_v14, %v6264_v55  ;;  %v2619_v11 = vsel %vm2590_vm7, %v2481_v48, %v2618_v15 }
 0x334   : > { %v2650_v26 = vadd.f32 %v2649_v31, %v2605_v5  ;;  %v2638_v61 = vsel %vm2586_vm5, %v2569_v41, %v2637_v63  ;;  %v2573_v3 = vrot.slane %v6285_v45, %v6264_v55  ;;  %v2632_v10 = vsel %vm2588_vm6, %v2541_v54, %v2631_v19  ;;  %v4083_v19 = vld [vmem:[#allocation12] sm:$0xff]   ;;  %v4084_v54 = vld [vmem:[#allocation12 + $0x8] sm:$0xff]  }
 0x335   : > { %6286 = vst [vmem:[#allocation35_spill] sm:$0xff] %v5804_v51  ;;  %v2545_v43 = vrot.slane %v6288_v57, %v6264_v55  ;;  %v2626_v40 = vsel %vm2590_vm7, %v2513_v22, %v2625_v49  ;;  %v2577_v33 = vrot.slane %v5804_v51, %v6264_v55  ;;  %3891 = vmatprep.subr.bf16.mxu0 %v4083_v19  ;;  %v4085_v49 = vld [vmem:[#allocation12 + $0x10] sm:$0xff]   ;;  %v4087_v22 = vld [vmem:[#allocation12 + $0x20] sm:$0xff]  }
 0x336   : > { %v2651_v28 = vadd.f32 %v2650_v26, %v2612_v21  ;;  %v2639_v36 = vsel %vm2588_vm6, %v2573_v3, %v2638_v61  ;;  %v4086_v26 = vld [vmem:[#allocation12 + $0x18] sm:$0xff]   ;;  %v4089_v61 = vld [vmem:[#allocation12 + $0x30] sm:$0xff]  }
 0x337   : > { %v2633_v32 = vsel %vm2590_vm7, %v2545_v43, %v2632_v10  ;;  %v2640_v23 = vsel %vm2590_vm7, %v2577_v33, %v2639_v36  ;;  %v4090_v3 = vld [vmem:[#allocation12 + $0x38] sm:$0xff]   ;;  %v1122_v10 = vld [vmem:[%s6290_s10] sm:$0x1]  ;;  %s4353_s10 = smov [#allocation14]  }
 0x338   : > { %v2652_v6 = vadd.f32 %v2651_v28, %v2619_v11  ;;  %v4088_v11 = vld [vmem:[#allocation12 + $0x28] sm:$0xff]   ;;  %s6056_s13 = scalar_lea.hbm %s6335_s15, %s3653_s20  ;;  %s4266_s1 = sshll.u32 %s4353_s10, 4  ;;  %s4267_s1 = int_to_ptr.vmem [resolvable:$false] %s4266_s1 }
 0x339   : > { %s4268_s18 = scalar_lea.vmem %s4267_s1, 1024  ;;  %p4269_p13 = scmp.lt.s32.totalorder %s6051_s22, %s4267_s1 }
 0x33a   : > { %v2653_v17 = vadd.f32 %v2652_v6, %v2626_v40  ;;  %p4270_p0 = scmp.lt.s32.totalorder %s4268_s18, %s4262_s12 }
 0x33c   : > { %v2654_v34 = vadd.f32 %v2653_v17, %v2633_v32  ;;  %p4271_p2 = por %p4270_p0, %p4269_p13 }
 0x33e   : > { %v2655_v37 = vadd.f32 %v2654_v34, %v2640_v23  ;;  %p4272_p8 = pnand %p4271_p2, %p4265_p1 }
 0x340   : > { %v2656_v8 = vrot.slane %v2655_v37, 4 }
 0x342   : > { %v2657_v58 = vadd.f32 %v2656_v8, %v2655_v37  ;;  %v6291_v8 = vld [vmem:[#allocation21_spill] sm:$0xff] }
 0x344   : > { %v2658_v35 = vrot.slane %v2657_v58, 2 }
 0x346   : > { %v2659_v29 = vadd.f32 %v2658_v35, %v2657_v58 }
 0x348   : > { %v2660_v20 = vrot.slane %v2659_v29, 1 }
 0x34a   : > { %v2661_v53 = vadd.f32 %v2660_v20, %v2659_v29 }
 0x34c   : > { %v2663_v5 = vmul.f32 0.015625, %v2661_v53 }
 0x34e   : > { %v2664_v56 = vpack.c.bf16 %v2663_v5, %v2663_v5 }
 0x350   : > { %3868 = vmatmul.mubr.bf16.vlgmr.msra.gmra.mrb[16].mxu0 %v2664_v56  ;;  %v6292_v56 = vld [vmem:[#allocation25_spill] sm:$0xff] }
 0x351   : > { %3892 = vmatpush3.bf16.msra.mxu0 %v4083_v19 }
 0x352   : > { %3893 = vmatprep.subr.bf16.mxu0 %v4084_v54 }
 0x355   : > { %3894 = vmatpush3.bf16.msra.mxu0 %v4084_v54 }
 0x356   : > { %3895 = vmatprep.subr.bf16.mxu0 %v4085_v49 }
 0x359   : > { %3896 = vmatpush3.bf16.msra.mxu0 %v4085_v49  ;;  %v6297_v49 = vld [vmem:[#allocation29_spill] sm:$0xff] }
 0x35a   : > { %3897 = vmatprep.subr.bf16.mxu0 %v4086_v26 }
 0x35d   : > { %3898 = vmatpush3.bf16.msra.mxu0 %v4086_v26 }
 0x35e   : > { %3899 = vmatprep.subr.bf16.mxu0 %v4087_v22 }
 0x361   : > { %3900 = vmatpush3.bf16.msra.mxu0 %v4087_v22  ;;  %v6298_v22 = vld [vmem:[#allocation30_spill] sm:$0xff] }
 0x362   : > { %3901 = vmatprep.subr.bf16.mxu0 %v4088_v11 }
 0x365   : > { %3902 = vmatpush3.bf16.msra.mxu0 %v4088_v11 }
 0x366   : > { %3903 = vmatprep.subr.bf16.mxu0 %v4089_v61 }
 0x369   : > { %3904 = vmatpush3.bf16.msra.mxu0 %v4089_v61  ;;  %v6299_v61 = vld [vmem:[#allocation32_spill] sm:$0xff] }
 0x36a   : > { %3905 = vmatprep.subr.bf16.mxu0 %v4090_v3 }
 0x36d   : > { %3906 = vmatpush3.bf16.msra.mxu0 %v4090_v3 }
 0x423   : > { %v2747_v15 = vpop.f32.mrb[16].mxu0 }
 0x424   : > { %v2748_v63 = vadd.f32 %v2747_v15, %v1105_v7  ;;  %v3869_v31 = vpop.f32.mrb[17].mxu0  ;;  %v6293_v15 = vld [vmem:[#allocation22_spill] sm:$0xff] }
 0x425   : > { %v2750_v48 = vpop.f32.mrb[18].mxu0  ;;  %v6294_v31 = vld [vmem:[#allocation23_spill] sm:$0xff] }
 0x426   : > { %v2753_v41 = vmax.f32 %v2748_v63, 0.0  ;;  %v3870_v16 = vpop.f32.mrb[19].mxu0 }
 0x428   : > { %v2754_v21 = vpack.c.bf16 %v2753_v41, %v2753_v41  ;;  %v6295_v41 = vld [vmem:[#allocation24_spill] sm:$0xff] }
 0x42a   : > { %3888 = vmatmul.mubr.bf16.vlgmr.msra.gmra.mrb[48].mxu1 %v2754_v21  ;;  %v6296_v21 = vld [vmem:[#allocation27_spill] sm:$0xff] }
 0x4fd   : > { %v2837_v28 = vpop.f32.mrb[48].mxu1 }
 0x4fe   : > { %v2838_v43 = vadd.f32 %v2837_v28, %v1122_v10  ;;  %v3889_v40 = vpop.f32.mrb[49].mxu1 }
 0x4ff   : > { %v2840_v36 = vpop.f32.mrb[50].mxu1 }
 0x500   : > { %v2843_v6 = vadd.f32 3.0, %v2838_v43  ;;  %v3890_v33 = vpop.f32.mrb[51].mxu1  ;;  %v6300_v43 = vld [vmem:[#allocation26_spill] sm:$0xff]  ;;  %v6301_v36 = vld [vmem:[#allocation36_spill] sm:$0xff] }
 0x502   : > { %v2844_v32 = vmax.f32 %v2843_v6, 0.0 }
 0x504   : > { %v2845_v17 = vmin.f32 %v2844_v32, 6.0  ;;  %v6302_v32 = vld [vmem:[#allocation31_spill] sm:$0xff] }
 0x506   : > { %v2846_v23 = vmul.f32 0.16666667, %v2845_v17 }
 0x508   : > { %v2850_v34 = vrot.slane %v2846_v23, %v6264_v55 }
 0x50a   : > { %v2852_v37 = vcombine.high %v2850_v34, %v2850_v34  ;;  %v5829_v58 = vrot.slane %v2850_v34, %v6291_v8  ;;  %v6303_v34 = vld [vmem:[#allocation28_spill] sm:$0xff] }
 0x50c   : > { %v5832_v35 = vrot.slane %v2852_v37, %v6291_v8  ;;  %v5836_v29 = vcombine.high %v5829_v58, %v5829_v58  ;;  %v5839_v20 = vrot.slane %v5829_v58, 1  ;;  %v2881_v63 = vmul.f32 %v5829_v58, %v6293_v15  ;;  %v6305_v8 = vld [vmem:[#allocation34_spill] sm:$0xff] }
 0x50d   : > { %v2889_v16 = vmul.f32 %v5829_v58, %v6295_v41  ;;  %v5861_v19 = vmul.f32 %v5829_v58, %v6296_v21  ;;  %v5886_v37 = vmul.f32 %v5829_v58, %v6303_v34 }
 0x50e   : > { %v5843_v53 = vcombine.high %v5832_v35, %v5832_v35  ;;  %v5846_v55 = vrot.slane %v5836_v29, 1  ;;  %v5849_v5 = vrot.slane %v5832_v35, 1  ;;  %v2882_v7 = vmul.f32 %v5839_v20, %v6292_v56 }
 0x50f   : > { %v2883_v48 = vmul.f32 %v5836_v29, %v6294_v31  ;;  %v2885_v11 = vmul.f32 %v5832_v35, %v6298_v22  ;;  %v2890_v3 = vmul.f32 %v5839_v20, %v6299_v61  ;;  %v2891_v40 = vmul.f32 %v5836_v29, %v6300_v43 }
 0x510   : > { %v5864_v54 = vrot.slane %v5843_v53, 1  ;;  %v2884_v26 = vmul.f32 %v5846_v55, %v6297_v49  ;;  %v2886_v10 = vmul.f32 %v5849_v5, %v5425_v59  ;;  %v2887_v28 = vmul.f32 %v5843_v53, %v5403_v60  ;;  %v6304_v59 = vld [vmem:[#allocation37_spill] sm:$0xff] }
 0x511   : > { %v2892_v6 = vmul.f32 %v5846_v55, %v6301_v36  ;;  %v2893_v17 = vmul.f32 %v5832_v35, %v6302_v32  ;;  %v2946_v23 = vpack.c.bf16 %v2882_v7, %v2882_v7  ;;  %v2894_v60 = vmul.f32 %v5849_v5, %v6304_v59 }
 0x512   : > { %v2888_v33 = vmul.f32 %v5864_v54, %v6275_v27  ;;  %v2895_v56 = vmul.f32 %v5843_v53, %v6305_v8  ;;  %v2947_v15 = vpack.c.bf16 %v2883_v48, %v2883_v48  ;;  %v2948_v31 = vpack.c.bf16 %v2884_v26, %v2884_v26 }
 0x513   : > { %v2896_v41 = vmul.f32 %v5864_v54, %v5466_v9  ;;  %v2945_v27 = vpack.c.bf16 %v2881_v63, %v2881_v63  ;;  %v2949_v21 = vpack.c.bf16 %v2885_v11, %v2885_v11  ;;  %v2954_v49 = vpack.c.bf16 %v2890_v3, %v2890_v3 }
 0x514   : > { %v2950_v22 = vpack.c.bf16 %v2886_v10, %v2886_v10  ;;  %v2951_v7 = vpack.c.bf16 %v2887_v28, %v2887_v28  ;;  %v2955_v61 = vpack.c.bf16 %v2891_v40, %v2891_v40  ;;  %v2956_v43 = vpack.c.bf16 %v2892_v6, %v2892_v6 }
 0x515   : > { %v2952_v36 = vpack.c.bf16 %v2888_v33, %v2888_v33  ;;  %v2953_v32 = vpack.c.bf16 %v2889_v16, %v2889_v16  ;;  %v2957_v34 = vpack.c.bf16 %v2893_v17, %v2893_v17  ;;  %v3080_v51 = vunpack.c.l.b16 %v2946_v23 }
 0x516   : > { %v2958_v59 = vpack.c.bf16 %v2894_v60, %v2894_v60  ;;  %v2959_v45 = vpack.c.bf16 %v2895_v56, %v2895_v56  ;;  %v3081_v62 = vunpack.c.l.b16 %v2947_v15  ;;  %v3082_v8 = vunpack.c.l.b16 %v2948_v31 }
 0x517   : > { %v2960_v48 = vpack.c.bf16 %v2896_v41, %v2896_v41  ;;  %v3079_v26 = vunpack.c.l.b16 %v2945_v27  ;;  %v3083_v47 = vunpack.c.l.b16 %v2949_v21  ;;  %v3088_v30 = vunpack.c.l.b16 %v2954_v49 }
 0x518   : > { %v3084_v9 = vunpack.c.l.b16 %v2950_v22  ;;  %v3085_v63 = vunpack.c.l.b16 %v2951_v7  ;;  %v3089_v11 = vunpack.c.l.b16 %v2955_v61  ;;  %v3090_v3 = vunpack.c.l.b16 %v2956_v43 }
 0x519   : > { %v3086_v10 = vunpack.c.l.b16 %v2952_v36  ;;  %v3087_v28 = vunpack.c.l.b16 %v2953_v32  ;;  %v3143_v40 = vrot.slane %v3080_v51, 7  ;;  %v3145_v6 = vrot.slane %v3081_v62, 6 }
 0x51a   : > { %v3091_v33 = vunpack.c.l.b16 %v2957_v34  ;;  %v3092_v16 = vunpack.c.l.b16 %v2958_v59  ;;  %v3093_v17 = vunpack.c.l.b16 %v2959_v45  ;;  %v3147_v23 = vrot.slane %v3082_v8, 5 }
 0x51b   : > { %v3094_v60 = vunpack.c.l.b16 %v2960_v48  ;;  %v3144_v56 = vsel %vm2578_vm1, %v3143_v40, %v3079_v26  ;;  %v3157_v15 = vrot.slane %v3088_v30, 7  ;;  %v3159_v31 = vrot.slane %v3089_v11, 6  ;;  %v6306_v48 = vld [vmem:[#allocation38_spill] sm:$0xff]  ;;  %v6309_v40 = vld [vmem:[#allocation39_spill] sm:$0xff] }
 0x51c   : > { %v3146_v41 = vsel %vm2580_vm2, %v3145_v6, %v3144_v56  ;;  %v3149_v27 = vrot.slane %v3083_v47, 4  ;;  %v3151_v21 = vrot.slane %v3084_v9, 3  ;;  %v3161_v49 = vrot.slane %v3090_v3, 5  ;;  %v6307_v9 = vld [vmem:[#allocation33_spill] sm:$0xff] }
 0x51d   : > { %v3148_v22 = vsel %vm2582_vm3, %v3147_v23, %v3146_v41  ;;  %v3153_v7 = vrot.slane %v3085_v63, 2  ;;  %v3155_v61 = vrot.slane %v3086_v10, 1  ;;  %v3158_v62 = vsel %vm2578_vm1, %v3157_v15, %v3087_v28  ;;  %v6308_v10 = vld [vmem:[#allocation40_spill] sm:$0xff]  ;;  %v6312_v56 = vld [vmem:[#allocation41_spill] sm:$0xff] }
 0x51e   : > { %v3150_v51 = vsel %vm2584_vm4, %v3149_v27, %v3148_v22  ;;  %v3160_v45 = vsel %vm2580_vm2, %v3159_v31, %v3158_v62  ;;  %v3163_v43 = vrot.slane %v3091_v33, 4  ;;  %v3165_v36 = vrot.slane %v3092_v16, 3  ;;  %v6310_v16 = vld [vmem:[#allocation43_spill] sm:$0xff]  ;;  %v6311_v23 = vld [vmem:[#allocation44_spill] sm:$0xff] }
 0x51f   : > { %v3152_v30 = vsel %vm2586_vm5, %v3151_v21, %v3150_v51  ;;  %v3162_v32 = vsel %vm2582_vm3, %v3161_v49, %v3160_v45  ;;  %v3167_v34 = vrot.slane %v3093_v17, 2  ;;  %v3169_v47 = vrot.slane %v3094_v60, 1  ;;  %v6313_v21 = vld [vmem:[#allocation46_spill] sm:$0xff]  ;;  %v6315_v45 = vld [vmem:[#allocation48_spill] sm:$0xff] }
 0x520   : > { %v3154_v59 = vsel %vm2588_vm6, %v3153_v7, %v3152_v30  ;;  %v3164_v8 = vsel %vm2584_vm4, %v3163_v43, %v3162_v32  ;;  %v2898_v26 = vmul.f32 %v5839_v20, %v6306_v48  ;;  %v2899_v63 = vmul.f32 %v5836_v29, %v6307_v9  ;;  %v6314_v7 = vld [vmem:[#allocation42_spill] sm:$0xff] }
 0x521   : > { %v3156_v11 = vsel %vm2590_vm7, %v3155_v61, %v3154_v59  ;;  %v3166_v3 = vsel %vm2586_vm5, %v3165_v36, %v3164_v8  ;;  %v2900_v28 = vmul.f32 %v5846_v55, %v6308_v10  ;;  %v2901_v6 = vmul.f32 %v5832_v35, %v6309_v40 }
 0x522   : > { %v3168_v33 = vsel %vm2588_vm6, %v3167_v34, %v3166_v3  ;;  %v2902_v17 = vmul.f32 %v5849_v5, %v6310_v16  ;;  %v2906_v60 = vmul.f32 %v5839_v20, %v6311_v23  ;;  %v2907_v15 = vmul.f32 %v5836_v29, %v6312_v56 }
 0x523   : > { %v3170_v31 = vsel %vm2590_vm7, %v3169_v47, %v3168_v33  ;;  %v2903_v41 = vmul.f32 %v5843_v53, %v5455_v42  ;;  %v2904_v27 = vmul.f32 %v5864_v54, %v6277_v39  ;;  %v2908_v49 = vmul.f32 %v5846_v55, %v6313_v21 }
 0x524   : > { %v3255_v22 = vpack.c.b16 %v3170_v31, %v3156_v11  ;;  %v2909_v61 = vmul.f32 %v5832_v35, %v6314_v7  ;;  %v2962_v62 = vpack.c.bf16 %v2898_v26, %v2898_v26  ;;  %v2963_v51 = vpack.c.bf16 %v2899_v63, %v2899_v63 }
 0x525   : > { %v2910_v43 = vmul.f32 %v5849_v5, %v6315_v45  ;;  %v2911_v36 = vmul.f32 %v5843_v53, %v5472_v13  ;;  %v2912_v42 = vmul.f32 %v5864_v54, %v6282_v52  ;;  %v2964_v30 = vpack.c.bf16 %v2900_v28, %v2900_v28 }
 0x526   : > { %3907 = vmatprep.mubr.bf16.mxu0 %v3255_v22  ;;  %v2961_v39 = vpack.c.bf16 %v5861_v19, %v5861_v19  ;;  %v2965_v32 = vpack.c.bf16 %v2901_v6, %v2901_v6  ;;  %v2970_v34 = vpack.c.bf16 %v2906_v60, %v2906_v60  ;;  %v2971_v47 = vpack.c.bf16 %v2907_v15, %v2907_v15 }
 0x527   : > { %v2966_v59 = vpack.c.bf16 %v2902_v17, %v2902_v17  ;;  %v2967_v8 = vpack.c.bf16 %v2903_v41, %v2903_v41  ;;  %v2968_v48 = vpack.c.bf16 %v2904_v27, %v2904_v27  ;;  %v2972_v26 = vpack.c.bf16 %v2908_v49, %v2908_v49 }
 0x528   : > { %v2969_v9 = vpack.c.bf16 %v5886_v37, %v5886_v37  ;;  %v2973_v63 = vpack.c.bf16 %v2909_v61, %v2909_v61  ;;  %v3096_v13 = vunpack.c.l.b16 %v2962_v62  ;;  %v3097_v11 = vunpack.c.l.b16 %v2963_v51 }
 0x529   : > { %v2974_v3 = vpack.c.bf16 %v2910_v43, %v2910_v43  ;;  %v2975_v52 = vpack.c.bf16 %v2911_v36, %v2911_v36  ;;  %v2976_v10 = vpack.c.bf16 %v2912_v42, %v2912_v42  ;;  %v3098_v28 = vunpack.c.l.b16 %v2964_v30  ;;  %v6316_v36 = vld [vmem:[#allocation47_spill] sm:$0xff] }
 0x52a   : > { %v3095_v40 = vunpack.c.l.b16 %v2961_v39  ;;  %v3099_v33 = vunpack.c.l.b16 %v2965_v32  ;;  %v3104_v19 = vunpack.c.l.b16 %v2970_v34  ;;  %v3105_v6 = vunpack.c.l.b16 %v2971_v47 }
 0x52b   : > { %v3100_v16 = vunpack.c.l.b16 %v2966_v59  ;;  %v3101_v23 = vunpack.c.l.b16 %v2967_v8  ;;  %v3102_v17 = vunpack.c.l.b16 %v2968_v48  ;;  %v3106_v60 = vunpack.c.l.b16 %v2972_v26 }
 0x52c   : > { %v3103_v56 = vunpack.c.l.b16 %v2969_v9  ;;  %v3171_v15 = vrot.slane %v3096_v13, 7  ;;  %v3173_v31 = vrot.slane %v3097_v11, 6  ;;  %v3175_v41 = vrot.slane %v3098_v28, 5  ;;  %v6318_v28 = vld [vmem:[#allocation51_spill] sm:$0xff] }
 0x52d   : > { %v3107_v37 = vunpack.c.l.b16 %v2973_v63  ;;  %v3108_v27 = vunpack.c.l.b16 %v2974_v3  ;;  %v3109_v21 = vunpack.c.l.b16 %v2975_v52  ;;  %v3110_v49 = vunpack.c.l.b16 %v2976_v10  ;;  %v6317_v52 = vld [vmem:[#allocation56_spill] sm:$0xff] }
 0x52e   : > { %v3172_v22 = vsel %vm2578_vm1, %v3171_v15, %v3095_v40  ;;  %v3185_v7 = vrot.slane %v3104_v19, 7  ;;  %v3187_v61 = vrot.slane %v3105_v6, 6  ;;  %v3189_v62 = vrot.slane %v3106_v60, 5  ;;  %v6319_v6 = vld [vmem:[#allocation61_spill] sm:$0xff] }
 0x52f   : > { %v3174_v51 = vsel %vm2580_vm2, %v3173_v31, %v3172_v22  ;;  %v3177_v45 = vrot.slane %v3099_v33, 4  ;;  %v3179_v43 = vrot.slane %v3100_v16, 3  ;;  %v2913_v42 = vmul.f32 %v5829_v58, %v6316_v36  ;;  %v6322_v31 = vld [vmem:[#allocation64_spill] sm:$0xff] }
 0x530   : > { %v3176_v30 = vsel %vm2582_vm3, %v3175_v41, %v3174_v51  ;;  %v3181_v39 = vrot.slane %v3101_v23, 2  ;;  %v3183_v32 = vrot.slane %v3102_v17, 1  ;;  %v3186_v34 = vsel %vm2578_vm1, %v3185_v7, %v3103_v56  ;;  %v6320_v23 = vld [vmem:[#allocation49_spill] sm:$0xff]  ;;  %v6321_v56 = vld [vmem:[#allocation58_spill] sm:$0xff]  ;;  %v6325_v51 = vld [vmem:[#allocation52_spill] sm:$0xff] }
 0x531   : > { %v3178_v47 = vsel %vm2584_vm4, %v3177_v45, %v3176_v30  ;;  %v3188_v59 = vsel %vm2580_vm2, %v3187_v61, %v3186_v34  ;;  %v3191_v8 = vrot.slane %v3107_v37, 4  ;;  %v3193_v48 = vrot.slane %v3108_v27, 3  ;;  %v6323_v37 = vld [vmem:[#allocation53_spill] sm:$0xff]  ;;  %v6326_v30 = vld [vmem:[#allocation54_spill] sm:$0xff] }
 0x532   : > { %v3180_v26 = vsel %vm2586_vm5, %v3179_v43, %v3178_v47  ;;  %v3190_v9 = vsel %vm2582_vm3, %v3189_v62, %v3188_v59  ;;  %v3195_v63 = vrot.slane %v3109_v21, 2  ;;  %v3197_v13 = vrot.slane %v3110_v49, 1  ;;  %v6324_v7 = vld [vmem:[#allocation65_spill] sm:$0xff] }
 0x533   : > { %v3182_v11 = vsel %vm2588_vm6, %v3181_v39, %v3180_v26  ;;  %v3192_v3 = vsel %vm2584_vm4, %v3191_v8, %v3190_v9  ;;  %v2914_v10 = vmul.f32 %v5839_v20, %v6317_v52  ;;  %v2915_v40 = vmul.f32 %v5836_v29, %v6318_v28 }
 0x534   : > { %v3184_v33 = vsel %vm2590_vm7, %v3183_v32, %v3182_v11  ;;  %v3194_v19 = vsel %vm2586_vm5, %v3193_v48, %v3192_v3  ;;  %v2916_v16 = vmul.f32 %v5846_v55, %v6319_v6  ;;  %v2917_v17 = vmul.f32 %v5832_v35, %v6320_v23 }
 0x535   : > { %v3196_v60 = vsel %vm2588_vm6, %v3195_v63, %v3194_v19  ;;  %v2918_v15 = vmul.f32 %v5849_v5, %v6321_v56  ;;  %v2922_v41 = vmul.f32 %v5839_v20, %v6322_v31  ;;  %v2923_v27 = vmul.f32 %v5836_v29, %v6323_v37 }
 0x536   : > { %v3198_v21 = vsel %vm2590_vm7, %v3197_v13, %v3196_v60  ;;  %v2919_v49 = vmul.f32 %v5843_v53, %v5511_v18  ;;  %v2920_v22 = vmul.f32 %v5864_v54, %v6280_v24  ;;  %v2924_v61 = vmul.f32 %v5846_v55, %v6324_v7 }
 0x537   : > { %v3256_v62 = vpack.c.b16 %v3198_v21, %v3184_v33  ;;  %v2921_v45 = vmul.f32 %v5829_v58, %v6325_v51  ;;  %v2978_v43 = vpack.c.bf16 %v2914_v10, %v2914_v10  ;;  %v2979_v36 = vpack.c.bf16 %v2915_v40, %v2915_v40 }
 0x538   : > { %v2925_v39 = vmul.f32 %v5832_v35, %v6326_v30  ;;  %v2926_v32 = vmul.f32 %v5849_v5, %v5572_v2  ;;  %v2927_v18 = vmul.f32 %v5843_v53, %v6279_v4  ;;  %v2980_v34 = vpack.c.bf16 %v2916_v16, %v2916_v16 }
 0x539   : > { %3908 = vmatmul.mubr.bf16.vlgmr.msra.gmra.mrb[20].mxu0 %v3256_v62  ;;  %v2928_v24 = vmul.f32 %v5864_v54, %v6287_v14  ;;  %v2977_v47 = vpack.c.bf16 %v2913_v42, %v2913_v42  ;;  %v2986_v59 = vpack.c.bf16 %v2922_v41, %v2922_v41  ;;  %v2987_v8 = vpack.c.bf16 %v2923_v27, %v2923_v27 }
 0x53a   : > { %v2981_v48 = vpack.c.bf16 %v2917_v17, %v2917_v17  ;;  %v2982_v26 = vpack.c.bf16 %v2918_v15, %v2918_v15  ;;  %v2983_v9 = vpack.c.bf16 %v2919_v49, %v2919_v49  ;;  %v2988_v63 = vpack.c.bf16 %v2924_v61, %v2924_v61 }
 0x53b   : > { %v2984_v13 = vpack.c.bf16 %v2920_v22, %v2920_v22  ;;  %v2985_v11 = vpack.c.bf16 %v2921_v45, %v2921_v45  ;;  %v3112_v3 = vunpack.c.l.b16 %v2978_v43  ;;  %v3113_v52 = vunpack.c.l.b16 %v2979_v36 }
 0x53c   : > { %v2989_v2 = vpack.c.bf16 %v2925_v39, %v2925_v39  ;;  %v2990_v10 = vpack.c.bf16 %v2926_v32, %v2926_v32  ;;  %v2991_v28 = vpack.c.bf16 %v2927_v18, %v2927_v18  ;;  %v3114_v4 = vunpack.c.l.b16 %v2980_v34 }
 0x53d   : > { %v2992_v40 = vpack.c.bf16 %v2928_v24, %v2928_v24  ;;  %v3111_v33 = vunpack.c.l.b16 %v2977_v47  ;;  %v3120_v19 = vunpack.c.l.b16 %v2986_v59  ;;  %v3121_v6 = vunpack.c.l.b16 %v2987_v8 }
 0x53e   : > { %v3115_v14 = vunpack.c.l.b16 %v2981_v48  ;;  %v3116_v42 = vunpack.c.l.b16 %v2982_v26  ;;  %v3117_v16 = vunpack.c.l.b16 %v2983_v9  ;;  %v3122_v23 = vunpack.c.l.b16 %v2988_v63  ;;  %v6327_v63 = vld [vmem:[#allocation67_spill] sm:$0xff] }
 0x53f   : > { %v3118_v17 = vunpack.c.l.b16 %v2984_v13  ;;  %v3199_v60 = vrot.slane %v3112_v3, 7  ;;  %v3201_v56 = vrot.slane %v3113_v52, 6  ;;  %v3203_v15 = vrot.slane %v3114_v4, 5 }
 0x540   : > { %v3119_v31 = vunpack.c.l.b16 %v2985_v11  ;;  %v3123_v41 = vunpack.c.l.b16 %v2989_v2  ;;  %v3124_v37 = vunpack.c.l.b16 %v2990_v10  ;;  %v3125_v27 = vunpack.c.l.b16 %v2991_v28  ;;  %v6328_v28 = vld [vmem:[#allocation57_spill] sm:$0xff] }
 0x541   : > { %v3200_v21 = vsel %vm2578_vm1, %v3199_v60, %v3111_v33  ;;  %v3213_v49 = vrot.slane %v3120_v19, 7  ;;  %v3215_v22 = vrot.slane %v3121_v6, 6  ;;  %v3217_v7 = vrot.slane %v3122_v23, 5  ;;  %v6330_v23 = vld [vmem:[#allocation63_spill] sm:$0xff] }
 0x542   : > { %v3126_v61 = vunpack.c.l.b16 %v2992_v40  ;;  %v3202_v62 = vsel %vm2580_vm2, %v3201_v56, %v3200_v21  ;;  %v3205_v51 = vrot.slane %v3115_v14, 4  ;;  %v3207_v43 = vrot.slane %v3116_v42, 3 }
 0x543   : > { %v3204_v45 = vsel %vm2582_vm3, %v3203_v15, %v3202_v62  ;;  %v3209_v36 = vrot.slane %v3117_v16, 2  ;;  %v3214_v30 = vsel %vm2578_vm1, %v3213_v49, %v3119_v31  ;;  %v3211_v32 = vrot.slane %v3118_v17, 1 }
 0x544   : > { %v3206_v39 = vsel %vm2584_vm4, %v3205_v51, %v3204_v45  ;;  %v3216_v18 = vsel %vm2580_vm2, %v3215_v22, %v3214_v30  ;;  %v3219_v34 = vrot.slane %v3123_v41, 4  ;;  %v3221_v59 = vrot.slane %v3124_v37, 3 }
 0x545   : > { %v3208_v24 = vsel %vm2586_vm5, %v3207_v43, %v3206_v39  ;;  %v3218_v47 = vsel %vm2582_vm3, %v3217_v7, %v3216_v18  ;;  %v3223_v8 = vrot.slane %v3125_v27, 2  ;;  %v3225_v9 = vrot.slane %v3126_v61, 1 }
 0x546   : > { %v3210_v48 = vsel %vm2588_vm6, %v3209_v36, %v3208_v24  ;;  %v3220_v26 = vsel %vm2584_vm4, %v3219_v34, %v3218_v47  ;;  %v2930_v13 = vmul.f32 %v5839_v20, %v6327_v63  ;;  %v2931_v52 = vmul.f32 %v5836_v29, %v5533_v50 }
 0x547   : > { %v3212_v11 = vsel %vm2590_vm7, %v3211_v32, %v3210_v48  ;;  %v3222_v3 = vsel %vm2586_vm5, %v3221_v59, %v3220_v26  ;;  %v2932_v2 = vmul.f32 %v5846_v55, %v5584_v46  ;;  %v2929_v4 = vmul.f32 %v5829_v58, %v6328_v28 }
 0x548   : > { %v3224_v10 = vsel %vm2588_vm6, %v3223_v8, %v3222_v3  ;;  %v2933_v40 = vmul.f32 %v5832_v35, %v5536_v25  ;;  %v2938_v33 = vmul.f32 %v5839_v20, %v5598_v0  ;;  %v2934_v6 = vmul.f32 %v5849_v5, %v5588_v12  ;;  %v6329_v0 = vld [vmem:[#allocation60_spill] sm:$0xff] }
 0x549   : > { %v3226_v19 = vsel %vm2590_vm7, %v3225_v9, %v3224_v10  ;;  %v2939_v50 = vmul.f32 %v5836_v29, %v5557_v38  ;;  %v2940_v46 = vmul.f32 %v5846_v55, %v5607_v44  ;;  %v2935_v42 = vmul.f32 %v5843_v53, %v6284_v1  ;;  %v6331_v38 = vld [vmem:[#allocation69_spill] sm:$0xff]  ;;  %v6332_v29 = vld [vmem:[#allocation68_spill] sm:$0xff]  ;;  %v6333_v1 = vld [vmem:[#allocation35_spill] sm:$0xff] }
 0x54a   : > { %v3257_v14 = vpack.c.b16 %v3226_v19, %v3212_v11  ;;  %v2936_v25 = vmul.f32 %v5864_v54, %v6288_v57  ;;  %v2994_v16 = vpack.c.bf16 %v2930_v13, %v2930_v13  ;;  %v2937_v20 = vmul.f32 %v5829_v58, %v6329_v0 }
 0x54b   : > { %v2941_v12 = vmul.f32 %v5832_v35, %v6330_v23  ;;  %v2995_v17 = vpack.c.bf16 %v2931_v52, %v2931_v52  ;;  %v2996_v60 = vpack.c.bf16 %v2932_v2, %v2932_v2  ;;  %v2942_v44 = vmul.f32 %v5849_v5, %v6331_v38 }
 0x54c   : > { %3911 = vmatprep.mubr.bf16.mxu0 %v3257_v14  ;;  %v2943_v55 = vmul.f32 %v5843_v53, %v6332_v29  ;;  %v2944_v56 = vmul.f32 %v5864_v54, %v6333_v1  ;;  %v3002_v57 = vpack.c.bf16 %v2938_v33, %v2938_v33  ;;  %v2993_v15 = vpack.c.bf16 %v2929_v4, %v2929_v4 }
 0x54d   : > { %v2997_v31 = vpack.c.bf16 %v2933_v40, %v2933_v40  ;;  %v3003_v41 = vpack.c.bf16 %v2939_v50, %v2939_v50  ;;  %v3004_v58 = vpack.c.bf16 %v2940_v46, %v2940_v46  ;;  %v2998_v37 = vpack.c.bf16 %v2934_v6, %v2934_v6 }
 0x54e   : > { %v2999_v27 = vpack.c.bf16 %v2935_v42, %v2935_v42  ;;  %v3000_v35 = vpack.c.bf16 %v2936_v25, %v2936_v25  ;;  %v3128_v21 = vunpack.c.l.b16 %v2994_v16  ;;  %v3001_v49 = vpack.c.bf16 %v2937_v20, %v2937_v20 }
 0x54f   : > { %v3005_v22 = vpack.c.bf16 %v2941_v12, %v2941_v12  ;;  %v3129_v7 = vunpack.c.l.b16 %v2995_v17  ;;  %v3130_v61 = vunpack.c.l.b16 %v2996_v60  ;;  %v3006_v5 = vpack.c.bf16 %v2942_v44, %v2942_v44  ;;  %v3622_v44 = vld [vmem:[%s6334_s6] ss:$0 sm:$0xff] }
 0x550   : > { %v3007_v62 = vpack.c.bf16 %v2943_v55, %v2943_v55  ;;  %v3008_v51 = vpack.c.bf16 %v2944_v56, %v2944_v56  ;;  %v3136_v53 = vunpack.c.l.b16 %v3002_v57  ;;  %v3127_v45 = vunpack.c.l.b16 %v2993_v15 }
 0x551   : > { %v3131_v43 = vunpack.c.l.b16 %v2997_v31  ;;  %v3137_v54 = vunpack.c.l.b16 %v3003_v41  ;;  %v3138_v36 = vunpack.c.l.b16 %v3004_v58  ;;  %v3132_v30 = vunpack.c.l.b16 %v2998_v37 }
 0x552   : > { %v3133_v39 = vunpack.c.l.b16 %v2999_v27  ;;  %v3227_v32 = vrot.slane %v3128_v21, 7  ;;  %v3229_v18 = vrot.slane %v3129_v7, 6  ;;  %v3134_v34 = vunpack.c.l.b16 %v3000_v35 }
 0x553   : > { %v3135_v24 = vunpack.c.l.b16 %v3001_v49  ;;  %v3139_v47 = vunpack.c.l.b16 %v3005_v22  ;;  %v3231_v59 = vrot.slane %v3130_v61, 5  ;;  %v3140_v8 = vunpack.c.l.b16 %v3006_v5 }
 0x554   : > { %v3228_v48 = vsel %vm2578_vm1, %v3227_v32, %v3127_v45  ;;  %v3241_v26 = vrot.slane %v3136_v53, 7  ;;  %v3243_v9 = vrot.slane %v3137_v54, 6  ;;  %v3141_v63 = vunpack.c.l.b16 %v3007_v62 }
 0x555   : > { %v3230_v13 = vsel %vm2580_vm2, %v3229_v18, %v3228_v48  ;;  %v3233_v11 = vrot.slane %v3131_v43, 4  ;;  %v3245_v3 = vrot.slane %v3138_v36, 5  ;;  %v3142_v52 = vunpack.c.l.b16 %v3008_v51 }
 0x556   : > { %v3232_v2 = vsel %vm2582_vm3, %v3231_v59, %v3230_v13  ;;  %v3235_v10 = vrot.slane %v3132_v30, 3  ;;  %v3242_v28 = vsel %vm2578_vm1, %v3241_v26, %v3135_v24  ;;  %v3237_v40 = vrot.slane %v3133_v39, 2 }
 0x557   : > { %v3234_v4 = vsel %vm2584_vm4, %v3233_v11, %v3232_v2  ;;  %v3244_v33 = vsel %vm2580_vm2, %v3243_v9, %v3242_v28  ;;  %v3247_v19 = vrot.slane %v3139_v47, 4  ;;  %v3239_v50 = vrot.slane %v3134_v34, 1 }
 0x558   : > { %v3236_v6 = vsel %vm2586_vm5, %v3235_v10, %v3234_v4  ;;  %v3246_v46 = vsel %vm2582_vm3, %v3245_v3, %v3244_v33  ;;  %v3249_v14 = vrot.slane %v3140_v8, 3  ;;  %v3251_v16 = vrot.slane %v3141_v63, 2 }
 0x559   : > { %v3238_v42 = vsel %vm2588_vm6, %v3237_v40, %v3236_v6  ;;  %v3248_v25 = vsel %vm2584_vm4, %v3247_v19, %v3246_v46  ;;  %v3253_v23 = vrot.slane %v3142_v52, 1 }
 0x55a   : > { %v3240_v0 = vsel %vm2590_vm7, %v3239_v50, %v3238_v42  ;;  %v3250_v20 = vsel %vm2586_vm5, %v3249_v14, %v3248_v25 }
 0x55b   : > { %v3252_v12 = vsel %vm2588_vm6, %v3251_v16, %v3250_v20 }
 0x55c   : > { %v3254_v17 = vsel %vm2590_vm7, %v3253_v23, %v3252_v12 }
 0x55d   : > { %v3258_v60 = vpack.c.b16 %v3254_v17, %v3240_v0 }
 0x55f   : > { %3912 = vmatmul.mubr.bf16.gmra.mrb[24].mxu0 %v3258_v60 }
 0x60c   : > { %v3909_v38 = vpop.f32.mrb[20].mxu0 }
 0x60d   : > { %v3345_v29 = vpop.f32.mrb[21].mxu0  ;;  %v3354_v1 = vadd.f32 %v3909_v38, %v3622_v44 }
 0x60e   : > { %v3910_v55 = vpop.f32.mrb[22].mxu0  ;;  %v3346_v15 = vadd.f32 %v3622_v44, %v3345_v29 }
 0x60f   : > { %v3357_v56 = vadd.f32 %v3910_v55, %v3622_v44  ;;  %v3348_v57 = vpop.f32.mrb[23].mxu0 }
 0x610   : > { %v3349_v31 = vadd.f32 %v3622_v44, %v3348_v57 }
 0x611   : > { %v3662_v41 = vpack.c.bf16 %v3357_v56, %v3354_v1 }
 0x612   : > { %v3657_v58 = vpack.c.bf16 %v3349_v31, %v3346_v15 }
 0x613   : > { %3674 = vst [vmem:[%s531_s30 + $0x8] sm:$0xff] %v3662_v41  }
 0x614   : > { %3658 = vst [vmem:[%s531_s30] sm:$0xff] %v3657_v58  }
 0x632   : > { %v3913_v37 = vpop.f32.mrb[24].mxu0 }
 0x633   : > { %v3361_v27 = vpop.f32.mrb[25].mxu0  ;;  %v3370_v21 = vadd.f32 %v3913_v37, %v3622_v44 }
 0x634   : > { %v3914_v35 = vpop.f32.mrb[26].mxu0  ;;  %v3362_v7 = vadd.f32 %v3622_v44, %v3361_v27 }
 0x635   : > { %v3373_v49 = vadd.f32 %v3914_v35, %v3622_v44  ;;  %v3364_v22 = vpop.f32.mrb[27].mxu0 }
 0x636   : > { %v3365_v61 = vadd.f32 %v3622_v44, %v3364_v22 }
 0x637   : > { %v3672_v5 = vpack.c.bf16 %v3373_v49, %v3370_v21 }
 0x638   : > { %v3667_v62 = vpack.c.bf16 %v3365_v61, %v3362_v7 }
 0x639   : > { %3676 = vst [vmem:[%s531_s30 + $0x18] sm:$0xff] %v3672_v5  }
 0x63a   : > { %3675 = vst [vmem:[%s531_s30 + $0x10] sm:$0xff] %v3667_v62  }
 0x63b   : > { %4275 = shalt.err (!%p4272_p8)
}
 0x63c   : > { %s4276_s6 = scalar_lea.hbm %s6056_s13, 512  ;;  %s4280_s20 = scalar_lea.hbm %s6335_s15, 1024 }
 0x63d   : > { %p4277_p6 = scmp.ne.s32.totalorder %s6056_s13, %s4276_s6  ;;  %p4281_p3 = scmp.lt.u32.totalorder %s6056_s13, %s6335_s15 }
 0x63e   : > { %p4282_p5 = scmp.lt.u32.totalorder %s4280_s20, %s4276_s6  ;;  %p4284_p7 = scmp.lt.u32.totalorder %s4276_s6, %s6056_s13 }
 0x63f   : > { %p4278_p10 = pnand %p4277_p6, %p6336_p4 }
 0x640   : > { %p4283_p9 = por %p4282_p5, %p4281_p3 }
 0x641   : > { %p4279_p11 = pneg %p4278_p10 }
 0x642   : > { %p4285_p12 = por %p4284_p7, %p4283_p9 }
 0x644   : > { %p4286_p1 = pnand %p4285_p12, %p4279_p11 }
 0x646   : > { %4289 = shalt.err (!%p4286_p1)
}
 0x647   : > { %s4354_s12 = smov 64   ;;  %s4355_s10 = smov 4  }
 0x648   : > { %3953 = dma.vmem_to_hbm [thread:$0]  (%p6336_p4), %s6051_s22, 512, %s6056_s13, %s3417_s14, %s4354_s12, %s4354_s12, %s4355_s10  }
 0x649 PF: > { %s3445_s1 = sand.u32 1, %s4328_s25   ;;  %p6337_p13 = scmp.ne.s32.totalorder %s6198_s29, 0 }
 0x64a   : > { %p6338_p0 = scmp.ge.s32.totalorder %s4340_s28, 2  ;;  %s3446_s18 = scalar_lea.sflag [#allocation5], %s3445_s1 }
 0x64c   : > { %p3976_p2 = pnand %p6338_p0, %p6337_p13 }
 0x64e   : > { %4323 = dma.done.wait (!%p3976_p2), %s3446_s18, 512  }
 0x64f   : > { %4325 = vsyncadd (!%p3976_p2), %s3446_s18, 4294966784  ;;  %p29_p8 = scmp.ge.s32.totalorder %s4599_s16, 4   ;;  %s6339_s25 = smov %s4332_s26 }
 0x650   : > { %s6340_s26 = smov %s4336_s27  ;;  %s6341_s27 = smov %s4611_s8 }
 0x651   : > { %s6342_s28 = smov %s4599_s16  ;;  %31 = sbr.rel (!%p29_p8) target bundleno = 15 (0xf), region = 140 }
 0x658   :  { %3451 = vsyncpa [#allocation4], 1 }
 0x659   :  { %3453 = vsyncpa [#allocation4 + $0x1], 1 }
 0x65a   :  { %3454 = vsyncpa [#allocation7], 1 }
 0x65b   :  { %3455 = vsyncpa [#allocation10], 1 }
 0x65c   :  { %3456 = vsyncpa [#allocation13], 1 }
 0x65d   :  { %3457 = vsyncpa [#allocation5], 1 }
 0x65e   :  { %3459 = vsyncpa [#allocation5 + $0x1], 1 }

</bundles_post_ra>
